<compile_context>
chip_gen: v6e
topology: v6e:2x2x1
jax: 0.10.0
libtpu: 0.0.40
codegen_flags: <defaults>
</compile_context>

<pallas_src>
import jax
import jax.numpy as jnp
from jax.experimental import pallas as pl
from jax.experimental.pallas import tpu as pltpu


# ----------------------------- fused EncoderBlock kernel ---------------------------

def _make_encoder_block_kernel(H, W, dims, padding):
    """dims: list of (cin, cout) per 3x3 conv layer. Returns (kernel, (Hp, Wp, Cl))."""
    P = padding
    L = len(dims)
    # per-layer spatial sizes (3x3 kernel, stride 1)
    spat = [(H, W)]
    for _ in dims:
        h, w = spat[-1]
        spat.append((h + 2 * P - 2, w + 2 * P - 2))
    Hf, Wf = spat[-1]
    assert Hf > 0 and Wf > 0, "conv output collapsed to zero size"
    assert Hf % 2 == 0 and Wf % 2 == 0, "2x2/2 max-pool requires even spatial dims"
    Hp, Wp = Hf // 2, Wf // 2
    Cl = dims[-1][1]

    def kernel(*refs):
        # refs = (x_ref, w_0, b_0, ..., w_{L-1}, b_{L-1}, o_ref,
        #         xpad_0, patch_0, ..., xpad_{L-1}, patch_{L-1})
        x_ref = refs[0]
        wb = refs[1:1 + 2 * L]
        o_ref = refs[1 + 2 * L]
        scr = refs[2 + 2 * L:]

        act = x_ref[0]                                         # (H, W, Cin0) f32
        for l, (ci, co) in enumerate(dims):
            h_in, w_in = spat[l]
            h_out, w_out = spat[l + 1]
            xpad_ref = scr[2 * l]                              # (h_in+2P, w_in+2P, ci)
            patch_ref = scr[2 * l + 1]                         # (h_out, w_out, 9*ci)
            w_ref, b_ref = wb[2 * l], wb[2 * l + 1]

            # in-kernel halo padding (VMEM-resident, no extra HBM pass)
            if P > 0:
                xpad_ref[...] = jnp.zeros(
                    (h_in + 2 * P, w_in + 2 * P, ci), jnp.float32)
            xpad_ref[P:P + h_in, P:P + w_in, :] = act

            # im2col: pack the 9 shifted windows into one (h*w, 9*ci) matrix
            for ky in range(3):
                for kx in range(3):
                    tap = ky * 3 + kx
                    patch_ref[:, :, tap * ci:(tap + 1) * ci] = \
                        xpad_ref[ky:ky + h_out, kx:kx + w_out, :]

            pmat = patch_ref[...].reshape(h_out * w_out, 9 * ci)
            acc = jnp.dot(pmat, w_ref[...],
                          preferred_element_type=jnp.float32)  # single MXU matmul
            act = jnp.maximum(acc + b_ref[...], 0.0)           # bias + ReLU
            act = act.reshape(h_out, w_out, co)

        # fused 2x2 stride-2 max-pool epilogue (no extra kernel / HBM round trip)
        r = act.reshape(Hp, 2, Wf, Cl)
        r = jnp.max(r, axis=1)                                 # pool rows -> (Hp, Wf, Cl)
        r = r.reshape(Hp, Wp, 2, Cl)
        r = jnp.max(r, axis=2)                                 # pool cols -> (Hp, Wp, Cl)
        o_ref[0] = r.astype(o_ref.dtype)

    return kernel, (Hp, Wp, Cl)


def encoder_block_forward(x_nchw, params, padding=1):
    """Fused EncoderBlock forward.

    x_nchw: (N, Cin, H, W); params: list of (w, b) with w in PyTorch
    (Cout, Cin, 3, 3) layout and b of shape (Cout,).
    """
    x = jnp.transpose(x_nchw, (0, 2, 3, 1)).astype(jnp.float32)   # NCHW -> NHWC
    N, H, W, Cin = x.shape
    dims = [(int(w.shape[1]), int(w.shape[0])) for (w, _) in params]
    assert dims[0][0] == Cin, "first conv input channels must match input"

    kernel, (Hp, Wp, Cl) = _make_encoder_block_kernel(H, W, dims, padding)

    # flatten weights to the (9*Cin, Cout) im2col layout, biases to (1, Cout)
    flat_inputs = [x]
    in_specs = [pl.BlockSpec((1, H, W, Cin), lambda n: (n, 0, 0, 0))]
    for (w, b), (ci, co) in zip(params, dims):
        wflat = jnp.transpose(w, (2, 3, 1, 0)).reshape(9 * ci, co)
        flat_inputs += [wflat, b.reshape(1, co)]
        in_specs += [pl.BlockSpec((9 * ci, co), lambda n: (0, 0)),
                     pl.BlockSpec((1, co), lambda n: (0, 0))]

    # VMEM scratch: padded activation + im2col patch matrix per layer
    scratch_shapes = []
    spat = [(H, W)]
    for (ci, co) in dims:
        h_in, w_in = spat[-1]
        h_out = h_in + 2 * padding - 2
        w_out = w_in + 2 * padding - 2
        scratch_shapes += [
            pltpu.VMEM((h_in + 2 * padding, w_in + 2 * padding, ci), jnp.float32),
            pltpu.VMEM((h_out, w_out, 9 * ci), jnp.float32),
        ]
        spat.append((h_out, w_out))

    out = pl.pallas_call(
        kernel,
        out_shape=jax.ShapeDtypeStruct((N, Hp, Wp, Cl), jnp.float32),
        grid=(N,),
        in_specs=in_specs,
        out_specs=pl.BlockSpec((1, Hp, Wp, Cl), lambda n: (n, 0, 0, 0)),
        scratch_shapes=scratch_shapes,
        compiler_params=pltpu.CompilerParams(
            dimension_semantics=("parallel",)),
    )(*flat_inputs)
    return jnp.transpose(out, (0, 3, 1, 2))                    # NHWC -> NCHW


# --------------------------------- parameter init ----------------------------------

def _init_conv_params(key, cin, cout):
    # deterministic PyTorch-like uniform init
    k1, k2 = jax.random.split(key)
    fan_in = cin * 9
    bound = 1.0 / (fan_in ** 0.5)
    w = jax.random.uniform(k1, (cout, cin, 3, 3), jnp.float32, -bound, bound)
    b = jax.random.uniform(k2, (cout,), jnp.float32, -bound, bound)
    return w, b


class EncoderBlockPallas:
    def __init__(self, key, input_dim, hidden_dim, output_dim, layers,
                 enable_bn=False, padding=1):
        # TODO(synk): enable_bn=True path (nn.BatchNorm2d with training-mode batch
        # statistics) is not implemented; the default enable_bn=False is reproduced.
        assert not enable_bn, "BatchNorm path not implemented"
        self.padding = padding
        if layers == 1:
            dims = [(input_dim, output_dim)]
        else:
            dims = ([(input_dim, hidden_dim)]
                    + [(hidden_dim, hidden_dim)] * (layers - 2)
                    + [(hidden_dim, output_dim)])
        self.params = []
        for (ci, co) in dims:
            key, sub = jax.random.split(key)
            self.params.append(_init_conv_params(sub, ci, co))

    def __call__(self, x_nchw):
        return encoder_block_forward(x_nchw, self.params, padding=self.padding)


# ----------------------------- pure-JAX reference ----------------------------------

def _ref_forward(x_nchw, params, padding):
    x = jnp.transpose(x_nchw, (0, 2, 3, 1))
    for (w, b) in params:
        y = jax.lax.conv_general_dilated(
            x, jnp.transpose(w, (2, 3, 1, 0)),
            window_strides=(1, 1),
            padding=[(padding, padding), (padding, padding)],
            dimension_numbers=("NHWC", "HWIO", "NHWC"))
        x = jax.nn.relu(y + b)
    x = jax.lax.reduce_window(x, -jnp.inf, jax.lax.max,
                              (1, 2, 2, 1), (1, 2, 2, 1), "VALID")
    return jnp.transpose(x, (0, 3, 1, 2))


# ------------------------------------ main -----------------------------------------

if __name__ == "__main__":
    key = jax.random.PRNGKey(0)
    k_in, k_params = jax.random.split(key)

    N, Cin, H, W = 2, 4, 16, 16
    hidden_dim, output_dim, layers = 8, 8, 2

    x = jax.random.normal(k_in, (N, Cin, H, W), jnp.float32)

    block = EncoderBlockPallas(k_params, input_dim=Cin, hidden_dim=hidden_dim,
                               output_dim=output_dim, layers=layers,
                               enable_bn=False, padding=1)

    out = jax.block_until_ready(block(x))

    ref = jax.block_until_ready(_ref_forward(x, block.params, padding=1))
    assert out.shape == (N, output_dim, H // 2, W // 2), out.shape
    assert jnp.allclose(out, ref, atol=1e-4, rtol=1e-4), \
        float(jnp.max(jnp.abs(out - ref)))

    print("KERNEL_OK")
</pallas_src>

<mosaic_0001>
module attributes {stable_mosaic.version = 11 : i64} {
  func.func @kernel(%arg0: i32, %arg1: memref<1x16x16x4xf32, #tpu.memory_space<vmem>>, %arg2: memref<36x8xf32, #tpu.memory_space<vmem>>, %arg3: memref<1x8xf32, #tpu.memory_space<vmem>>, %arg4: memref<72x8xf32, #tpu.memory_space<vmem>>, %arg5: memref<1x8xf32, #tpu.memory_space<vmem>>, %arg6: memref<1x8x8x8xf32, #tpu.memory_space<vmem>>, %arg7: memref<18x18x4xf32, #tpu.memory_space<vmem>>, %arg8: memref<16x16x36xf32, #tpu.memory_space<vmem>>, %arg9: memref<18x18x8xf32, #tpu.memory_space<vmem>>, %arg10: memref<16x16x72xf32, #tpu.memory_space<vmem>>) attributes {dimension_semantics = [#tpu.dimension_semantics<parallel>], iteration_bounds = array<i64: 2>, scalar_prefetch = 0 : i64, scratch_operands = 4 : i64, tpu.core_type = #tpu.core_type<tc>, window_params = [{transform_indices = @transform_0, window_bounds = array<i64: 1, 16, 16, 4>}, {pipeline_mode = #tpu.pipeline_mode<synchronous>, transform_indices = @transform_1, window_bounds = array<i64: 36, 8>}, {pipeline_mode = #tpu.pipeline_mode<synchronous>, transform_indices = @transform_2, window_bounds = array<i64: 1, 8>}, {pipeline_mode = #tpu.pipeline_mode<synchronous>, transform_indices = @transform_3, window_bounds = array<i64: 72, 8>}, {pipeline_mode = #tpu.pipeline_mode<synchronous>, transform_indices = @transform_4, window_bounds = array<i64: 1, 8>}, {transform_indices = @transform_5, window_bounds = array<i64: 1, 8, 8, 8>}]} {
    %c0 = arith.constant 0 : index
    %c0_0 = arith.constant 0 : index
    %c0_1 = arith.constant 0 : index
    %c0_2 = arith.constant 0 : index
    %0 = vector.load %arg1[%c0, %c0_0, %c0_1, %c0_2] : memref<1x16x16x4xf32, #tpu.memory_space<vmem>>, vector<1x16x16x4xf32>
    %1 = vector.shape_cast %0 : vector<1x16x16x4xf32> to vector<16x16x4xf32>
    %cst = arith.constant 0.000000e+00 : f32
    %2 = vector.broadcast %cst : f32 to vector<18x18x4xf32>
    %c0_3 = arith.constant 0 : index
    %c0_4 = arith.constant 0 : index
    %c0_5 = arith.constant 0 : index
    %3 = vector.load %arg7[%c0_3, %c0_4, %c0_5] : memref<18x18x4xf32, #tpu.memory_space<vmem>>, vector<18x18x4xf32>
    tpu.vector_store %arg7[%c0_3, %c0_4, %c0_5], %2 {strides = array<i32>} : memref<18x18x4xf32, #tpu.memory_space<vmem>>, vector<18x18x4xf32>,
    %c1 = arith.constant 1 : index
    %c1_6 = arith.constant 1 : index
    %c0_7 = arith.constant 0 : index
    %4 = vector.load %arg7[%c1, %c1_6, %c0_7] : memref<18x18x4xf32, #tpu.memory_space<vmem>>, vector<16x16x4xf32>
    tpu.vector_store %arg7[%c1, %c1_6, %c0_7], %1 {strides = array<i32>} : memref<18x18x4xf32, #tpu.memory_space<vmem>>, vector<16x16x4xf32>,
    %c0_8 = arith.constant 0 : index
    %c0_9 = arith.constant 0 : index
    %c0_10 = arith.constant 0 : index
    %5 = vector.load %arg7[%c0_8, %c0_9, %c0_10] : memref<18x18x4xf32, #tpu.memory_space<vmem>>, vector<16x16x4xf32>
    %c0_11 = arith.constant 0 : index
    %c0_12 = arith.constant 0 : index
    %c0_13 = arith.constant 0 : index
    %6 = vector.load %arg8[%c0_11, %c0_12, %c0_13] : memref<16x16x36xf32, #tpu.memory_space<vmem>>, vector<16x16x4xf32>
    tpu.vector_store %arg8[%c0_11, %c0_12, %c0_13], %5 {strides = array<i32>} : memref<16x16x36xf32, #tpu.memory_space<vmem>>, vector<16x16x4xf32>,
    %c0_14 = arith.constant 0 : index
    %c1_15 = arith.constant 1 : index
    %c0_16 = arith.constant 0 : index
    %7 = vector.load %arg7[%c0_14, %c1_15, %c0_16] : memref<18x18x4xf32, #tpu.memory_space<vmem>>, vector<16x16x4xf32>
    %c0_17 = arith.constant 0 : index
    %c0_18 = arith.constant 0 : index
    %c4 = arith.constant 4 : index
    %8 = vector.load %arg8[%c0_17, %c0_18, %c4] : memref<16x16x36xf32, #tpu.memory_space<vmem>>, vector<16x16x4xf32>
    tpu.vector_store %arg8[%c0_17, %c0_18, %c4], %7 {strides = array<i32>} : memref<16x16x36xf32, #tpu.memory_space<vmem>>, vector<16x16x4xf32>,
    %c0_19 = arith.constant 0 : index
    %c2 = arith.constant 2 : index
    %c0_20 = arith.constant 0 : index
    %9 = vector.load %arg7[%c0_19, %c2, %c0_20] : memref<18x18x4xf32, #tpu.memory_space<vmem>>, vector<16x16x4xf32>
    %c0_21 = arith.constant 0 : index
    %c0_22 = arith.constant 0 : index
    %c8 = arith.constant 8 : index
    %10 = vector.load %arg8[%c0_21, %c0_22, %c8] : memref<16x16x36xf32, #tpu.memory_space<vmem>>, vector<16x16x4xf32>
    tpu.vector_store %arg8[%c0_21, %c0_22, %c8], %9 {strides = array<i32>} : memref<16x16x36xf32, #tpu.memory_space<vmem>>, vector<16x16x4xf32>,
    %c1_23 = arith.constant 1 : index
    %c0_24 = arith.constant 0 : index
    %c0_25 = arith.constant 0 : index
    %11 = vector.load %arg7[%c1_23, %c0_24, %c0_25] : memref<18x18x4xf32, #tpu.memory_space<vmem>>, vector<16x16x4xf32>
    %c0_26 = arith.constant 0 : index
    %c0_27 = arith.constant 0 : index
    %c12 = arith.constant 12 : index
    %12 = vector.load %arg8[%c0_26, %c0_27, %c12] : memref<16x16x36xf32, #tpu.memory_space<vmem>>, vector<16x16x4xf32>
    tpu.vector_store %arg8[%c0_26, %c0_27, %c12], %11 {strides = array<i32>} : memref<16x16x36xf32, #tpu.memory_space<vmem>>, vector<16x16x4xf32>,
    %c1_28 = arith.constant 1 : index
    %c1_29 = arith.constant 1 : index
    %c0_30 = arith.constant 0 : index
    %13 = vector.load %arg7[%c1_28, %c1_29, %c0_30] : memref<18x18x4xf32, #tpu.memory_space<vmem>>, vector<16x16x4xf32>
    %c0_31 = arith.constant 0 : index
    %c0_32 = arith.constant 0 : index
    %c16 = arith.constant 16 : index
    %14 = vector.load %arg8[%c0_31, %c0_32, %c16] : memref<16x16x36xf32, #tpu.memory_space<vmem>>, vector<16x16x4xf32>
    tpu.vector_store %arg8[%c0_31, %c0_32, %c16], %13 {strides = array<i32>} : memref<16x16x36xf32, #tpu.memory_space<vmem>>, vector<16x16x4xf32>,
    %c1_33 = arith.constant 1 : index
    %c2_34 = arith.constant 2 : index
    %c0_35 = arith.constant 0 : index
    %15 = vector.load %arg7[%c1_33, %c2_34, %c0_35] : memref<18x18x4xf32, #tpu.memory_space<vmem>>, vector<16x16x4xf32>
    %c0_36 = arith.constant 0 : index
    %c0_37 = arith.constant 0 : index
    %c20 = arith.constant 20 : index
    %16 = vector.load %arg8[%c0_36, %c0_37, %c20] : memref<16x16x36xf32, #tpu.memory_space<vmem>>, vector<16x16x4xf32>
    tpu.vector_store %arg8[%c0_36, %c0_37, %c20], %15 {strides = array<i32>} : memref<16x16x36xf32, #tpu.memory_space<vmem>>, vector<16x16x4xf32>,
    %c2_38 = arith.constant 2 : index
    %c0_39 = arith.constant 0 : index
    %c0_40 = arith.constant 0 : index
    %17 = vector.load %arg7[%c2_38, %c0_39, %c0_40] : memref<18x18x4xf32, #tpu.memory_space<vmem>>, vector<16x16x4xf32>
    %c0_41 = arith.constant 0 : index
    %c0_42 = arith.constant 0 : index
    %c24 = arith.constant 24 : index
    %18 = vector.load %arg8[%c0_41, %c0_42, %c24] : memref<16x16x36xf32, #tpu.memory_space<vmem>>, vector<16x16x4xf32>
    tpu.vector_store %arg8[%c0_41, %c0_42, %c24], %17 {strides = array<i32>} : memref<16x16x36xf32, #tpu.memory_space<vmem>>, vector<16x16x4xf32>,
    %c2_43 = arith.constant 2 : index
    %c1_44 = arith.constant 1 : index
    %c0_45 = arith.constant 0 : index
    %19 = vector.load %arg7[%c2_43, %c1_44, %c0_45] : memref<18x18x4xf32, #tpu.memory_space<vmem>>, vector<16x16x4xf32>
    %c0_46 = arith.constant 0 : index
    %c0_47 = arith.constant 0 : index
    %c28 = arith.constant 28 : index
    %20 = vector.load %arg8[%c0_46, %c0_47, %c28] : memref<16x16x36xf32, #tpu.memory_space<vmem>>, vector<16x16x4xf32>
    tpu.vector_store %arg8[%c0_46, %c0_47, %c28], %19 {strides = array<i32>} : memref<16x16x36xf32, #tpu.memory_space<vmem>>, vector<16x16x4xf32>,
    %c2_48 = arith.constant 2 : index
    %c2_49 = arith.constant 2 : index
    %c0_50 = arith.constant 0 : index
    %21 = vector.load %arg7[%c2_48, %c2_49, %c0_50] : memref<18x18x4xf32, #tpu.memory_space<vmem>>, vector<16x16x4xf32>
    %c0_51 = arith.constant 0 : index
    %c0_52 = arith.constant 0 : index
    %c32 = arith.constant 32 : index
    %22 = vector.load %arg8[%c0_51, %c0_52, %c32] : memref<16x16x36xf32, #tpu.memory_space<vmem>>, vector<16x16x4xf32>
    tpu.vector_store %arg8[%c0_51, %c0_52, %c32], %21 {strides = array<i32>} : memref<16x16x36xf32, #tpu.memory_space<vmem>>, vector<16x16x4xf32>,
    %c0_53 = arith.constant 0 : index
    %c0_54 = arith.constant 0 : index
    %c0_55 = arith.constant 0 : index
    %23 = vector.load %arg8[%c0_53, %c0_54, %c0_55] : memref<16x16x36xf32, #tpu.memory_space<vmem>>, vector<16x16x36xf32>
    %24 = vector.shape_cast %23 : vector<16x16x36xf32> to vector<256x36xf32>
    %c0_56 = arith.constant 0 : index
    %c0_57 = arith.constant 0 : index
    %25 = vector.load %arg2[%c0_56, %c0_57] : memref<36x8xf32, #tpu.memory_space<vmem>>, vector<36x8xf32>
    %cst_58 = arith.constant dense<0.000000e+00> : vector<256x8xf32>
    %26 = tpu.matmul %24, %25, %cst_58 {dimension_numbers = #tpu.dot_dimension_numbers<[1], [0], [0], [1], [0, 0, 1, 1], [], []>} : vector<256x36xf32>, vector<36x8xf32>, vector<256x8xf32> -> vector<256x8xf32>
    %c0_59 = arith.constant 0 : index
    %c0_60 = arith.constant 0 : index
    %27 = vector.load %arg3[%c0_59, %c0_60] : memref<1x8xf32, #tpu.memory_space<vmem>>, vector<1x8xf32>
    %28 = vector.broadcast %27 : vector<1x8xf32> to vector<256x8xf32>
    %29 = arith.addf %26, %28 : vector<256x8xf32>
    %cst_61 = arith.constant 0.000000e+00 : f32
    %30 = vector.broadcast %cst_61 : f32 to vector<256x8xf32>
    %31 = arith.maximumf %29, %30 : vector<256x8xf32>
    %32 = vector.shape_cast %31 : vector<256x8xf32> to vector<16x16x8xf32>
    %cst_62 = arith.constant 0.000000e+00 : f32
    %33 = vector.broadcast %cst_62 : f32 to vector<18x18x8xf32>
    %c0_63 = arith.constant 0 : index
    %c0_64 = arith.constant 0 : index
    %c0_65 = arith.constant 0 : index
    %34 = vector.load %arg9[%c0_63, %c0_64, %c0_65] : memref<18x18x8xf32, #tpu.memory_space<vmem>>, vector<18x18x8xf32>
    tpu.vector_store %arg9[%c0_63, %c0_64, %c0_65], %33 {strides = array<i32>} : memref<18x18x8xf32, #tpu.memory_space<vmem>>, vector<18x18x8xf32>,
    %c1_66 = arith.constant 1 : index
    %c1_67 = arith.constant 1 : index
    %c0_68 = arith.constant 0 : index
    %35 = vector.load %arg9[%c1_66, %c1_67, %c0_68] : memref<18x18x8xf32, #tpu.memory_space<vmem>>, vector<16x16x8xf32>
    tpu.vector_store %arg9[%c1_66, %c1_67, %c0_68], %32 {strides = array<i32>} : memref<18x18x8xf32, #tpu.memory_space<vmem>>, vector<16x16x8xf32>,
    %c0_69 = arith.constant 0 : index
    %c0_70 = arith.constant 0 : index
    %c0_71 = arith.constant 0 : index
    %36 = vector.load %arg9[%c0_69, %c0_70, %c0_71] : memref<18x18x8xf32, #tpu.memory_space<vmem>>, vector<16x16x8xf32>
    %c0_72 = arith.constant 0 : index
    %c0_73 = arith.constant 0 : index
    %c0_74 = arith.constant 0 : index
    %37 = vector.load %arg10[%c0_72, %c0_73, %c0_74] : memref<16x16x72xf32, #tpu.memory_space<vmem>>, vector<16x16x8xf32>
    tpu.vector_store %arg10[%c0_72, %c0_73, %c0_74], %36 {strides = array<i32>} : memref<16x16x72xf32, #tpu.memory_space<vmem>>, vector<16x16x8xf32>,
    %c0_75 = arith.constant 0 : index
    %c1_76 = arith.constant 1 : index
    %c0_77 = arith.constant 0 : index
    %38 = vector.load %arg9[%c0_75, %c1_76, %c0_77] : memref<18x18x8xf32, #tpu.memory_space<vmem>>, vector<16x16x8xf32>
    %c0_78 = arith.constant 0 : index
    %c0_79 = arith.constant 0 : index
    %c8_80 = arith.constant 8 : index
    %39 = vector.load %arg10[%c0_78, %c0_79, %c8_80] : memref<16x16x72xf32, #tpu.memory_space<vmem>>, vector<16x16x8xf32>
    tpu.vector_store %arg10[%c0_78, %c0_79, %c8_80], %38 {strides = array<i32>} : memref<16x16x72xf32, #tpu.memory_space<vmem>>, vector<16x16x8xf32>,
    %c0_81 = arith.constant 0 : index
    %c2_82 = arith.constant 2 : index
    %c0_83 = arith.constant 0 : index
    %40 = vector.load %arg9[%c0_81, %c2_82, %c0_83] : memref<18x18x8xf32, #tpu.memory_space<vmem>>, vector<16x16x8xf32>
    %c0_84 = arith.constant 0 : index
    %c0_85 = arith.constant 0 : index
    %c16_86 = arith.constant 16 : index
    %41 = vector.load %arg10[%c0_84, %c0_85, %c16_86] : memref<16x16x72xf32, #tpu.memory_space<vmem>>, vector<16x16x8xf32>
    tpu.vector_store %arg10[%c0_84, %c0_85, %c16_86], %40 {strides = array<i32>} : memref<16x16x72xf32, #tpu.memory_space<vmem>>, vector<16x16x8xf32>,
    %c1_87 = arith.constant 1 : index
    %c0_88 = arith.constant 0 : index
    %c0_89 = arith.constant 0 : index
    %42 = vector.load %arg9[%c1_87, %c0_88, %c0_89] : memref<18x18x8xf32, #tpu.memory_space<vmem>>, vector<16x16x8xf32>
    %c0_90 = arith.constant 0 : index
    %c0_91 = arith.constant 0 : index
    %c24_92 = arith.constant 24 : index
    %43 = vector.load %arg10[%c0_90, %c0_91, %c24_92] : memref<16x16x72xf32, #tpu.memory_space<vmem>>, vector<16x16x8xf32>
    tpu.vector_store %arg10[%c0_90, %c0_91, %c24_92], %42 {strides = array<i32>} : memref<16x16x72xf32, #tpu.memory_space<vmem>>, vector<16x16x8xf32>,
    %c1_93 = arith.constant 1 : index
    %c1_94 = arith.constant 1 : index
    %c0_95 = arith.constant 0 : index
    %44 = vector.load %arg9[%c1_93, %c1_94, %c0_95] : memref<18x18x8xf32, #tpu.memory_space<vmem>>, vector<16x16x8xf32>
    %c0_96 = arith.constant 0 : index
    %c0_97 = arith.constant 0 : index
    %c32_98 = arith.constant 32 : index
    %45 = vector.load %arg10[%c0_96, %c0_97, %c32_98] : memref<16x16x72xf32, #tpu.memory_space<vmem>>, vector<16x16x8xf32>
    tpu.vector_store %arg10[%c0_96, %c0_97, %c32_98], %44 {strides = array<i32>} : memref<16x16x72xf32, #tpu.memory_space<vmem>>, vector<16x16x8xf32>,
    %c1_99 = arith.constant 1 : index
    %c2_100 = arith.constant 2 : index
    %c0_101 = arith.constant 0 : index
    %46 = vector.load %arg9[%c1_99, %c2_100, %c0_101] : memref<18x18x8xf32, #tpu.memory_space<vmem>>, vector<16x16x8xf32>
    %c0_102 = arith.constant 0 : index
    %c0_103 = arith.constant 0 : index
    %c40 = arith.constant 40 : index
    %47 = vector.load %arg10[%c0_102, %c0_103, %c40] : memref<16x16x72xf32, #tpu.memory_space<vmem>>, vector<16x16x8xf32>
    tpu.vector_store %arg10[%c0_102, %c0_103, %c40], %46 {strides = array<i32>} : memref<16x16x72xf32, #tpu.memory_space<vmem>>, vector<16x16x8xf32>,
    %c2_104 = arith.constant 2 : index
    %c0_105 = arith.constant 0 : index
    %c0_106 = arith.constant 0 : index
    %48 = vector.load %arg9[%c2_104, %c0_105, %c0_106] : memref<18x18x8xf32, #tpu.memory_space<vmem>>, vector<16x16x8xf32>
    %c0_107 = arith.constant 0 : index
    %c0_108 = arith.constant 0 : index
    %c48 = arith.constant 48 : index
    %49 = vector.load %arg10[%c0_107, %c0_108, %c48] : memref<16x16x72xf32, #tpu.memory_space<vmem>>, vector<16x16x8xf32>
    tpu.vector_store %arg10[%c0_107, %c0_108, %c48], %48 {strides = array<i32>} : memref<16x16x72xf32, #tpu.memory_space<vmem>>, vector<16x16x8xf32>,
    %c2_109 = arith.constant 2 : index
    %c1_110 = arith.constant 1 : index
    %c0_111 = arith.constant 0 : index
    %50 = vector.load %arg9[%c2_109, %c1_110, %c0_111] : memref<18x18x8xf32, #tpu.memory_space<vmem>>, vector<16x16x8xf32>
    %c0_112 = arith.constant 0 : index
    %c0_113 = arith.constant 0 : index
    %c56 = arith.constant 56 : index
    %51 = vector.load %arg10[%c0_112, %c0_113, %c56] : memref<16x16x72xf32, #tpu.memory_space<vmem>>, vector<16x16x8xf32>
    tpu.vector_store %arg10[%c0_112, %c0_113, %c56], %50 {strides = array<i32>} : memref<16x16x72xf32, #tpu.memory_space<vmem>>, vector<16x16x8xf32>,
    %c2_114 = arith.constant 2 : index
    %c2_115 = arith.constant 2 : index
    %c0_116 = arith.constant 0 : index
    %52 = vector.load %arg9[%c2_114, %c2_115, %c0_116] : memref<18x18x8xf32, #tpu.memory_space<vmem>>, vector<16x16x8xf32>
    %c0_117 = arith.constant 0 : index
    %c0_118 = arith.constant 0 : index
    %c64 = arith.constant 64 : index
    %53 = vector.load %arg10[%c0_117, %c0_118, %c64] : memref<16x16x72xf32, #tpu.memory_space<vmem>>, vector<16x16x8xf32>
    tpu.vector_store %arg10[%c0_117, %c0_118, %c64], %52 {strides = array<i32>} : memref<16x16x72xf32, #tpu.memory_space<vmem>>, vector<16x16x8xf32>,
    %c0_119 = arith.constant 0 : index
    %c0_120 = arith.constant 0 : index
    %c0_121 = arith.constant 0 : index
    %54 = vector.load %arg10[%c0_119, %c0_120, %c0_121] : memref<16x16x72xf32, #tpu.memory_space<vmem>>, vector<16x16x72xf32>
    %55 = vector.shape_cast %54 : vector<16x16x72xf32> to vector<256x72xf32>
    %c0_122 = arith.constant 0 : index
    %c0_123 = arith.constant 0 : index
    %56 = vector.load %arg4[%c0_122, %c0_123] : memref<72x8xf32, #tpu.memory_space<vmem>>, vector<72x8xf32>
    %cst_124 = arith.constant dense<0.000000e+00> : vector<256x8xf32>
    %57 = tpu.matmul %55, %56, %cst_124 {dimension_numbers = #tpu.dot_dimension_numbers<[1], [0], [0], [1], [0, 0, 1, 1], [], []>} : vector<256x72xf32>, vector<72x8xf32>, vector<256x8xf32> -> vector<256x8xf32>
    %c0_125 = arith.constant 0 : index
    %c0_126 = arith.constant 0 : index
    %58 = vector.load %arg5[%c0_125, %c0_126] : memref<1x8xf32, #tpu.memory_space<vmem>>, vector<1x8xf32>
    %59 = vector.broadcast %58 : vector<1x8xf32> to vector<256x8xf32>
    %60 = arith.addf %57, %59 : vector<256x8xf32>
    %cst_127 = arith.constant 0.000000e+00 : f32
    %61 = vector.broadcast %cst_127 : f32 to vector<256x8xf32>
    %62 = arith.maximumf %60, %61 : vector<256x8xf32>
    %63 = vector.shape_cast %62 : vector<256x8xf32> to vector<16x16x8xf32>
    %64 = vector.shape_cast %63 : vector<16x16x8xf32> to vector<8x2x16x8xf32>
    %cst_128 = arith.constant dense<0xFF800000> : vector<8x16x8xf32>
    %65 = vector.multi_reduction <maximumf>, %64, %cst_128 [1] : vector<8x2x16x8xf32> to vector<8x16x8xf32>
    %66 = vector.shape_cast %65 : vector<8x16x8xf32> to vector<8x8x2x8xf32>
    %cst_129 = arith.constant dense<0xFF800000> : vector<8x8x8xf32>
    %67 = vector.multi_reduction <maximumf>, %66, %cst_129 [2] : vector<8x8x2x8xf32> to vector<8x8x8xf32>
    %c0_130 = arith.constant 0 : index
    %c0_131 = arith.constant 0 : index
    %c0_132 = arith.constant 0 : index
    %c0_133 = arith.constant 0 : index
    %68 = vector.load %arg6[%c0_130, %c0_131, %c0_132, %c0_133] : memref<1x8x8x8xf32, #tpu.memory_space<vmem>>, vector<1x8x8x8xf32>
    %69 = vector.shape_cast %68 : vector<1x8x8x8xf32> to vector<8x8x8xf32>
    %70 = vector.shape_cast %67 : vector<8x8x8xf32> to vector<1x8x8x8xf32>
    tpu.vector_store %arg6[%c0_130, %c0_131, %c0_132, %c0_133], %70 {strides = array<i32>} : memref<1x8x8x8xf32, #tpu.memory_space<vmem>>, vector<1x8x8x8xf32>,
    return
  }
  func.func @transform_0(%arg0: i32) -> (i32, i32, i32, i32) {
    %c0_i32 = arith.constant 0 : i32
    %c0_i32_0 = arith.constant 0 : i32
    %c0_i32_1 = arith.constant 0 : i32
    %c0_i32_2 = arith.constant 0 : i32
    return %arg0, %c0_i32, %c0_i32_0, %c0_i32_1 : i32, i32, i32, i32
  }
  func.func @transform_1(%arg0: i32) -> (i32, i32) {
    %c0_i32 = arith.constant 0 : i32
    %c0_i32_0 = arith.constant 0 : i32
    %c0_i32_1 = arith.constant 0 : i32
    return %c0_i32, %c0_i32_0 : i32, i32
  }
  func.func @transform_2(%arg0: i32) -> (i32, i32) {
    %c0_i32 = arith.constant 0 : i32
    %c0_i32_0 = arith.constant 0 : i32
    %c0_i32_1 = arith.constant 0 : i32
    return %c0_i32, %c0_i32_0 : i32, i32
  }
  func.func @transform_3(%arg0: i32) -> (i32, i32) {
    %c0_i32 = arith.constant 0 : i32
    %c0_i32_0 = arith.constant 0 : i32
    %c0_i32_1 = arith.constant 0 : i32
    return %c0_i32, %c0_i32_0 : i32, i32
  }
  func.func @transform_4(%arg0: i32) -> (i32, i32) {
    %c0_i32 = arith.constant 0 : i32
    %c0_i32_0 = arith.constant 0 : i32
    %c0_i32_1 = arith.constant 0 : i32
    return %c0_i32, %c0_i32_0 : i32, i32
  }
  func.func @transform_5(%arg0: i32) -> (i32, i32, i32, i32) {
    %c0_i32 = arith.constant 0 : i32
    %c0_i32_0 = arith.constant 0 : i32
    %c0_i32_1 = arith.constant 0 : i32
    %c0_i32_2 = arith.constant 0 : i32
    return %arg0, %c0_i32, %c0_i32_0, %c0_i32_1 : i32, i32, i32, i32
  }
}

</mosaic_0001>

<bundles_post_ra>
// kernel: tpu_custom_call.1
= control target key start
LH: loop header
LB: loop body
LE: loop exit
PB: predicated region body
PF: predicated region fallthrough
CT: control target
= control target key end

     0   :  { %10 = vsyncpa [#allocation7], 0  ;;  %s8588_s0 = inlined_call_operand.vmem [shape: f32[2,16,16,4], index: 0, kind: input, shape index: {}]   ;;  %s8589_s1 = inlined_call_operand.vmem [shape: f32[36,8], index: 1, kind: input, shape index: {}]   ;;  %s8590_s2 = inlined_call_operand.vmem [shape: f32[1,8], index: 2, kind: input, shape index: {}]   ;;  %s8591_s3 = inlined_call_operand.vmem [shape: f32[72,8], index: 3, kind: input, shape index: {}]   ;;  %s8592_s4 = inlined_call_operand.vmem [shape: f32[1,8], index: 4, kind: input, shape index: {}]   ;;  %s8593_s5 = inlined_call_operand.hbm [shape: f32[2,8,8,8], index: 5, kind: output, shape index: {}]  }
   0x1   :  { %12 = vsyncpa [#allocation7 + $0x1], 0  ;;  %s5986_s18 = smov 0   ;;  %s5988_s19 = smov 0  }
   0x2   :  { %s5990_s20 = smov 0   ;;  %s5992_s21 = smov 0  }
   0x3 LB: > { %s6007_s22 = sadd.s32 4294967295, %s5938_s21   ;;  %s5522_s23 = sadd.s32 4294967294, %s5938_s21   ;;  %s5938_s21 = sphi %s5992_s21, %s8692_s21   ;;  %s5934_s20 = sphi %s5990_s20, %s8691_s20   ;;  %s5930_s19 = sphi %s5988_s19, %s8690_s19   ;;  %s5926_s18 = sphi %s5986_s18, %s8689_s18  }
   0x4   : > { %s6011_s24 = sadd.s32 1, %s5938_s21   ;;  %s135_s25 = sadd.s32 1, %s5934_s20 }
   0x5   : > { %s132_s26 = ssub.s32 %s5938_s21, %s6011_s24  ;;  %p145_p0 = scmp.ne.s32.totalorder %s5934_s20, %s5930_s19 }
   0x6   : > { %p133_p1 = scmp.eq.s32.totalorder %s132_s26, 0  ;;  %p146_p2 = scmp.eq.s32.totalorder %s6007_s22, 1 }
   0x7   : > { %p151_p3 = scmp.ne.s32.totalorder %s5930_s19, %s5926_s18  ;;  %p152_p4 = scmp.eq.s32.totalorder %s5522_s23, 1 }
   0x8   : > { %s6022_s27 = scalar_select %p133_p1, %s5934_s20, %s135_s25  }
   0x9   : > { %p6024_p5 = por %p146_p2, %p145_p0  ;;  %p6028_p6 = por %p152_p4, %p151_p3 }
   0xa   : > { %p5525_p7 = scmp.ge.s32.totalorder %s5938_s21, 1  ;;  %p190_p8 = scmp.lt.s32.totalorder %s5938_s21, 3 }
   0xc   : > { %p191_p9 = pnand %p5525_p7, %p190_p8 }
   0xe   : > { %194 = sbr.rel (%p191_p9) target bundleno = 1711 (0x6af), region = 40 }
  0x13   : > { %vm255_vm0 = vcmask 31744   ;;  %p218_p10 = scmp.lt.s32.totalorder %s6007_s22, 1  ;;  %vm258_vm1 = vcmask 25600   ;;  %v8594_v0 = vmov 0.0   ;;  %s5941_s10 = smov 4   ;;  %vm568_vm2 = vcmask 64544  }
  0x14   : > { %256 = vst.msk [vmem:[#allocation2] sm:$0xff] %vm255_vm0, %v8594_v0  ;;  %257 = vst.msk [vmem:[#allocation2 + $0x8] sm:$0xff] %vm255_vm0, %v8594_v0  ;;  %s5942_s11 = smov 8   ;;  %s5943_s12 = smov 12   ;;  %vm761_vm3 = vcmask 97344   ;;  %vm954_vm4 = vcmask 130144  }
  0x15   : > { %260 = vst.msk [vmem:[#allocation2 + $0x18] sm:$0xff] %vm255_vm0, %v8594_v0  ;;  %261 = vst.msk [vmem:[#allocation2 + $0x20] sm:$0xff] %vm255_vm0, %v8594_v0  ;;  %s219_s30 = scalar_select %p218_p10, %s6007_s22, 1  ;;  %vm1147_vm5 = vcmask 162944   ;;  %vm1340_vm6 = vcmask 195744   ;;  %vm2094_vm7 = vcmask 1043456  }
  0x16   : > { %263 = vst.msk [vmem:[#allocation2 + $0x30] sm:$0xff] %vm255_vm0, %v8594_v0  ;;  %264 = vst.msk [vmem:[#allocation2 + $0x38] sm:$0xff] %vm255_vm0, %v8594_v0  ;;  %s5944_s13 = smov 16   ;;  %s5945_s14 = smov 20   ;;  %vm1534_vm8 = vcmask 228544   ;;  %vm1727_vm9 = vcmask 261344  }
  0x17   : > { %266 = vst.msk [vmem:[#allocation2 + $0x48] sm:$0xff] %vm255_vm0, %v8594_v0  ;;  %267 = vst.msk [vmem:[#allocation2 + $0x50] sm:$0xff] %vm255_vm0, %v8594_v0  ;;  %s5601_s6 = sshll.u32 %s219_s30, 8  ;;  %s5946_s15 = smov 24   ;;  %vm1920_vm10 = vcmask 294144   ;;  %vm1997_vm11 = vcmask 293888  }
  0x18   : > { %269 = vst.msk [vmem:[#allocation2 + $0x60] sm:$0xff] %vm255_vm0, %v8594_v0  ;;  %270 = vst.msk [vmem:[#allocation2 + $0x68] sm:$0xff] %vm255_vm0, %v8594_v0  ;;  %s6149_s9 = scalar_lea.vmem %s8588_s0, %s5601_s6  ;;  %s5947_s6 = smov 28   ;;  %vm2355_vm12 = vcmask 64512   ;;  %vm2358_vm13 = vcmask 58368   ;;  %vm2668_vm14 = vcmask 130112  }
  0x19   : > { %272 = vst.msk [vmem:[#allocation2 + $0x78] sm:$0xff] %vm255_vm0, %v8594_v0  ;;  %273 = vst.msk [vmem:[#allocation2 + $0x80] sm:$0xff] %vm255_vm0, %v8594_v0  ;;  %v223_v1 = vld [vmem:[%s6149_s9] sm:$0xff]  ;;  %v224_v2 = vld [vmem:[%s6149_s9 + $0x8] sm:$0xff]  ;;  %s5949_s26 = smov 40   ;;  %s5951_s17 = smov 56  }
  0x1a   : > { %275 = vst.msk [vmem:[#allocation2 + $0x90] sm:$0xff] %vm255_vm0, %v8594_v0  ;;  %276 = vst.msk [vmem:[#allocation2 + $0x98] sm:$0xff] %vm255_vm0, %v8594_v0  ;;  %v225_v3 = vld [vmem:[%s6149_s9 + $0x10] sm:$0xff]  ;;  %v226_v4 = vld [vmem:[%s6149_s9 + $0x18] sm:$0xff]  ;;  %vm2861_vm15 = vcmask 195712   ;;  %s5954_s8 = smov [#allocation6]  }
  0x1b   : > { %278 = vst.msk [vmem:[#allocation2 + $0xa8] sm:$0xff] %vm255_vm0, %v8594_v0  ;;  %279 = vst.msk [vmem:[#allocation2 + $0xb0] sm:$0xff] %vm255_vm0, %v8594_v0  ;;  %v227_v5 = vld [vmem:[%s6149_s9 + $0x20] sm:$0xff]  ;;  %v228_v6 = vld [vmem:[%s6149_s9 + $0x28] sm:$0xff] }
  0x1c   : > { %281 = vst.msk [vmem:[#allocation2 + $0xc0] sm:$0xff] %vm255_vm0, %v8594_v0  ;;  %282 = vst.msk [vmem:[#allocation2 + $0xc8] sm:$0xff] %vm255_vm0, %v8594_v0  ;;  %v408_v7 = vld [vmem:[#allocation2 + $0x1] sm:$0xff]  ;;  %v229_v9 = vld [vmem:[%s6149_s9 + $0x30] sm:$0xff] }
  0x1d   : > { %284 = vst.msk [vmem:[#allocation2 + $0xd8] sm:$0xff] %vm255_vm0, %v8594_v0  ;;  %285 = vst.msk [vmem:[#allocation2 + $0xe0] sm:$0xff] %vm255_vm0, %v8594_v0  ;;  %472 = vrot.lane.b32.xlu0 %v408_v7, %s5941_s10  ;;  %v230_v10 = vld [vmem:[%s6149_s9 + $0x38] sm:$0xff]  ;;  %v231_v11 = vld [vmem:[%s6149_s9 + $0x40] sm:$0xff] }
  0x1e   : > { %287 = vst.msk [vmem:[#allocation2 + $0xf0] sm:$0xff] %vm255_vm0, %v8594_v0  ;;  %288 = vst.msk [vmem:[#allocation2 + $0xf8] sm:$0xff] %vm255_vm0, %v8594_v0  ;;  %v232_v12 = vld [vmem:[%s6149_s9 + $0x48] sm:$0xff]  ;;  %v233_v13 = vld [vmem:[%s6149_s9 + $0x50] sm:$0xff] }
  0x1f   : > { %290 = vst.msk [vmem:[#allocation2 + $0x108] sm:$0xff] %vm255_vm0, %v8594_v0  ;;  %291 = vst.msk [vmem:[#allocation2 + $0x110] sm:$0xff] %vm255_vm0, %v8594_v0  ;;  %v234_v14 = vld [vmem:[%s6149_s9 + $0x58] sm:$0xff]  ;;  %v235_v15 = vld [vmem:[%s6149_s9 + $0x60] sm:$0xff] }
  0x20   : > { %293 = vst.msk [vmem:[#allocation2 + $0x120] sm:$0xff] %vm255_vm0, %v8594_v0  ;;  %294 = vst.msk [vmem:[#allocation2 + $0x128] sm:$0xff] %vm255_vm0, %v8594_v0  ;;  %v236_v16 = vld [vmem:[%s6149_s9 + $0x68] sm:$0xff]  ;;  %v237_v17 = vld [vmem:[%s6149_s9 + $0x70] sm:$0xff] }
  0x21   : > { %296 = vst.msk [vmem:[#allocation2 + $0x138] sm:$0xff] %vm255_vm0, %v8594_v0  ;;  %297 = vst.msk [vmem:[#allocation2 + $0x140] sm:$0xff] %vm255_vm0, %v8594_v0  ;;  %v238_v18 = vld [vmem:[%s6149_s9 + $0x78] sm:$0xff]  ;;  %v239_v19 = vld [vmem:[%s6149_s9 + $0x80] sm:$0xff] }
  0x22   : > { %299 = vst.msk [vmem:[#allocation2 + $0x150] sm:$0xff] %vm255_vm0, %v8594_v0  ;;  %300 = vst.msk [vmem:[#allocation2 + $0x158] sm:$0xff] %vm255_vm0, %v8594_v0  ;;  %v240_v20 = vld [vmem:[%s6149_s9 + $0x88] sm:$0xff]  ;;  %v241_v21 = vld [vmem:[%s6149_s9 + $0x90] sm:$0xff] }
  0x23   : > { %302 = vst.msk [vmem:[#allocation2 + $0x168] sm:$0xff] %vm255_vm0, %v8594_v0  ;;  %303 = vst.msk [vmem:[#allocation2 + $0x170] sm:$0xff] %vm255_vm0, %v8594_v0  ;;  %v242_v22 = vld [vmem:[%s6149_s9 + $0x98] sm:$0xff]  ;;  %v243_v23 = vld [vmem:[%s6149_s9 + $0xa0] sm:$0xff] }
  0x24   : > { %305 = vst.msk [vmem:[#allocation2 + $0x180] sm:$0xff] %vm255_vm0, %v8594_v0  ;;  %306 = vst.msk [vmem:[#allocation2 + $0x188] sm:$0xff] %vm255_vm0, %v8594_v0  ;;  %v244_v24 = vld [vmem:[%s6149_s9 + $0xa8] sm:$0xff]  ;;  %v245_v28 = vld [vmem:[%s6149_s9 + $0xb0] sm:$0xff] }
  0x25   : > { %308 = vst.msk [vmem:[#allocation2 + $0x198] sm:$0xff] %vm255_vm0, %v8594_v0  ;;  %309 = vst.msk [vmem:[#allocation2 + $0x1a0] sm:$0xff] %vm255_vm0, %v8594_v0  ;;  %v246_v29 = vld [vmem:[%s6149_s9 + $0xb8] sm:$0xff]  ;;  %v247_v33 = vld [vmem:[%s6149_s9 + $0xc0] sm:$0xff] }
  0x26   : > { %259 = vst.msk [vmem:[#allocation2 + $0x10] sm:$0x3] %vm258_vm1, %v8594_v0  ;;  %262 = vst.msk [vmem:[#allocation2 + $0x28] sm:$0x3] %vm258_vm1, %v8594_v0  ;;  %v248_v34 = vld [vmem:[%s6149_s9 + $0xc8] sm:$0xff]  ;;  %v249_v35 = vld [vmem:[%s6149_s9 + $0xd0] sm:$0xff] }
  0x27   : > { %265 = vst.msk [vmem:[#allocation2 + $0x40] sm:$0x3] %vm258_vm1, %v8594_v0  ;;  %268 = vst.msk [vmem:[#allocation2 + $0x58] sm:$0x3] %vm258_vm1, %v8594_v0  ;;  %v250_v36 = vld [vmem:[%s6149_s9 + $0xd8] sm:$0xff]  ;;  %v251_v37 = vld [vmem:[%s6149_s9 + $0xe0] sm:$0xff] }
  0x28   : > { %271 = vst.msk [vmem:[#allocation2 + $0x70] sm:$0x3] %vm258_vm1, %v8594_v0  ;;  %274 = vst.msk [vmem:[#allocation2 + $0x88] sm:$0x3] %vm258_vm1, %v8594_v0  ;;  %v252_v38 = vld [vmem:[%s6149_s9 + $0xe8] sm:$0xff]  ;;  %v344_v45 = vld [vmem:[#allocation2] sm:$0xff] }
  0x29   : > { %277 = vst.msk [vmem:[#allocation2 + $0xa0] sm:$0x3] %vm258_vm1, %v8594_v0  ;;  %280 = vst.msk [vmem:[#allocation2 + $0xb8] sm:$0x3] %vm258_vm1, %v8594_v0  ;;  %v345_v48 = vld [vmem:[#allocation2 + $0x8] sm:$0xff] }
  0x2a   : > { %283 = vst.msk [vmem:[#allocation2 + $0xd0] sm:$0x3] %vm258_vm1, %v8594_v0  ;;  %286 = vst.msk [vmem:[#allocation2 + $0xe8] sm:$0x3] %vm258_vm1, %v8594_v0 }
  0x2b   : > { %289 = vst.msk [vmem:[#allocation2 + $0x100] sm:$0x3] %vm258_vm1, %v8594_v0  ;;  %292 = vst.msk [vmem:[#allocation2 + $0x118] sm:$0x3] %vm258_vm1, %v8594_v0 }
  0x2c   : > { %295 = vst.msk [vmem:[#allocation2 + $0x130] sm:$0x3] %vm258_vm1, %v8594_v0  ;;  %298 = vst.msk [vmem:[#allocation2 + $0x148] sm:$0x3] %vm258_vm1, %v8594_v0 }
  0x2d   : > { %301 = vst.msk [vmem:[#allocation2 + $0x160] sm:$0x3] %vm258_vm1, %v8594_v0  ;;  %304 = vst.msk [vmem:[#allocation2 + $0x178] sm:$0x3] %vm258_vm1, %v8594_v0  ;;  %v409_v8 = vld [vmem:[#allocation2 + $0x9] sm:$0xff] }
  0x2e   : > { %307 = vst.msk [vmem:[#allocation2 + $0x190] sm:$0x3] %vm258_vm1, %v8594_v0  ;;  %310 = vst.msk [vmem:[#allocation2 + $0x1a8] sm:$0x3] %vm258_vm1, %v8594_v0  ;;  %474 = vrot.lane.b32.xlu0 %v409_v8, %s5941_s10  ;;  %vm3247_vm1 = vcmask 326912  }
  0x2f   : > { %312 = vst.msk [vmem:[#allocation2 + $0x19] sm:$0xff] %vm255_vm0, %v223_v1  ;;  %313 = vst.msk [vmem:[#allocation2 + $0x21] sm:$0xff] %vm255_vm0, %v224_v2 }
  0x30   : > { %314 = vst.msk [vmem:[#allocation2 + $0x31] sm:$0xff] %vm255_vm0, %v225_v3  ;;  %315 = vst.msk [vmem:[#allocation2 + $0x39] sm:$0xff] %vm255_vm0, %v226_v4 }
  0x31   : > { %316 = vst.msk [vmem:[#allocation2 + $0x49] sm:$0xff] %vm255_vm0, %v227_v5  ;;  %317 = vst.msk [vmem:[#allocation2 + $0x51] sm:$0xff] %vm255_vm0, %v228_v6 }
  0x32   : > { %318 = vst.msk [vmem:[#allocation2 + $0x61] sm:$0xff] %vm255_vm0, %v229_v9  ;;  %319 = vst.msk [vmem:[#allocation2 + $0x69] sm:$0xff] %vm255_vm0, %v230_v10 }
  0x33   : > { %320 = vst.msk [vmem:[#allocation2 + $0x79] sm:$0xff] %vm255_vm0, %v231_v11  ;;  %321 = vst.msk [vmem:[#allocation2 + $0x81] sm:$0xff] %vm255_vm0, %v232_v12 }
  0x34   : > { %322 = vst.msk [vmem:[#allocation2 + $0x91] sm:$0xff] %vm255_vm0, %v233_v13  ;;  %323 = vst.msk [vmem:[#allocation2 + $0x99] sm:$0xff] %vm255_vm0, %v234_v14 }
  0x35   : > { %324 = vst.msk [vmem:[#allocation2 + $0xa9] sm:$0xff] %vm255_vm0, %v235_v15  ;;  %325 = vst.msk [vmem:[#allocation2 + $0xb1] sm:$0xff] %vm255_vm0, %v236_v16 }
  0x36   : > { %326 = vst.msk [vmem:[#allocation2 + $0xc1] sm:$0xff] %vm255_vm0, %v237_v17  ;;  %327 = vst.msk [vmem:[#allocation2 + $0xc9] sm:$0xff] %vm255_vm0, %v238_v18  ;;  %v6194_v25 = vld [vmem:[#allocation2 + $0x19] sm:$0xff]  ;;  %v6203_v27 = vld [vmem:[#allocation2 + $0x21] sm:$0xff] }
  0x37   : > { %328 = vst.msk [vmem:[#allocation2 + $0xd9] sm:$0xff] %vm255_vm0, %v239_v19  ;;  %329 = vst.msk [vmem:[#allocation2 + $0xe1] sm:$0xff] %vm255_vm0, %v240_v20  ;;  %v6196_v26 = vld [vmem:[#allocation2 + $0x31] sm:$0xff]  ;;  %476 = vrot.lane.b32.xlu1 %v6194_v25, %s5941_s10  ;;  %v6215_v31 = vld [vmem:[#allocation2 + $0x39] sm:$0xff] }
  0x38   : > { %330 = vst.msk [vmem:[#allocation2 + $0xf1] sm:$0xff] %vm255_vm0, %v241_v21  ;;  %331 = vst.msk [vmem:[#allocation2 + $0xf9] sm:$0xff] %vm255_vm0, %v242_v22  ;;  %480 = vrot.lane.b32.xlu0 %v6196_v26, %s5941_s10  ;;  %v6211_v30 = vld [vmem:[#allocation2 + $0x49] sm:$0xff]  ;;  %v6232_v39 = vld [vmem:[#allocation2 + $0x51] sm:$0xff] }
  0x39   : > { %332 = vst.msk [vmem:[#allocation2 + $0x109] sm:$0xff] %vm255_vm0, %v243_v23  ;;  %333 = vst.msk [vmem:[#allocation2 + $0x111] sm:$0xff] %vm255_vm0, %v244_v24  ;;  %v6219_v32 = vld [vmem:[#allocation2 + $0x61] sm:$0xff]  ;;  %v6243_v41 = vld [vmem:[#allocation2 + $0x69] sm:$0xff] }
  0x3a   : > { %334 = vst.msk [vmem:[#allocation2 + $0x121] sm:$0xff] %vm255_vm0, %v245_v28  ;;  %335 = vst.msk [vmem:[#allocation2 + $0x129] sm:$0xff] %vm255_vm0, %v246_v29  ;;  %v6239_v40 = vld [vmem:[#allocation2 + $0x79] sm:$0xff]  ;;  %v6251_v43 = vld [vmem:[#allocation2 + $0x81] sm:$0xff] }
  0x3b   : > { %478 = vrot.lane.b32.xlu1 %v6203_v27, %s5941_s10  ;;  %336 = vst.msk [vmem:[#allocation2 + $0x139] sm:$0xff] %vm255_vm0, %v247_v33  ;;  %337 = vst.msk [vmem:[#allocation2 + $0x141] sm:$0xff] %vm255_vm0, %v248_v34  ;;  %v6247_v42 = vld [vmem:[#allocation2 + $0x91] sm:$0xff]  ;;  %v6259_v46 = vld [vmem:[#allocation2 + $0x99] sm:$0xff] }
  0x3c   : > { %484 = vrot.lane.b32.xlu0 %v6211_v30, %s5941_s10  ;;  %338 = vst.msk [vmem:[#allocation2 + $0x151] sm:$0xff] %vm255_vm0, %v249_v35  ;;  %339 = vst.msk [vmem:[#allocation2 + $0x159] sm:$0xff] %vm255_vm0, %v250_v36  ;;  %v6255_v44 = vld [vmem:[#allocation2 + $0xa9] sm:$0xff]  ;;  %v6262_v47 = vld [vmem:[#allocation2 + $0x18] sm:$0xff] }
  0x3d   : > { %340 = vst.msk [vmem:[#allocation2 + $0x169] sm:$0xff] %vm255_vm0, %v251_v37  ;;  %341 = vst.msk [vmem:[#allocation2 + $0x171] sm:$0xff] %vm255_vm0, %v252_v38  ;;  %v6269_v49 = vld [vmem:[#allocation2 + $0x20] sm:$0xff]  ;;  %v6271_v50 = vld [vmem:[#allocation2 + $0x30] sm:$0xff] }
  0x3e   : > { %376 = vst.msk [vmem:[#allocation3] sm:$0xff] %vm255_vm0, %v344_v45  ;;  %378 = vst.msk [vmem:[#allocation3 + $0x10] sm:$0xff] %vm255_vm0, %v6262_v47  ;;  %v6273_v51 = vld [vmem:[#allocation2 + $0xc1] sm:$0xff]  ;;  %v6279_v52 = vld [vmem:[#allocation2 + $0x38] sm:$0xff] }
  0x3f   : > { %482 = vrot.lane.b32.xlu1 %v6215_v31, %s5941_s10  ;;  %377 = vst.msk [vmem:[#allocation3 + $0x8] sm:$0xff] %vm255_vm0, %v345_v48  ;;  %379 = vst.msk [vmem:[#allocation3 + $0x18] sm:$0xff] %vm255_vm0, %v6269_v49  ;;  %v6283_v53 = vld [vmem:[#allocation2 + $0xb1] sm:$0xff]  ;;  %v6287_v54 = vld [vmem:[#allocation2 + $0x48] sm:$0xff] }
  0x40   : > { %488 = vrot.lane.b32.xlu0 %v6219_v32, %s5941_s10  ;;  %380 = vst.msk [vmem:[#allocation3 + $0x20] sm:$0xff] %vm255_vm0, %v6271_v50  ;;  %381 = vst.msk [vmem:[#allocation3 + $0x28] sm:$0xff] %vm255_vm0, %v6279_v52  ;;  %v6289_v55 = vld [vmem:[#allocation2 + $0x50] sm:$0xff]  ;;  %v6291_v56 = vld [vmem:[#allocation2 + $0xd9] sm:$0xff] }
  0x41   : > { %382 = vst.msk [vmem:[#allocation3 + $0x30] sm:$0xff] %vm255_vm0, %v6287_v54  ;;  %383 = vst.msk [vmem:[#allocation3 + $0x38] sm:$0xff] %vm255_vm0, %v6289_v55  ;;  %v6297_v57 = vld [vmem:[#allocation2 + $0x60] sm:$0xff]  ;;  %v6299_v58 = vld [vmem:[#allocation2 + $0x68] sm:$0xff] }
  0x42   : > { %v6301_v59 = vld [vmem:[#allocation2 + $0x78] sm:$0xff]  ;;  %384 = vst.msk [vmem:[#allocation3 + $0x40] sm:$0xff] %vm255_vm0, %v6297_v57  ;;  %385 = vst.msk [vmem:[#allocation3 + $0x48] sm:$0xff] %vm255_vm0, %v6299_v58  ;;  %v6311_v60 = vld [vmem:[#allocation2 + $0x80] sm:$0xff] }
  0x43   : > { %486 = vrot.lane.b32.xlu1 %v6232_v39, %s5941_s10  ;;  %386 = vst.msk [vmem:[#allocation3 + $0x50] sm:$0xff] %vm255_vm0, %v6301_v59  ;;  %v6313_v61 = vld [vmem:[#allocation2 + $0x90] sm:$0xff]  ;;  %v6315_v62 = vld [vmem:[#allocation2 + $0x98] sm:$0xff]  ;;  %387 = vst.msk [vmem:[#allocation3 + $0x58] sm:$0xff] %vm255_vm0, %v6311_v60 }
  0x44   : > { %492 = vrot.lane.b32.xlu0 %v6239_v40, %s5941_s10  ;;  %v6317_v63 = vld [vmem:[#allocation2 + $0xc9] sm:$0xff]  ;;  %388 = vst.msk [vmem:[#allocation3 + $0x60] sm:$0xff] %vm255_vm0, %v6313_v61  ;;  %389 = vst.msk [vmem:[#allocation3 + $0x68] sm:$0xff] %vm255_vm0, %v6315_v62  ;;  %v6329_v3 = vld [vmem:[#allocation2 + $0xc0] sm:$0xff] }
  0x45   : > { %v6325_v1 = vld [vmem:[#allocation2 + $0xa8] sm:$0xff]  ;;  %v6327_v2 = vld [vmem:[#allocation2 + $0xb0] sm:$0xff]  ;;  %392 = vst.msk [vmem:[#allocation3 + $0x80] sm:$0xff] %vm255_vm0, %v6329_v3  ;;  %v6341_v5 = vld [vmem:[#allocation2 + $0xd8] sm:$0xff] }
  0x46   : > { %390 = vst.msk [vmem:[#allocation3 + $0x70] sm:$0xff] %vm255_vm0, %v6325_v1  ;;  %391 = vst.msk [vmem:[#allocation3 + $0x78] sm:$0xff] %vm255_vm0, %v6327_v2  ;;  %v6339_v4 = vld [vmem:[#allocation2 + $0xc8] sm:$0xff]  ;;  %v6343_v6 = vld [vmem:[#allocation2 + $0xe0] sm:$0xff] }
  0x47   : > { %490 = vrot.lane.b32.xlu1 %v6243_v41, %s5941_s10  ;;  %393 = vst.msk [vmem:[#allocation3 + $0x88] sm:$0xff] %vm255_vm0, %v6339_v4  ;;  %394 = vst.msk [vmem:[#allocation3 + $0x90] sm:$0xff] %vm255_vm0, %v6341_v5  ;;  %v6351_v7 = vld [vmem:[#allocation2 + $0xf0] sm:$0xff]  ;;  %v6353_v8 = vld [vmem:[#allocation2 + $0xf8] sm:$0xff] }
  0x48   : > { %496 = vrot.lane.b32.xlu0 %v6247_v42, %s5941_s10  ;;  %395 = vst.msk [vmem:[#allocation3 + $0x98] sm:$0xff] %vm255_vm0, %v6343_v6  ;;  %v6355_v9 = vld [vmem:[#allocation2 + $0x108] sm:$0xff]  ;;  %396 = vst.msk [vmem:[#allocation3 + $0xa0] sm:$0xff] %vm255_vm0, %v6351_v7  ;;  %v6365_v10 = vld [vmem:[#allocation2 + $0x110] sm:$0xff] }
  0x49   : > { %397 = vst.msk [vmem:[#allocation3 + $0xa8] sm:$0xff] %vm255_vm0, %v6353_v8  ;;  %398 = vst.msk [vmem:[#allocation3 + $0xb0] sm:$0xff] %vm255_vm0, %v6355_v9  ;;  %v6367_v11 = vld [vmem:[#allocation2 + $0xf1] sm:$0xff]  ;;  %v6371_v12 = vld [vmem:[#allocation2 + $0x120] sm:$0xff] }
  0x4a   : > { %399 = vst.msk [vmem:[#allocation3 + $0xb8] sm:$0xff] %vm255_vm0, %v6365_v10  ;;  %400 = vst.msk [vmem:[#allocation3 + $0xc0] sm:$0xff] %vm255_vm0, %v6371_v12  ;;  %v6377_v13 = vld [vmem:[#allocation2 + $0x128] sm:$0xff]  ;;  %v6387_v16 = vld [vmem:[#allocation2 + $0x138] sm:$0xff] }
  0x4b   : > { %494 = vrot.lane.b32.xlu1 %v6251_v43, %s5941_s10  ;;  %v6379_v14 = vld [vmem:[#allocation2 + $0xe1] sm:$0xff]  ;;  %401 = vst.msk [vmem:[#allocation3 + $0xc8] sm:$0xff] %vm255_vm0, %v6377_v13  ;;  %v6385_v15 = vld [vmem:[#allocation2 + $0x109] sm:$0xff]  ;;  %402 = vst.msk [vmem:[#allocation3 + $0xd0] sm:$0xff] %vm255_vm0, %v6387_v16 }
  0x4c   : > { %500 = vrot.lane.b32.xlu0 %v6255_v44, %s5941_s10  ;;  %v6393_v17 = vld [vmem:[#allocation2 + $0x140] sm:$0xff]  ;;  %v6403_v20 = vld [vmem:[#allocation2 + $0x150] sm:$0xff]  ;;  %v6409_v21 = vld [vmem:[#allocation2 + $0x158] sm:$0xff] }
  0x4d   : > { %v6395_v18 = vld [vmem:[#allocation2 + $0xf9] sm:$0xff]  ;;  %403 = vst.msk [vmem:[#allocation3 + $0xd8] sm:$0xff] %vm255_vm0, %v6393_v17  ;;  %v6401_v19 = vld [vmem:[#allocation2 + $0x121] sm:$0xff]  ;;  %404 = vst.msk [vmem:[#allocation3 + $0xe0] sm:$0xff] %vm255_vm0, %v6403_v20 }
  0x4e   : > { %v6411_v22 = vld [vmem:[#allocation2 + $0x111] sm:$0xff]  ;;  %405 = vst.msk [vmem:[#allocation3 + $0xe8] sm:$0xff] %vm255_vm0, %v6409_v21  ;;  %v6417_v23 = vld [vmem:[#allocation2 + $0x139] sm:$0xff]  ;;  %v6419_v24 = vld [vmem:[#allocation2 + $0x168] sm:$0xff] }
  0x4f   : > { %498 = vrot.lane.b32.xlu1 %v6259_v46, %s5941_s10  ;;  %406 = vst.msk [vmem:[#allocation3 + $0xf0] sm:$0xff] %vm255_vm0, %v6419_v24  ;;  %v6425_v28 = vld [vmem:[#allocation2 + $0x170] sm:$0xff]  ;;  %v6438_v35 = vld [vmem:[#allocation2 + $0x141] sm:$0xff]  ;;  %v254_v37 = vld [vmem:[%s6149_s9 + $0xf8] sm:$0xff] }
  0x50   : > { %504 = vrot.lane.b32.xlu0 %v6273_v51, %s5941_s10  ;;  %v6427_v29 = vld [vmem:[#allocation2 + $0x129] sm:$0xff]  ;;  %407 = vst.msk [vmem:[#allocation3 + $0xf8] sm:$0xff] %vm255_vm0, %v6425_v28  ;;  %v6433_v33 = vld [vmem:[#allocation2 + $0x151] sm:$0xff]  ;;  %8628 = vst [vmem:[#allocation9_spill] sm:$0xff] %v6438_v35 }
  0x51   : > { %v253_v34 = vld [vmem:[%s6149_s9 + $0xf0] sm:$0xff]  ;;  %343 = vst.msk [vmem:[#allocation2 + $0x189] sm:$0xff] %vm255_vm0, %v254_v37  ;;  %v6449_v38 = vld [vmem:[#allocation2 + $0x159] sm:$0xff]  ;;  %v601_v45 = vld [vmem:[#allocation2 + $0x2] sm:$0xff]  ;;  %s5950_s9 = smov 48  }
  0x52   : > { %342 = vst.msk [vmem:[#allocation2 + $0x181] sm:$0xff] %vm255_vm0, %v253_v34  ;;  %v6443_v36 = vld [vmem:[#allocation2 + $0x169] sm:$0xff]  ;;  %8630 = vst [vmem:[#allocation11_spill] sm:$0xff] %v6449_v38  ;;  %v6455_v48 = vld [vmem:[#allocation2 + $0x171] sm:$0xff]  ;;  %vm3054_vm0 = vcmask 261312  }
  0x53   : > { %502 = vrot.lane.b32.xlu1 %v6283_v53, %s5941_s10  ;;  %8629 = vst [vmem:[#allocation10_spill] sm:$0xff] %v6443_v36  ;;  %8631 = vst [vmem:[#allocation12_spill] sm:$0xff] %v6455_v48  ;;  %v6458_v34 = vld [vmem:[#allocation2 + $0x1a] sm:$0xff]  ;;  %v602_v37 = vld [vmem:[#allocation2 + $0xa] sm:$0xff] }
  0x54   : > { %508 = vrot.lane.b32.xlu0 %v6291_v56, %s5941_s10  ;;  %8632 = vst [vmem:[#allocation13_spill] sm:$0xff] %v6458_v34  ;;  %v6464_v0 = vld [vmem:[#allocation2 + $0x32] sm:$0xff] }
  0x55   : > { %8633 = vst [vmem:[#allocation14_spill] sm:$0xff] %v6464_v0 }
  0x57   : > { %506 = vrot.lane.b32.xlu1 %v6317_v63, %s5941_s10 }
  0x58   : > { %512 = vrot.lane.b32.xlu0 %v6367_v11, %s5941_s10 }
  0x5b   : > { %510 = vrot.lane.b32.xlu1 %v6379_v14, %s5941_s10 }
  0x5c   : > { %516 = vrot.lane.b32.xlu0 %v6385_v15, %s5941_s10 }
  0x5f   : > { %514 = vrot.lane.b32.xlu1 %v6395_v18, %s5941_s10 }
  0x60   : > { %520 = vrot.lane.b32.xlu0 %v6401_v19, %s5941_s10 }
  0x63   : > { %518 = vrot.lane.b32.xlu1 %v6411_v22, %s5941_s10 }
  0x64   : > { %524 = vrot.lane.b32.xlu0 %v6417_v23, %s5941_s10 }
  0x67   : > { %522 = vrot.lane.b32.xlu1 %v6427_v29, %s5941_s10 }
  0x68   : > { %528 = vrot.lane.b32.xlu0 %v6433_v33, %s5941_s10 }
  0x6b   : > { %526 = vrot.lane.b32.xlu1 %v6438_v35, %s5941_s10 }
  0x6c   : > { %532 = vrot.lane.b32.xlu0 %v6443_v36, %s5941_s10  ;;  %v6467_v36 = vld [vmem:[#allocation2 + $0x22] sm:$0xff] }
  0x6d   : > { %8634 = vst [vmem:[#allocation15_spill] sm:$0xff] %v6467_v36 }
  0x6f   : > { %530 = vrot.lane.b32.xlu1 %v6449_v38, %s5941_s10  ;;  %v6471_v38 = vld [vmem:[#allocation2 + $0x4a] sm:$0xff] }
  0x70   : > { %665 = vrot.lane.b32.xlu0 %v601_v45, %s5942_s11  ;;  %8635 = vst [vmem:[#allocation16_spill] sm:$0xff] %v6471_v38  ;;  %v6475_v45 = vld [vmem:[#allocation2 + $0x3a] sm:$0xff] }
  0x71   : > { %8636 = vst [vmem:[#allocation17_spill] sm:$0xff] %v6475_v45 }
  0x73   : > { %534 = vrot.lane.b32.xlu1 %v6455_v48, %s5941_s10  ;;  %v6565_v48 = vld [vmem:[#allocation2 + $0x142] sm:$0xff]  ;;  %s5952_s10 = smov 64  }
  0x74   : > { %669 = vrot.lane.b32.xlu0 %v6458_v34, %s5942_s11  ;;  %v6479_v34 = vld [vmem:[#allocation2 + $0x62] sm:$0xff]  ;;  %8657 = vst [vmem:[#allocation38_spill] sm:$0xff] %v6565_v48 }
  0x75   : > { %8637 = vst [vmem:[#allocation18_spill] sm:$0xff] %v6479_v34 }
  0x77   : > { %667 = vrot.lane.b32.xlu1 %v602_v37, %s5942_s11  ;;  %v6483_v37 = vld [vmem:[#allocation2 + $0x52] sm:$0xff] }
  0x78   : > { %673 = vrot.lane.b32.xlu0 %v6464_v0, %s5942_s11  ;;  %8638 = vst [vmem:[#allocation19_spill] sm:$0xff] %v6483_v37  ;;  %v6487_v0 = vld [vmem:[#allocation2 + $0x7a] sm:$0xff] }
  0x79   : > { %8639 = vst [vmem:[#allocation20_spill] sm:$0xff] %v6487_v0 }
  0x7b   : > { %671 = vrot.lane.b32.xlu1 %v6467_v36, %s5942_s11  ;;  %v6491_v36 = vld [vmem:[#allocation2 + $0x6a] sm:$0xff] }
  0x7c   : > { %677 = vrot.lane.b32.xlu0 %v6471_v38, %s5942_s11  ;;  %8640 = vst [vmem:[#allocation21_spill] sm:$0xff] %v6491_v36  ;;  %v6495_v38 = vld [vmem:[#allocation2 + $0x92] sm:$0xff] }
  0x7d   : > { %8641 = vst [vmem:[#allocation22_spill] sm:$0xff] %v6495_v38 }
  0x7f   : > { %675 = vrot.lane.b32.xlu1 %v6475_v45, %s5942_s11  ;;  %v6499_v45 = vld [vmem:[#allocation2 + $0x82] sm:$0xff] }
  0x80   : > { %681 = vrot.lane.b32.xlu0 %v6479_v34, %s5942_s11  ;;  %8642 = vst [vmem:[#allocation23_spill] sm:$0xff] %v6499_v45  ;;  %v6503_v34 = vld [vmem:[#allocation2 + $0xaa] sm:$0xff] }
  0x81   : > { %8643 = vst [vmem:[#allocation24_spill] sm:$0xff] %v6503_v34 }
  0x83   : > { %679 = vrot.lane.b32.xlu1 %v6483_v37, %s5942_s11  ;;  %v6507_v37 = vld [vmem:[#allocation2 + $0x9a] sm:$0xff] }
  0x84   : > { %685 = vrot.lane.b32.xlu0 %v6487_v0, %s5942_s11  ;;  %8644 = vst [vmem:[#allocation25_spill] sm:$0xff] %v6507_v37  ;;  %v6511_v0 = vld [vmem:[#allocation2 + $0xc2] sm:$0xff] }
  0x85   : > { %8645 = vst [vmem:[#allocation26_spill] sm:$0xff] %v6511_v0 }
  0x87   : > { %683 = vrot.lane.b32.xlu1 %v6491_v36, %s5942_s11  ;;  %v6515_v36 = vld [vmem:[#allocation2 + $0xb2] sm:$0xff] }
  0x88   : > { %689 = vrot.lane.b32.xlu0 %v6495_v38, %s5942_s11  ;;  %8646 = vst [vmem:[#allocation27_spill] sm:$0xff] %v6515_v36  ;;  %v6519_v38 = vld [vmem:[#allocation2 + $0xda] sm:$0xff] }
  0x89   : > { %8647 = vst [vmem:[#allocation28_spill] sm:$0xff] %v6519_v38 }
  0x8b   : > { %687 = vrot.lane.b32.xlu1 %v6499_v45, %s5942_s11  ;;  %v6523_v45 = vld [vmem:[#allocation2 + $0xca] sm:$0xff] }
  0x8c   : > { %693 = vrot.lane.b32.xlu0 %v6503_v34, %s5942_s11  ;;  %8648 = vst [vmem:[#allocation29_spill] sm:$0xff] %v6523_v45  ;;  %v6527_v34 = vld [vmem:[#allocation2 + $0xf2] sm:$0xff] }
  0x8d   : > { %8649 = vst [vmem:[#allocation30_spill] sm:$0xff] %v6527_v34 }
  0x8f   : > { %691 = vrot.lane.b32.xlu1 %v6507_v37, %s5942_s11  ;;  %v6531_v37 = vld [vmem:[#allocation2 + $0xe2] sm:$0xff] }
  0x90   : > { %697 = vrot.lane.b32.xlu0 %v6511_v0, %s5942_s11  ;;  %8650 = vst [vmem:[#allocation31_spill] sm:$0xff] %v6531_v37  ;;  %v6535_v0 = vld [vmem:[#allocation2 + $0x10a] sm:$0xff] }
  0x91   : > { %8651 = vst [vmem:[#allocation32_spill] sm:$0xff] %v6535_v0 }
  0x93   : > { %695 = vrot.lane.b32.xlu1 %v6515_v36, %s5942_s11  ;;  %v6539_v36 = vld [vmem:[#allocation2 + $0xfa] sm:$0xff] }
  0x94   : > { %701 = vrot.lane.b32.xlu0 %v6519_v38, %s5942_s11  ;;  %8652 = vst [vmem:[#allocation33_spill] sm:$0xff] %v6539_v36  ;;  %v6543_v38 = vld [vmem:[#allocation2 + $0x122] sm:$0xff] }
  0x95   : > { %8653 = vst [vmem:[#allocation34_spill] sm:$0xff] %v6543_v38 }
  0x97   : > { %699 = vrot.lane.b32.xlu1 %v6523_v45, %s5942_s11  ;;  %v6547_v45 = vld [vmem:[#allocation2 + $0x112] sm:$0xff] }
  0x98   : > { %705 = vrot.lane.b32.xlu0 %v6527_v34, %s5942_s11  ;;  %8654 = vst [vmem:[#allocation35_spill] sm:$0xff] %v6547_v45  ;;  %v6551_v34 = vld [vmem:[#allocation2 + $0x13a] sm:$0xff] }
  0x99   : > { %8655 = vst [vmem:[#allocation36_spill] sm:$0xff] %v6551_v34 }
  0x9b   : > { %703 = vrot.lane.b32.xlu1 %v6531_v37, %s5942_s11  ;;  %v473_v37 = vpop.permute.xlu0 %472 }
  0x9c   : > { %709 = vrot.lane.b32.xlu0 %v6535_v0, %s5942_s11  ;;  %569 = vst.msk [vmem:[#allocation3] sm:$0xff] %vm568_vm2, %v473_v37  ;;  %v6556_v0 = vld [vmem:[#allocation2 + $0x12a] sm:$0xff] }
  0x9d   : > { %8656 = vst [vmem:[#allocation37_spill] sm:$0xff] %v6556_v0  ;;  %v6570_v37 = vld [vmem:[#allocation2 + $0x16a] sm:$0xff] }
  0x9f   : > { %707 = vrot.lane.b32.xlu1 %v6539_v36, %s5942_s11  ;;  %v6560_v36 = vld [vmem:[#allocation2 + $0x152] sm:$0xff] }
  0xa0   : > { %713 = vrot.lane.b32.xlu0 %v6543_v38, %s5942_s11  ;;  %v475_v38 = vpop.permute.xlu0 %474 }
  0xa1   : > { %570 = vst.msk [vmem:[#allocation3 + $0x8] sm:$0xff] %vm568_vm2, %v475_v38  ;;  %v6583_v38 = vld [vmem:[#allocation2 + $0x172] sm:$0xff] }
  0xa3   : > { %711 = vrot.lane.b32.xlu1 %v6547_v45, %s5942_s11 }
  0xa4   : > { %717 = vrot.lane.b32.xlu0 %v6551_v34, %s5942_s11 }
  0xa7   : > { %715 = vrot.lane.b32.xlu1 %v6556_v0, %s5942_s11  ;;  %v6575_v0 = vld [vmem:[#allocation2 + $0x15a] sm:$0xff] }
  0xa8   : > { %721 = vrot.lane.b32.xlu0 %v6560_v36, %s5942_s11 }
  0xa9   : > { %v477_v35 = vpop.permute.xlu1 %476 }
  0xaa   : > { %571 = vst.msk [vmem:[#allocation3 + $0x10] sm:$0xff] %vm568_vm2, %v477_v35  ;;  %v481_v34 = vpop.permute.xlu0 %480 }
  0xab   : > { %719 = vrot.lane.b32.xlu1 %v6565_v48, %s5942_s11  ;;  %573 = vst.msk [vmem:[#allocation3 + $0x20] sm:$0xff] %vm568_vm2, %v481_v34 }
  0xac   : > { %725 = vrot.lane.b32.xlu0 %v6570_v37, %s5942_s11 }
  0xad   : > { %v479_v45 = vpop.permute.xlu1 %478 }
  0xae   : > { %572 = vst.msk [vmem:[#allocation3 + $0x18] sm:$0xff] %vm568_vm2, %v479_v45  ;;  %v485_v35 = vpop.permute.xlu0 %484 }
  0xaf   : > { %723 = vrot.lane.b32.xlu1 %v6575_v0, %s5942_s11  ;;  %575 = vst.msk [vmem:[#allocation3 + $0x30] sm:$0xff] %vm568_vm2, %v485_v35 }
  0xb0   : > { %858 = vrot.lane.b32.xlu0 %v6262_v47, %s5943_s12 }
  0xb1   : > { %v483_v48 = vpop.permute.xlu1 %482 }
  0xb2   : > { %574 = vst.msk [vmem:[#allocation3 + $0x28] sm:$0xff] %vm568_vm2, %v483_v48  ;;  %v489_v34 = vpop.permute.xlu0 %488 }
  0xb3   : > { %727 = vrot.lane.b32.xlu1 %v6583_v38, %s5942_s11  ;;  %577 = vst.msk [vmem:[#allocation3 + $0x40] sm:$0xff] %vm568_vm2, %v489_v34 }
  0xb4   : > { %862 = vrot.lane.b32.xlu0 %v6271_v50, %s5943_s12 }
  0xb5   : > { %v487_v45 = vpop.permute.xlu1 %486 }
  0xb6   : > { %576 = vst.msk [vmem:[#allocation3 + $0x38] sm:$0xff] %vm568_vm2, %v487_v45  ;;  %v493_v35 = vpop.permute.xlu0 %492 }
  0xb7   : > { %860 = vrot.lane.b32.xlu1 %v6269_v49, %s5943_s12  ;;  %579 = vst.msk [vmem:[#allocation3 + $0x50] sm:$0xff] %vm568_vm2, %v493_v35 }
  0xb8   : > { %866 = vrot.lane.b32.xlu0 %v6287_v54, %s5943_s12 }
  0xb9   : > { %v491_v47 = vpop.permute.xlu1 %490 }
  0xba   : > { %578 = vst.msk [vmem:[#allocation3 + $0x48] sm:$0xff] %vm568_vm2, %v491_v47  ;;  %v497_v48 = vpop.permute.xlu0 %496 }
  0xbb   : > { %864 = vrot.lane.b32.xlu1 %v6279_v52, %s5943_s12  ;;  %581 = vst.msk [vmem:[#allocation3 + $0x60] sm:$0xff] %vm568_vm2, %v497_v48 }
  0xbc   : > { %870 = vrot.lane.b32.xlu0 %v6297_v57, %s5943_s12 }
  0xbd   : > { %v495_v34 = vpop.permute.xlu1 %494 }
  0xbe   : > { %580 = vst.msk [vmem:[#allocation3 + $0x58] sm:$0xff] %vm568_vm2, %v495_v34  ;;  %v501_v49 = vpop.permute.xlu0 %500 }
  0xbf   : > { %868 = vrot.lane.b32.xlu1 %v6289_v55, %s5943_s12  ;;  %583 = vst.msk [vmem:[#allocation3 + $0x70] sm:$0xff] %vm568_vm2, %v501_v49 }
  0xc0   : > { %874 = vrot.lane.b32.xlu0 %v6301_v59, %s5943_s12 }
  0xc1   : > { %v499_v45 = vpop.permute.xlu1 %498 }
  0xc2   : > { %582 = vst.msk [vmem:[#allocation3 + $0x68] sm:$0xff] %vm568_vm2, %v499_v45  ;;  %v505_v35 = vpop.permute.xlu0 %504 }
  0xc3   : > { %872 = vrot.lane.b32.xlu1 %v6299_v58, %s5943_s12  ;;  %585 = vst.msk [vmem:[#allocation3 + $0x80] sm:$0xff] %vm568_vm2, %v505_v35 }
  0xc4   : > { %878 = vrot.lane.b32.xlu0 %v6313_v61, %s5943_s12 }
  0xc5   : > { %v503_v47 = vpop.permute.xlu1 %502 }
  0xc6   : > { %584 = vst.msk [vmem:[#allocation3 + $0x78] sm:$0xff] %vm568_vm2, %v503_v47  ;;  %v509_v48 = vpop.permute.xlu0 %508 }
  0xc7   : > { %876 = vrot.lane.b32.xlu1 %v6311_v60, %s5943_s12  ;;  %587 = vst.msk [vmem:[#allocation3 + $0x90] sm:$0xff] %vm568_vm2, %v509_v48 }
  0xc8   : > { %882 = vrot.lane.b32.xlu0 %v6325_v1, %s5943_s12 }
  0xc9   : > { %v507_v34 = vpop.permute.xlu1 %506 }
  0xca   : > { %586 = vst.msk [vmem:[#allocation3 + $0x88] sm:$0xff] %vm568_vm2, %v507_v34  ;;  %v513_v49 = vpop.permute.xlu0 %512 }
  0xcb   : > { %880 = vrot.lane.b32.xlu1 %v6315_v62, %s5943_s12  ;;  %589 = vst.msk [vmem:[#allocation3 + $0xa0] sm:$0xff] %vm568_vm2, %v513_v49 }
  0xcc   : > { %886 = vrot.lane.b32.xlu0 %v6329_v3, %s5943_s12 }
  0xcd   : > { %v511_v45 = vpop.permute.xlu1 %510 }
  0xce   : > { %588 = vst.msk [vmem:[#allocation3 + $0x98] sm:$0xff] %vm568_vm2, %v511_v45  ;;  %v517_v35 = vpop.permute.xlu0 %516 }
  0xcf   : > { %884 = vrot.lane.b32.xlu1 %v6327_v2, %s5943_s12  ;;  %591 = vst.msk [vmem:[#allocation3 + $0xb0] sm:$0xff] %vm568_vm2, %v517_v35 }
  0xd0   : > { %890 = vrot.lane.b32.xlu0 %v6341_v5, %s5943_s12 }
  0xd1   : > { %v515_v47 = vpop.permute.xlu1 %514 }
  0xd2   : > { %590 = vst.msk [vmem:[#allocation3 + $0xa8] sm:$0xff] %vm568_vm2, %v515_v47  ;;  %v521_v48 = vpop.permute.xlu0 %520 }
  0xd3   : > { %888 = vrot.lane.b32.xlu1 %v6339_v4, %s5943_s12  ;;  %593 = vst.msk [vmem:[#allocation3 + $0xc0] sm:$0xff] %vm568_vm2, %v521_v48 }
  0xd4   : > { %894 = vrot.lane.b32.xlu0 %v6351_v7, %s5943_s12 }
  0xd5   : > { %v519_v34 = vpop.permute.xlu1 %518 }
  0xd6   : > { %592 = vst.msk [vmem:[#allocation3 + $0xb8] sm:$0xff] %vm568_vm2, %v519_v34  ;;  %v525_v49 = vpop.permute.xlu0 %524 }
  0xd7   : > { %892 = vrot.lane.b32.xlu1 %v6343_v6, %s5943_s12  ;;  %595 = vst.msk [vmem:[#allocation3 + $0xd0] sm:$0xff] %vm568_vm2, %v525_v49 }
  0xd8   : > { %898 = vrot.lane.b32.xlu0 %v6355_v9, %s5943_s12 }
  0xd9   : > { %v523_v45 = vpop.permute.xlu1 %522 }
  0xda   : > { %594 = vst.msk [vmem:[#allocation3 + $0xc8] sm:$0xff] %vm568_vm2, %v523_v45  ;;  %v529_v35 = vpop.permute.xlu0 %528 }
  0xdb   : > { %896 = vrot.lane.b32.xlu1 %v6353_v8, %s5943_s12  ;;  %597 = vst.msk [vmem:[#allocation3 + $0xe0] sm:$0xff] %vm568_vm2, %v529_v35 }
  0xdc   : > { %902 = vrot.lane.b32.xlu0 %v6371_v12, %s5943_s12 }
  0xdd   : > { %v527_v47 = vpop.permute.xlu1 %526 }
  0xde   : > { %596 = vst.msk [vmem:[#allocation3 + $0xd8] sm:$0xff] %vm568_vm2, %v527_v47  ;;  %v533_v48 = vpop.permute.xlu0 %532 }
  0xdf   : > { %900 = vrot.lane.b32.xlu1 %v6365_v10, %s5943_s12  ;;  %599 = vst.msk [vmem:[#allocation3 + $0xf0] sm:$0xff] %vm568_vm2, %v533_v48  ;;  %v6672_v48 = vld [vmem:[#allocation2 + $0x180] sm:$0xff] }
  0xe0   : > { %906 = vrot.lane.b32.xlu0 %v6387_v16, %s5943_s12 }
  0xe1   : > { %v531_v34 = vpop.permute.xlu1 %530 }
  0xe2   : > { %598 = vst.msk [vmem:[#allocation3 + $0xe8] sm:$0xff] %vm568_vm2, %v531_v34  ;;  %v666_v49 = vpop.permute.xlu0 %665 }
  0xe3   : > { %904 = vrot.lane.b32.xlu1 %v6377_v13, %s5943_s12  ;;  %762 = vst.msk [vmem:[#allocation3] sm:$0xff] %vm761_vm3, %v666_v49 }
  0xe4   : > { %910 = vrot.lane.b32.xlu0 %v6403_v20, %s5943_s12 }
  0xe5   : > { %v535_v45 = vpop.permute.xlu1 %534 }
  0xe6   : > { %600 = vst.msk [vmem:[#allocation3 + $0xf8] sm:$0xff] %vm568_vm2, %v535_v45  ;;  %v670_v35 = vpop.permute.xlu0 %669  ;;  %vm3440_vm2 = vcmask 392512  }
  0xe7   : > { %908 = vrot.lane.b32.xlu1 %v6393_v17, %s5943_s12  ;;  %764 = vst.msk [vmem:[#allocation3 + $0x10] sm:$0xff] %vm761_vm3, %v670_v35  ;;  %v6683_v35 = vld [vmem:[#allocation2 + $0x188] sm:$0xff] }
  0xe8   : > { %914 = vrot.lane.b32.xlu0 %v6419_v24, %s5943_s12 }
  0xe9   : > { %v668_v47 = vpop.permute.xlu1 %667 }
  0xea   : > { %763 = vst.msk [vmem:[#allocation3 + $0x8] sm:$0xff] %vm761_vm3, %v668_v47  ;;  %v674_v34 = vpop.permute.xlu0 %673 }
  0xeb   : > { %912 = vrot.lane.b32.xlu1 %v6409_v21, %s5943_s12  ;;  %766 = vst.msk [vmem:[#allocation3 + $0x20] sm:$0xff] %vm761_vm3, %v674_v34 }
  0xec   : > { %918 = vrot.lane.b32.xlu0 %v6672_v48, %s5943_s12 }
  0xed   : > { %v672_v49 = vpop.permute.xlu1 %671 }
  0xee   : > { %765 = vst.msk [vmem:[#allocation3 + $0x18] sm:$0xff] %vm761_vm3, %v672_v49  ;;  %v678_v45 = vpop.permute.xlu0 %677 }
  0xef   : > { %916 = vrot.lane.b32.xlu1 %v6425_v28, %s5943_s12  ;;  %768 = vst.msk [vmem:[#allocation3 + $0x30] sm:$0xff] %vm761_vm3, %v678_v45 }
  0xf0   : > { %1051 = vrot.lane.b32.xlu0 %v6194_v25, %s5944_s13 }
  0xf1   : > { %v676_v47 = vpop.permute.xlu1 %675 }
  0xf2   : > { %767 = vst.msk [vmem:[#allocation3 + $0x28] sm:$0xff] %vm761_vm3, %v676_v47  ;;  %v682_v34 = vpop.permute.xlu0 %681 }
  0xf3   : > { %920 = vrot.lane.b32.xlu1 %v6683_v35, %s5943_s12  ;;  %770 = vst.msk [vmem:[#allocation3 + $0x40] sm:$0xff] %vm761_vm3, %v682_v34  ;;  %s5948_s12 = smov 32  }
  0xf4   : > { %1055 = vrot.lane.b32.xlu0 %v6196_v26, %s5944_s13 }
  0xf5   : > { %v680_v49 = vpop.permute.xlu1 %679 }
  0xf6   : > { %769 = vst.msk [vmem:[#allocation3 + $0x38] sm:$0xff] %vm761_vm3, %v680_v49  ;;  %v686_v45 = vpop.permute.xlu0 %685  ;;  %v8659_v49 = vld [vmem:[#allocation10_spill] sm:$0xff] }
  0xf7   : > { %1053 = vrot.lane.b32.xlu1 %v6203_v27, %s5944_s13  ;;  %772 = vst.msk [vmem:[#allocation3 + $0x50] sm:$0xff] %vm761_vm3, %v686_v45  ;;  %v8660_v45 = vld [vmem:[#allocation11_spill] sm:$0xff] }
  0xf8   : > { %1059 = vrot.lane.b32.xlu0 %v6211_v30, %s5944_s13 }
  0xf9   : > { %v684_v25 = vpop.permute.xlu1 %683 }
  0xfa   : > { %771 = vst.msk [vmem:[#allocation3 + $0x48] sm:$0xff] %vm761_vm3, %v684_v25  ;;  %v690_v47 = vpop.permute.xlu0 %689 }
  0xfb   : > { %1057 = vrot.lane.b32.xlu1 %v6215_v31, %s5944_s13  ;;  %774 = vst.msk [vmem:[#allocation3 + $0x60] sm:$0xff] %vm761_vm3, %v690_v47  ;;  %v8661_v47 = vld [vmem:[#allocation12_spill] sm:$0xff] }
  0xfc   : > { %1063 = vrot.lane.b32.xlu0 %v6219_v32, %s5944_s13 }
  0xfd   : > { %v688_v26 = vpop.permute.xlu1 %687 }
  0xfe   : > { %773 = vst.msk [vmem:[#allocation3 + $0x58] sm:$0xff] %vm761_vm3, %v688_v26  ;;  %v694_v27 = vpop.permute.xlu0 %693 }
  0xff   : > { %1061 = vrot.lane.b32.xlu1 %v6232_v39, %s5944_s13  ;;  %776 = vst.msk [vmem:[#allocation3 + $0x70] sm:$0xff] %vm761_vm3, %v694_v27  ;;  %v6783_v27 = vld [vmem:[#allocation2 + $0x189] sm:$0xff] }
 0x100   : > { %1067 = vrot.lane.b32.xlu0 %v6239_v40, %s5944_s13 }
 0x101   : > { %v692_v30 = vpop.permute.xlu1 %691 }
 0x102   : > { %775 = vst.msk [vmem:[#allocation3 + $0x68] sm:$0xff] %vm761_vm3, %v692_v30  ;;  %v698_v31 = vpop.permute.xlu0 %697 }
 0x103   : > { %1065 = vrot.lane.b32.xlu1 %v6243_v41, %s5944_s13  ;;  %778 = vst.msk [vmem:[#allocation3 + $0x80] sm:$0xff] %vm761_vm3, %v698_v31  ;;  %v8662_v31 = vld [vmem:[#allocation13_spill] sm:$0xff] }
 0x104   : > { %1071 = vrot.lane.b32.xlu0 %v6247_v42, %s5944_s13 }
 0x105   : > { %v696_v32 = vpop.permute.xlu1 %695 }
 0x106   : > { %777 = vst.msk [vmem:[#allocation3 + $0x78] sm:$0xff] %vm761_vm3, %v696_v32  ;;  %v702_v39 = vpop.permute.xlu0 %701 }
 0x107   : > { %1069 = vrot.lane.b32.xlu1 %v6251_v43, %s5944_s13  ;;  %780 = vst.msk [vmem:[#allocation3 + $0x90] sm:$0xff] %vm761_vm3, %v702_v39 }
 0x108   : > { %1075 = vrot.lane.b32.xlu0 %v6255_v44, %s5944_s13 }
 0x109   : > { %v700_v40 = vpop.permute.xlu1 %699 }
 0x10a   : > { %779 = vst.msk [vmem:[#allocation3 + $0x88] sm:$0xff] %vm761_vm3, %v700_v40  ;;  %v706_v41 = vpop.permute.xlu0 %705  ;;  %v8663_v40 = vld [vmem:[#allocation14_spill] sm:$0xff] }
 0x10b   : > { %1073 = vrot.lane.b32.xlu1 %v6259_v46, %s5944_s13  ;;  %782 = vst.msk [vmem:[#allocation3 + $0xa0] sm:$0xff] %vm761_vm3, %v706_v41  ;;  %v8664_v41 = vld [vmem:[#allocation15_spill] sm:$0xff] }
 0x10c   : > { %1079 = vrot.lane.b32.xlu0 %v6273_v51, %s5944_s13 }
 0x10d   : > { %v704_v42 = vpop.permute.xlu1 %703 }
 0x10e   : > { %781 = vst.msk [vmem:[#allocation3 + $0x98] sm:$0xff] %vm761_vm3, %v704_v42  ;;  %v710_v43 = vpop.permute.xlu0 %709 }
 0x10f   : > { %1077 = vrot.lane.b32.xlu1 %v6283_v53, %s5944_s13  ;;  %784 = vst.msk [vmem:[#allocation3 + $0xb0] sm:$0xff] %vm761_vm3, %v710_v43 }
 0x110   : > { %1083 = vrot.lane.b32.xlu0 %v6291_v56, %s5944_s13 }
 0x111   : > { %v708_v44 = vpop.permute.xlu1 %707 }
 0x112   : > { %783 = vst.msk [vmem:[#allocation3 + $0xa8] sm:$0xff] %vm761_vm3, %v708_v44  ;;  %v714_v46 = vpop.permute.xlu0 %713  ;;  %v8665_v44 = vld [vmem:[#allocation16_spill] sm:$0xff] }
 0x113   : > { %1081 = vrot.lane.b32.xlu1 %v6317_v63, %s5944_s13  ;;  %786 = vst.msk [vmem:[#allocation3 + $0xc0] sm:$0xff] %vm761_vm3, %v714_v46  ;;  %v8666_v46 = vld [vmem:[#allocation17_spill] sm:$0xff] }
 0x114   : > { %1087 = vrot.lane.b32.xlu0 %v6367_v11, %s5944_s13 }
 0x115   : > { %v712_v51 = vpop.permute.xlu1 %711 }
 0x116   : > { %785 = vst.msk [vmem:[#allocation3 + $0xb8] sm:$0xff] %vm761_vm3, %v712_v51  ;;  %v718_v53 = vpop.permute.xlu0 %717 }
 0x117   : > { %1085 = vrot.lane.b32.xlu1 %v6379_v14, %s5944_s13  ;;  %788 = vst.msk [vmem:[#allocation3 + $0xd0] sm:$0xff] %vm761_vm3, %v718_v53 }
 0x118   : > { %1091 = vrot.lane.b32.xlu0 %v6385_v15, %s5944_s13 }
 0x119   : > { %v716_v56 = vpop.permute.xlu1 %715 }
 0x11a   : > { %787 = vst.msk [vmem:[#allocation3 + $0xc8] sm:$0xff] %vm761_vm3, %v716_v56  ;;  %v722_v63 = vpop.permute.xlu0 %721  ;;  %v8667_v56 = vld [vmem:[#allocation18_spill] sm:$0xff] }
 0x11b   : > { %1089 = vrot.lane.b32.xlu1 %v6395_v18, %s5944_s13  ;;  %790 = vst.msk [vmem:[#allocation3 + $0xe0] sm:$0xff] %vm761_vm3, %v722_v63  ;;  %v8668_v63 = vld [vmem:[#allocation19_spill] sm:$0xff] }
 0x11c   : > { %1095 = vrot.lane.b32.xlu0 %v6401_v19, %s5944_s13 }
 0x11d   : > { %v720_v11 = vpop.permute.xlu1 %719 }
 0x11e   : > { %789 = vst.msk [vmem:[#allocation3 + $0xd8] sm:$0xff] %vm761_vm3, %v720_v11  ;;  %v726_v14 = vpop.permute.xlu0 %725 }
 0x11f   : > { %1093 = vrot.lane.b32.xlu1 %v6411_v22, %s5944_s13  ;;  %792 = vst.msk [vmem:[#allocation3 + $0xf0] sm:$0xff] %vm761_vm3, %v726_v14  ;;  %v8658_v22 = vld [vmem:[#allocation9_spill] sm:$0xff] }
 0x120   : > { %1099 = vrot.lane.b32.xlu0 %v6417_v23, %s5944_s13 }
 0x121   : > { %v724_v15 = vpop.permute.xlu1 %723 }
 0x122   : > { %791 = vst.msk [vmem:[#allocation3 + $0xe8] sm:$0xff] %vm761_vm3, %v724_v15  ;;  %v859_v18 = vpop.permute.xlu0 %858  ;;  %v8669_v15 = vld [vmem:[#allocation20_spill] sm:$0xff] }
 0x123   : > { %1097 = vrot.lane.b32.xlu1 %v6427_v29, %s5944_s13  ;;  %955 = vst.msk [vmem:[#allocation3] sm:$0xff] %vm954_vm4, %v859_v18  ;;  %v6772_v29 = vld [vmem:[#allocation2 + $0x181] sm:$0xff] }
 0x124   : > { %1103 = vrot.lane.b32.xlu0 %v6433_v33, %s5944_s13  ;;  %v8670_v18 = vld [vmem:[#allocation21_spill] sm:$0xff] }
 0x125   : > { %v728_v19 = vpop.permute.xlu1 %727 }
 0x126   : > { %793 = vst.msk [vmem:[#allocation3 + $0xf8] sm:$0xff] %vm761_vm3, %v728_v19  ;;  %v863_v34 = vpop.permute.xlu0 %862  ;;  %vm3634_vm3 = vcmask 458112  }
 0x127   : > { %1101 = vrot.lane.b32.xlu1 %v8658_v22, %s5944_s13  ;;  %957 = vst.msk [vmem:[#allocation3 + $0x10] sm:$0xff] %vm954_vm4, %v863_v34  ;;  %v8671_v34 = vld [vmem:[#allocation22_spill] sm:$0xff] }
 0x128   : > { %1107 = vrot.lane.b32.xlu0 %v8659_v49, %s5944_s13 }
 0x129   : > { %v861_v23 = vpop.permute.xlu1 %860 }
 0x12a   : > { %956 = vst.msk [vmem:[#allocation3 + $0x8] sm:$0xff] %vm954_vm4, %v861_v23  ;;  %v867_v33 = vpop.permute.xlu0 %866  ;;  %v8672_v23 = vld [vmem:[#allocation23_spill] sm:$0xff] }
 0x12b   : > { %1105 = vrot.lane.b32.xlu1 %v8660_v45, %s5944_s13  ;;  %959 = vst.msk [vmem:[#allocation3 + $0x20] sm:$0xff] %vm954_vm4, %v867_v33  ;;  %v8673_v33 = vld [vmem:[#allocation24_spill] sm:$0xff] }
 0x12c   : > { %1111 = vrot.lane.b32.xlu0 %v6772_v29, %s5944_s13 }
 0x12d   : > { %v865_v25 = vpop.permute.xlu1 %864 }
 0x12e   : > { %958 = vst.msk [vmem:[#allocation3 + $0x18] sm:$0xff] %vm954_vm4, %v865_v25  ;;  %v871_v26 = vpop.permute.xlu0 %870  ;;  %v8674_v25 = vld [vmem:[#allocation25_spill] sm:$0xff] }
 0x12f   : > { %1109 = vrot.lane.b32.xlu1 %v8661_v47, %s5944_s13  ;;  %961 = vst.msk [vmem:[#allocation3 + $0x30] sm:$0xff] %vm954_vm4, %v871_v26 }
 0x130   : > { %1244 = vrot.lane.b32.xlu0 %v8662_v31, %s5945_s14  ;;  %v8676_v31 = vld [vmem:[#allocation27_spill] sm:$0xff] }
 0x131   : > { %v869_v30 = vpop.permute.xlu1 %868 }
 0x132   : > { %960 = vst.msk [vmem:[#allocation3 + $0x28] sm:$0xff] %vm954_vm4, %v869_v30  ;;  %v875_v32 = vpop.permute.xlu0 %874  ;;  %v8675_v30 = vld [vmem:[#allocation26_spill] sm:$0xff] }
 0x133   : > { %1113 = vrot.lane.b32.xlu1 %v6783_v27, %s5944_s13  ;;  %963 = vst.msk [vmem:[#allocation3 + $0x40] sm:$0xff] %vm954_vm4, %v875_v32 }
 0x134   : > { %1248 = vrot.lane.b32.xlu0 %v8663_v40, %s5945_s14  ;;  %v8677_v40 = vld [vmem:[#allocation28_spill] sm:$0xff] }
 0x135   : > { %v873_v39 = vpop.permute.xlu1 %872 }
 0x136   : > { %962 = vst.msk [vmem:[#allocation3 + $0x38] sm:$0xff] %vm954_vm4, %v873_v39  ;;  %v879_v42 = vpop.permute.xlu0 %878 }
 0x137   : > { %1246 = vrot.lane.b32.xlu1 %v8664_v41, %s5945_s14  ;;  %965 = vst.msk [vmem:[#allocation3 + $0x50] sm:$0xff] %vm954_vm4, %v879_v42  ;;  %v8678_v41 = vld [vmem:[#allocation29_spill] sm:$0xff] }
 0x138   : > { %1252 = vrot.lane.b32.xlu0 %v8665_v44, %s5945_s14  ;;  %v8679_v44 = vld [vmem:[#allocation30_spill] sm:$0xff] }
 0x139   : > { %v877_v43 = vpop.permute.xlu1 %876 }
 0x13a   : > { %964 = vst.msk [vmem:[#allocation3 + $0x48] sm:$0xff] %vm954_vm4, %v877_v43  ;;  %v883_v51 = vpop.permute.xlu0 %882 }
 0x13b   : > { %1250 = vrot.lane.b32.xlu1 %v8666_v46, %s5945_s14  ;;  %967 = vst.msk [vmem:[#allocation3 + $0x60] sm:$0xff] %vm954_vm4, %v883_v51  ;;  %v8680_v46 = vld [vmem:[#allocation31_spill] sm:$0xff] }
 0x13c   : > { %1256 = vrot.lane.b32.xlu0 %v8667_v56, %s5945_s14  ;;  %v8681_v56 = vld [vmem:[#allocation32_spill] sm:$0xff] }
 0x13d   : > { %v881_v53 = vpop.permute.xlu1 %880 }
 0x13e   : > { %966 = vst.msk [vmem:[#allocation3 + $0x58] sm:$0xff] %vm954_vm4, %v881_v53  ;;  %v887_v11 = vpop.permute.xlu0 %886 }
 0x13f   : > { %1254 = vrot.lane.b32.xlu1 %v8668_v63, %s5945_s14  ;;  %969 = vst.msk [vmem:[#allocation3 + $0x70] sm:$0xff] %vm954_vm4, %v887_v11  ;;  %v8682_v63 = vld [vmem:[#allocation33_spill] sm:$0xff] }
 0x140   : > { %1260 = vrot.lane.b32.xlu0 %v8669_v15, %s5945_s14  ;;  %v8683_v15 = vld [vmem:[#allocation34_spill] sm:$0xff] }
 0x141   : > { %v885_v14 = vpop.permute.xlu1 %884 }
 0x142   : > { %968 = vst.msk [vmem:[#allocation3 + $0x68] sm:$0xff] %vm954_vm4, %v885_v14  ;;  %v891_v19 = vpop.permute.xlu0 %890 }
 0x143   : > { %1258 = vrot.lane.b32.xlu1 %v8670_v18, %s5945_s14  ;;  %971 = vst.msk [vmem:[#allocation3 + $0x80] sm:$0xff] %vm954_vm4, %v891_v19  ;;  %v8684_v18 = vld [vmem:[#allocation35_spill] sm:$0xff] }
 0x144   : > { %1264 = vrot.lane.b32.xlu0 %v8671_v34, %s5945_s14  ;;  %v8685_v34 = vld [vmem:[#allocation36_spill] sm:$0xff] }
 0x145   : > { %v889_v22 = vpop.permute.xlu1 %888 }
 0x146   : > { %970 = vst.msk [vmem:[#allocation3 + $0x78] sm:$0xff] %vm954_vm4, %v889_v22  ;;  %v895_v49 = vpop.permute.xlu0 %894 }
 0x147   : > { %1262 = vrot.lane.b32.xlu1 %v8672_v23, %s5945_s14  ;;  %973 = vst.msk [vmem:[#allocation3 + $0x90] sm:$0xff] %vm954_vm4, %v895_v49  ;;  %v8686_v23 = vld [vmem:[#allocation37_spill] sm:$0xff] }
 0x148   : > { %1268 = vrot.lane.b32.xlu0 %v8673_v33, %s5945_s14  ;;  %v8687_v33 = vld [vmem:[#allocation38_spill] sm:$0xff] }
 0x149   : > { %v893_v45 = vpop.permute.xlu1 %892 }
 0x14a   : > { %972 = vst.msk [vmem:[#allocation3 + $0x88] sm:$0xff] %vm954_vm4, %v893_v45  ;;  %v899_v47 = vpop.permute.xlu0 %898 }
 0x14b   : > { %1266 = vrot.lane.b32.xlu1 %v8674_v25, %s5945_s14  ;;  %975 = vst.msk [vmem:[#allocation3 + $0xa0] sm:$0xff] %vm954_vm4, %v899_v47 }
 0x14c   : > { %1272 = vrot.lane.b32.xlu0 %v8675_v30, %s5945_s14 }
 0x14d   : > { %v897_v26 = vpop.permute.xlu1 %896 }
 0x14e   : > { %974 = vst.msk [vmem:[#allocation3 + $0x98] sm:$0xff] %vm954_vm4, %v897_v26  ;;  %v903_v32 = vpop.permute.xlu0 %902  ;;  %v6872_v26 = vld [vmem:[#allocation2 + $0x182] sm:$0xff] }
 0x14f   : > { %1270 = vrot.lane.b32.xlu1 %v8676_v31, %s5945_s14  ;;  %977 = vst.msk [vmem:[#allocation3 + $0xb0] sm:$0xff] %vm954_vm4, %v903_v32  ;;  %v6883_v31 = vld [vmem:[#allocation2 + $0x18a] sm:$0xff] }
 0x150   : > { %1276 = vrot.lane.b32.xlu0 %v8677_v40, %s5945_s14 }
 0x151   : > { %v901_v39 = vpop.permute.xlu1 %900 }
 0x152   : > { %976 = vst.msk [vmem:[#allocation3 + $0xa8] sm:$0xff] %vm954_vm4, %v901_v39  ;;  %v907_v42 = vpop.permute.xlu0 %906 }
 0x153   : > { %1274 = vrot.lane.b32.xlu1 %v8678_v41, %s5945_s14  ;;  %979 = vst.msk [vmem:[#allocation3 + $0xc0] sm:$0xff] %vm954_vm4, %v907_v42  ;;  %v1987_v42 = vld [vmem:[%s8589_s1 + $0x10] sm:$0xff] }
 0x154   : > { %1280 = vrot.lane.b32.xlu0 %v8679_v44, %s5945_s14  ;;  %v1405_v44 = vld [vmem:[#allocation2 + $0x1a0] sm:$0xff] }
 0x155   : > { %v905_v43 = vpop.permute.xlu1 %904 }
 0x156   : > { %978 = vst.msk [vmem:[#allocation3 + $0xb8] sm:$0xff] %vm954_vm4, %v905_v43  ;;  %v911_v51 = vpop.permute.xlu0 %910 }
 0x157   : > { %1278 = vrot.lane.b32.xlu1 %v8680_v46, %s5945_s14  ;;  %981 = vst.msk [vmem:[#allocation3 + $0xd0] sm:$0xff] %vm954_vm4, %v911_v51  ;;  %v1569_v51 = vld [vmem:[#allocation2 + $0x49] sm:$0xff] }
 0x158   : > { %1284 = vrot.lane.b32.xlu0 %v8681_v56, %s5945_s14 }
 0x159   : > { %v909_v53 = vpop.permute.xlu1 %908 }
 0x15a   : > { %980 = vst.msk [vmem:[#allocation3 + $0xc8] sm:$0xff] %vm954_vm4, %v909_v53  ;;  %v915_v11 = vpop.permute.xlu0 %914  ;;  %v1986_v53 = vld [vmem:[%s8589_s1 + $0x8] sm:$0xff] }
 0x15b   : > { %1282 = vrot.lane.b32.xlu1 %v8682_v63, %s5945_s14  ;;  %983 = vst.msk [vmem:[#allocation3 + $0xe0] sm:$0xff] %vm954_vm4, %v915_v11  ;;  %v1568_v63 = vld [vmem:[#allocation2 + $0x39] sm:$0xff] }
 0x15c   : > { %1288 = vrot.lane.b32.xlu0 %v8683_v15, %s5945_s14 }
 0x15d   : > { %v913_v14 = vpop.permute.xlu1 %912 }
 0x15e   : > { %982 = vst.msk [vmem:[#allocation3 + $0xd8] sm:$0xff] %vm954_vm4, %v913_v14  ;;  %v919_v19 = vpop.permute.xlu0 %918  ;;  %v1761_v14 = vld [vmem:[#allocation2 + $0x3a] sm:$0xff] }
 0x15f   : > { %1286 = vrot.lane.b32.xlu1 %v8684_v18, %s5945_s14  ;;  %985 = vst.msk [vmem:[#allocation3 + $0xf0] sm:$0xff] %vm954_vm4, %v919_v19  ;;  %v1760_v18 = vld [vmem:[#allocation2 + $0x32] sm:$0xff] }
 0x160   : > { %1292 = vrot.lane.b32.xlu0 %v8685_v34, %s5945_s14 }
 0x161   : > { %v917_v22 = vpop.permute.xlu1 %916 }
 0x162   : > { %984 = vst.msk [vmem:[#allocation3 + $0xe8] sm:$0xff] %vm954_vm4, %v917_v22  ;;  %v1052_v49 = vpop.permute.xlu0 %1051  ;;  %v1762_v22 = vld [vmem:[#allocation2 + $0x4a] sm:$0xff] }
 0x163   : > { %1290 = vrot.lane.b32.xlu1 %v8686_v23, %s5945_s14  ;;  %1148 = vst.msk [vmem:[#allocation3] sm:$0xff] %vm1147_vm5, %v1052_v49  ;;  %v1570_v23 = vld [vmem:[#allocation2 + $0x51] sm:$0xff] }
 0x164   : > { %1296 = vrot.lane.b32.xlu0 %v6560_v36, %s5945_s14 }
 0x165   : > { %v921_v45 = vpop.permute.xlu1 %920 }
 0x166   : > { %986 = vst.msk [vmem:[#allocation3 + $0xf8] sm:$0xff] %vm954_vm4, %v921_v45  ;;  %v1056_v25 = vpop.permute.xlu0 %1055  ;;  %v1571_v45 = vld [vmem:[#allocation2 + $0x61] sm:$0xff]  ;;  %vm3827_vm4 = vcmask 523712  }
 0x167   : > { %1294 = vrot.lane.b32.xlu1 %v8687_v33, %s5945_s14  ;;  %1150 = vst.msk [vmem:[#allocation3 + $0x10] sm:$0xff] %vm1147_vm5, %v1056_v25  ;;  %v1763_v25 = vld [vmem:[#allocation2 + $0x52] sm:$0xff] }
 0x168   : > { %1300 = vrot.lane.b32.xlu0 %v6570_v37, %s5945_s14 }
 0x169   : > { %v1054_v47 = vpop.permute.xlu1 %1053 }
 0x16a   : > { %1149 = vst.msk [vmem:[#allocation3 + $0x8] sm:$0xff] %vm1147_vm5, %v1054_v47  ;;  %v1060_v36 = vpop.permute.xlu0 %1059 }
 0x16b   : > { %1298 = vrot.lane.b32.xlu1 %v6575_v0, %s5945_s14  ;;  %1152 = vst.msk [vmem:[#allocation3 + $0x20] sm:$0xff] %vm1147_vm5, %v1060_v36  ;;  %v1764_v36 = vld [vmem:[#allocation2 + $0x62] sm:$0xff] }
 0x16c   : > { %1304 = vrot.lane.b32.xlu0 %v6872_v26, %s5945_s14 }
 0x16d   : > { %v1058_v30 = vpop.permute.xlu1 %1057 }
 0x16e   : > { %1151 = vst.msk [vmem:[#allocation3 + $0x18] sm:$0xff] %vm1147_vm5, %v1058_v30  ;;  %v1064_v37 = vpop.permute.xlu0 %1063 }
 0x16f   : > { %1302 = vrot.lane.b32.xlu1 %v6583_v38, %s5945_s14  ;;  %1154 = vst.msk [vmem:[#allocation3 + $0x30] sm:$0xff] %vm1147_vm5, %v1064_v37  ;;  %v1572_v37 = vld [vmem:[#allocation2 + $0x69] sm:$0xff] }
 0x170   : > { %1438 = vrot.lane.b32.xlu0 %v6271_v50, %s5946_s15 }
 0x171   : > { %v1062_v32 = vpop.permute.xlu1 %1061 }
 0x172   : > { %1153 = vst.msk [vmem:[#allocation3 + $0x28] sm:$0xff] %vm1147_vm5, %v1062_v32  ;;  %v1068_v0 = vpop.permute.xlu0 %1067 }
 0x173   : > { %1306 = vrot.lane.b32.xlu1 %v6883_v31, %s5945_s14  ;;  %1156 = vst.msk [vmem:[#allocation3 + $0x40] sm:$0xff] %vm1147_vm5, %v1068_v0  ;;  %v1573_v0 = vld [vmem:[#allocation2 + $0x79] sm:$0xff] }
 0x174   : > { %1442 = vrot.lane.b32.xlu0 %v6287_v54, %s5946_s15 }
 0x175   : > { %v1066_v39 = vpop.permute.xlu1 %1065 }
 0x176   : > { %1155 = vst.msk [vmem:[#allocation3 + $0x38] sm:$0xff] %vm1147_vm5, %v1066_v39  ;;  %v1072_v38 = vpop.permute.xlu0 %1071 }
 0x177   : > { %1440 = vrot.lane.b32.xlu1 %v6279_v52, %s5946_s15  ;;  %1158 = vst.msk [vmem:[#allocation3 + $0x50] sm:$0xff] %vm1147_vm5, %v1072_v38  ;;  %v1765_v38 = vld [vmem:[#allocation2 + $0x6a] sm:$0xff] }
 0x178   : > { %1446 = vrot.lane.b32.xlu0 %v6297_v57, %s5946_s15 }
 0x179   : > { %v1070_v50 = vpop.permute.xlu1 %1069 }
 0x17a   : > { %1157 = vst.msk [vmem:[#allocation3 + $0x48] sm:$0xff] %vm1147_vm5, %v1070_v50  ;;  %v1076_v40 = vpop.permute.xlu0 %1075 }
 0x17b   : > { %1444 = vrot.lane.b32.xlu1 %v6289_v55, %s5946_s15  ;;  %1160 = vst.msk [vmem:[#allocation3 + $0x60] sm:$0xff] %vm1147_vm5, %v1076_v40  ;;  %v1766_v40 = vld [vmem:[#allocation2 + $0x7a] sm:$0xff] }
 0x17c   : > { %1450 = vrot.lane.b32.xlu0 %v6301_v59, %s5946_s15 }
 0x17d   : > { %v1074_v54 = vpop.permute.xlu1 %1073 }
 0x17e   : > { %1159 = vst.msk [vmem:[#allocation3 + $0x58] sm:$0xff] %vm1147_vm5, %v1074_v54  ;;  %v1080_v52 = vpop.permute.xlu0 %1079 }
 0x17f   : > { %1448 = vrot.lane.b32.xlu1 %v6299_v58, %s5946_s15  ;;  %1162 = vst.msk [vmem:[#allocation3 + $0x70] sm:$0xff] %vm1147_vm5, %v1080_v52  ;;  %v1574_v52 = vld [vmem:[#allocation2 + $0x81] sm:$0xff] }
 0x180   : > { %1454 = vrot.lane.b32.xlu0 %v6313_v61, %s5946_s15 }
 0x181   : > { %v1078_v57 = vpop.permute.xlu1 %1077 }
 0x182   : > { %1161 = vst.msk [vmem:[#allocation3 + $0x68] sm:$0xff] %vm1147_vm5, %v1078_v57  ;;  %v1084_v55 = vpop.permute.xlu0 %1083 }
 0x183   : > { %1452 = vrot.lane.b32.xlu1 %v6311_v60, %s5946_s15  ;;  %1164 = vst.msk [vmem:[#allocation3 + $0x80] sm:$0xff] %vm1147_vm5, %v1084_v55  ;;  %v1575_v55 = vld [vmem:[#allocation2 + $0x91] sm:$0xff] }
 0x184   : > { %1458 = vrot.lane.b32.xlu0 %v6325_v1, %s5946_s15 }
 0x185   : > { %v1082_v59 = vpop.permute.xlu1 %1081 }
 0x186   : > { %1163 = vst.msk [vmem:[#allocation3 + $0x78] sm:$0xff] %vm1147_vm5, %v1082_v59  ;;  %v1088_v58 = vpop.permute.xlu0 %1087 }
 0x187   : > { %1456 = vrot.lane.b32.xlu1 %v6315_v62, %s5946_s15  ;;  %1166 = vst.msk [vmem:[#allocation3 + $0x90] sm:$0xff] %vm1147_vm5, %v1088_v58  ;;  %v1767_v58 = vld [vmem:[#allocation2 + $0x82] sm:$0xff] }
 0x188   : > { %1462 = vrot.lane.b32.xlu0 %v6329_v3, %s5946_s15 }
 0x189   : > { %v1086_v61 = vpop.permute.xlu1 %1085 }
 0x18a   : > { %1165 = vst.msk [vmem:[#allocation3 + $0x88] sm:$0xff] %vm1147_vm5, %v1086_v61  ;;  %v1092_v60 = vpop.permute.xlu0 %1091 }
 0x18b   : > { %1460 = vrot.lane.b32.xlu1 %v6327_v2, %s5946_s15  ;;  %1168 = vst.msk [vmem:[#allocation3 + $0xa0] sm:$0xff] %vm1147_vm5, %v1092_v60  ;;  %v1768_v60 = vld [vmem:[#allocation2 + $0x92] sm:$0xff] }
 0x18c   : > { %1466 = vrot.lane.b32.xlu0 %v6341_v5, %s5946_s15 }
 0x18d   : > { %v1090_v1 = vpop.permute.xlu1 %1089 }
 0x18e   : > { %1167 = vst.msk [vmem:[#allocation3 + $0x98] sm:$0xff] %vm1147_vm5, %v1090_v1  ;;  %v1096_v62 = vpop.permute.xlu0 %1095 }
 0x18f   : > { %1464 = vrot.lane.b32.xlu1 %v6339_v4, %s5946_s15  ;;  %1170 = vst.msk [vmem:[#allocation3 + $0xb0] sm:$0xff] %vm1147_vm5, %v1096_v62  ;;  %v1576_v62 = vld [vmem:[#allocation2 + $0x99] sm:$0xff] }
 0x190   : > { %1470 = vrot.lane.b32.xlu0 %v6351_v7, %s5946_s15 }
 0x191   : > { %v1094_v3 = vpop.permute.xlu1 %1093 }
 0x192   : > { %1169 = vst.msk [vmem:[#allocation3 + $0xa8] sm:$0xff] %vm1147_vm5, %v1094_v3  ;;  %v1100_v2 = vpop.permute.xlu0 %1099 }
 0x193   : > { %1468 = vrot.lane.b32.xlu1 %v6343_v6, %s5946_s15  ;;  %1172 = vst.msk [vmem:[#allocation3 + $0xc0] sm:$0xff] %vm1147_vm5, %v1100_v2  ;;  %v1577_v2 = vld [vmem:[#allocation2 + $0xa9] sm:$0xff] }
 0x194   : > { %1474 = vrot.lane.b32.xlu0 %v6355_v9, %s5946_s15 }
 0x195   : > { %v1098_v5 = vpop.permute.xlu1 %1097 }
 0x196   : > { %1171 = vst.msk [vmem:[#allocation3 + $0xb8] sm:$0xff] %vm1147_vm5, %v1098_v5  ;;  %v1104_v4 = vpop.permute.xlu0 %1103 }
 0x197   : > { %1472 = vrot.lane.b32.xlu1 %v6353_v8, %s5946_s15  ;;  %1174 = vst.msk [vmem:[#allocation3 + $0xd0] sm:$0xff] %vm1147_vm5, %v1104_v4  ;;  %v1769_v4 = vld [vmem:[#allocation2 + $0x9a] sm:$0xff] }
 0x198   : > { %1478 = vrot.lane.b32.xlu0 %v6371_v12, %s5946_s15 }
 0x199   : > { %v1102_v7 = vpop.permute.xlu1 %1101 }
 0x19a   : > { %1173 = vst.msk [vmem:[#allocation3 + $0xc8] sm:$0xff] %vm1147_vm5, %v1102_v7  ;;  %v1108_v6 = vpop.permute.xlu0 %1107 }
 0x19b   : > { %1476 = vrot.lane.b32.xlu1 %v6365_v10, %s5946_s15  ;;  %1176 = vst.msk [vmem:[#allocation3 + $0xe0] sm:$0xff] %vm1147_vm5, %v1108_v6  ;;  %v1770_v6 = vld [vmem:[#allocation2 + $0xaa] sm:$0xff] }
 0x19c   : > { %1482 = vrot.lane.b32.xlu0 %v6387_v16, %s5946_s15 }
 0x19d   : > { %v1106_v9 = vpop.permute.xlu1 %1105 }
 0x19e   : > { %1175 = vst.msk [vmem:[#allocation3 + $0xd8] sm:$0xff] %vm1147_vm5, %v1106_v9  ;;  %v1112_v8 = vpop.permute.xlu0 %1111 }
 0x19f   : > { %1480 = vrot.lane.b32.xlu1 %v6377_v13, %s5946_s15  ;;  %1178 = vst.msk [vmem:[#allocation3 + $0xf0] sm:$0xff] %vm1147_vm5, %v1112_v8  ;;  %v1578_v8 = vld [vmem:[#allocation2 + $0xb1] sm:$0xff] }
 0x1a0   : > { %1486 = vrot.lane.b32.xlu0 %v6403_v20, %s5946_s15 }
 0x1a1   : > { %v1110_v12 = vpop.permute.xlu1 %1109 }
 0x1a2   : > { %1177 = vst.msk [vmem:[#allocation3 + $0xe8] sm:$0xff] %vm1147_vm5, %v1110_v12  ;;  %v1245_v10 = vpop.permute.xlu0 %1244 }
 0x1a3   : > { %1484 = vrot.lane.b32.xlu1 %v6393_v17, %s5946_s15  ;;  %1341 = vst.msk [vmem:[#allocation3] sm:$0xff] %vm1340_vm6, %v1245_v10  ;;  %v1404_v17 = vld [vmem:[#allocation2 + $0x198] sm:$0xff]  ;;  %v1579_v10 = vld [vmem:[#allocation2 + $0xc1] sm:$0xff] }
 0x1a4   : > { %1490 = vrot.lane.b32.xlu0 %v6419_v24, %s5946_s15  ;;  %v1989_v24 = vld [vmem:[%s8589_s1 + $0x20] sm:$0xf] }
 0x1a5   : > { %v1114_v16 = vpop.permute.xlu1 %1113  ;;  %5681 = vmatprep.subr.msk.mxu0 %vm2094_vm7, %v1989_v24 }
 0x1a6   : > { %1179 = vst.msk [vmem:[#allocation3 + $0xf8] sm:$0xff] %vm1147_vm5, %v1114_v16  ;;  %v1249_v13 = vpop.permute.xlu0 %1248  ;;  %5682 = vmatpush3.msk.msra.mxu0 %vm2094_vm7, %v1989_v24  ;;  %v1580_v24 = vld [vmem:[#allocation2 + $0xc9] sm:$0xff]  ;;  %vm4020_vm5 = vcmask 589312   ;;  %vm5367_vm7 = vcmask 1041409  }
 0x1a7   : > { %1488 = vrot.lane.b32.xlu1 %v6409_v21, %s5946_s15  ;;  %1343 = vst.msk [vmem:[#allocation3 + $0x10] sm:$0xff] %vm1340_vm6, %v1249_v13  ;;  %v1771_v13 = vld [vmem:[#allocation2 + $0xb2] sm:$0xff] }
 0x1a8   : > { %1494 = vrot.lane.b32.xlu0 %v6672_v48, %s5946_s15  ;;  %v1567_v48 = vld [vmem:[#allocation2 + $0x31] sm:$0xff] }
 0x1a9   : > { %v1247_v20 = vpop.permute.xlu1 %1246 }
 0x1aa   : > { %1342 = vst.msk [vmem:[#allocation3 + $0x8] sm:$0xff] %vm1340_vm6, %v1247_v20  ;;  %v1253_v41 = vpop.permute.xlu0 %1252 }
 0x1ab   : > { %1492 = vrot.lane.b32.xlu1 %v6425_v28, %s5946_s15  ;;  %1345 = vst.msk [vmem:[#allocation3 + $0x20] sm:$0xff] %vm1340_vm6, %v1253_v41  ;;  %v1988_v28 = vld [vmem:[%s8589_s1 + $0x18] sm:$0xff] }
 0x1ac   : > { %1498 = vrot.lane.b32.xlu0 %v1404_v17, %s5946_s15  ;;  %5683 = vmatprep.subr.mxu0 %v1988_v28  ;;  %v1772_v17 = vld [vmem:[#allocation2 + $0xc2] sm:$0xff] }
 0x1ad   : > { %v1251_v21 = vpop.permute.xlu1 %1250  ;;  %5684 = vmatpush3.msra.mxu0 %v1988_v28 }
 0x1ae   : > { %1344 = vst.msk [vmem:[#allocation3 + $0x18] sm:$0xff] %vm1340_vm6, %v1251_v21  ;;  %v1257_v43 = vpop.permute.xlu0 %1256  ;;  %5685 = vmatprep.subr.mxu0 %v1987_v42 }
 0x1af   : > { %1496 = vrot.lane.b32.xlu1 %v6683_v35, %s5946_s15  ;;  %1347 = vst.msk [vmem:[#allocation3 + $0x30] sm:$0xff] %vm1340_vm6, %v1257_v43  ;;  %5686 = vmatpush3.msra.mxu0 %v1987_v42  ;;  %v1985_v35 = vld [vmem:[%s8589_s1] sm:$0xff]  ;;  %v1773_v42 = vld [vmem:[#allocation2 + $0xca] sm:$0xff] }
 0x1b0   : > { %1631 = vrot.lane.b32.xlu0 %v1567_v48, %s5947_s6  ;;  %5687 = vmatprep.subr.mxu0 %v1986_v53  ;;  %v1581_v48 = vld [vmem:[#allocation2 + $0xd9] sm:$0xff] }
 0x1b1   : > { %v1255_v46 = vpop.permute.xlu1 %1254  ;;  %5688 = vmatpush3.msra.mxu0 %v1986_v53 }
 0x1b2   : > { %1346 = vst.msk [vmem:[#allocation3 + $0x28] sm:$0xff] %vm1340_vm6, %v1255_v46  ;;  %v1261_v56 = vpop.permute.xlu0 %1260  ;;  %5689 = vmatprep.subr.mxu0 %v1985_v35 }
 0x1b3   : > { %1500 = vrot.lane.b32.xlu1 %v1405_v44, %s5946_s15  ;;  %1349 = vst.msk [vmem:[#allocation3 + $0x40] sm:$0xff] %vm1340_vm6, %v1261_v56  ;;  %5690 = vmatpush3.msra.mxu0 %v1985_v35  ;;  %v1774_v44 = vld [vmem:[#allocation2 + $0xda] sm:$0xff]  ;;  %v1583_v35 = vld [vmem:[#allocation2 + $0xf1] sm:$0xff] }
 0x1b4   : > { %1635 = vrot.lane.b32.xlu0 %v1569_v51, %s5947_s6  ;;  %v1582_v51 = vld [vmem:[#allocation2 + $0xe1] sm:$0xff] }
 0x1b5   : > { %v1259_v11 = vpop.permute.xlu1 %1258 }
 0x1b6   : > { %1348 = vst.msk [vmem:[#allocation3 + $0x38] sm:$0xff] %vm1340_vm6, %v1259_v11  ;;  %v1265_v15 = vpop.permute.xlu0 %1264 }
 0x1b7   : > { %1633 = vrot.lane.b32.xlu1 %v1568_v63, %s5947_s6  ;;  %1351 = vst.msk [vmem:[#allocation3 + $0x50] sm:$0xff] %vm1340_vm6, %v1265_v15  ;;  %v1775_v63 = vld [vmem:[#allocation2 + $0xe2] sm:$0xff] }
 0x1b8   : > { %1826 = vrot.lane.b32.xlu0 %v1761_v14, %s5948_s12  ;;  %v1776_v14 = vld [vmem:[#allocation2 + $0xf2] sm:$0xff] }
 0x1b9   : > { %v1263_v19 = vpop.permute.xlu1 %1262 }
 0x1ba   : > { %1350 = vst.msk [vmem:[#allocation3 + $0x48] sm:$0xff] %vm1340_vm6, %v1263_v19  ;;  %v1269_v34 = vpop.permute.xlu0 %1268 }
 0x1bb   : > { %1824 = vrot.lane.b32.xlu1 %v1760_v18, %s5948_s12  ;;  %1353 = vst.msk [vmem:[#allocation3 + $0x60] sm:$0xff] %vm1340_vm6, %v1269_v34  ;;  %v1584_v18 = vld [vmem:[#allocation2 + $0xf9] sm:$0xff] }
 0x1bc   : > { %1828 = vrot.lane.b32.xlu0 %v1762_v22, %s5948_s12  ;;  %v1585_v22 = vld [vmem:[#allocation2 + $0x109] sm:$0xff] }
 0x1bd   : > { %v1267_v49 = vpop.permute.xlu1 %1266 }
 0x1be   : > { %1352 = vst.msk [vmem:[#allocation3 + $0x58] sm:$0xff] %vm1340_vm6, %v1267_v49  ;;  %v1273_v33 = vpop.permute.xlu0 %1272 }
 0x1bf   : > { %1637 = vrot.lane.b32.xlu1 %v1570_v23, %s5947_s6  ;;  %1355 = vst.msk [vmem:[#allocation3 + $0x70] sm:$0xff] %vm1340_vm6, %v1273_v33  ;;  %v1777_v23 = vld [vmem:[#allocation2 + $0xfa] sm:$0xff] }
 0x1c0   : > { %1639 = vrot.lane.b32.xlu0 %v1571_v45, %s5947_s6  ;;  %v1778_v45 = vld [vmem:[#allocation2 + $0x10a] sm:$0xff] }
 0x1c1   : > { %v1271_v47 = vpop.permute.xlu1 %1270 }
 0x1c2   : > { %1354 = vst.msk [vmem:[#allocation3 + $0x68] sm:$0xff] %vm1340_vm6, %v1271_v47  ;;  %v1277_v30 = vpop.permute.xlu0 %1276 }
 0x1c3   : > { %1830 = vrot.lane.b32.xlu1 %v1763_v25, %s5948_s12  ;;  %1357 = vst.msk [vmem:[#allocation3 + $0x80] sm:$0xff] %vm1340_vm6, %v1277_v30  ;;  %v1586_v25 = vld [vmem:[#allocation2 + $0x111] sm:$0xff] }
 0x1c4   : > { %1832 = vrot.lane.b32.xlu0 %v1764_v36, %s5948_s12  ;;  %v1587_v36 = vld [vmem:[#allocation2 + $0x121] sm:$0xff] }
 0x1c5   : > { %v1275_v32 = vpop.permute.xlu1 %1274 }
 0x1c6   : > { %1356 = vst.msk [vmem:[#allocation3 + $0x78] sm:$0xff] %vm1340_vm6, %v1275_v32  ;;  %v1281_v39 = vpop.permute.xlu0 %1280 }
 0x1c7   : > { %1641 = vrot.lane.b32.xlu1 %v1572_v37, %s5947_s6  ;;  %1359 = vst.msk [vmem:[#allocation3 + $0x90] sm:$0xff] %vm1340_vm6, %v1281_v39  ;;  %v1779_v37 = vld [vmem:[#allocation2 + $0x112] sm:$0xff] }
 0x1c8   : > { %1643 = vrot.lane.b32.xlu0 %v1573_v0, %s5947_s6  ;;  %v1780_v0 = vld [vmem:[#allocation2 + $0x122] sm:$0xff] }
 0x1c9   : > { %v1279_v50 = vpop.permute.xlu1 %1278 }
 0x1ca   : > { %1358 = vst.msk [vmem:[#allocation3 + $0x88] sm:$0xff] %vm1340_vm6, %v1279_v50  ;;  %v1285_v54 = vpop.permute.xlu0 %1284 }
 0x1cb   : > { %1834 = vrot.lane.b32.xlu1 %v1765_v38, %s5948_s12  ;;  %1361 = vst.msk [vmem:[#allocation3 + $0xa0] sm:$0xff] %vm1340_vm6, %v1285_v54  ;;  %v1588_v38 = vld [vmem:[#allocation2 + $0x129] sm:$0xff] }
 0x1cc   : > { %1836 = vrot.lane.b32.xlu0 %v1766_v40, %s5948_s12  ;;  %v1589_v40 = vld [vmem:[#allocation2 + $0x139] sm:$0xff] }
 0x1cd   : > { %v1283_v57 = vpop.permute.xlu1 %1282 }
 0x1ce   : > { %1360 = vst.msk [vmem:[#allocation3 + $0x98] sm:$0xff] %vm1340_vm6, %v1283_v57  ;;  %v1289_v59 = vpop.permute.xlu0 %1288 }
 0x1cf   : > { %1645 = vrot.lane.b32.xlu1 %v1574_v52, %s5947_s6  ;;  %1363 = vst.msk [vmem:[#allocation3 + $0xb0] sm:$0xff] %vm1340_vm6, %v1289_v59  ;;  %v1781_v52 = vld [vmem:[#allocation2 + $0x12a] sm:$0xff] }
 0x1d0   : > { %1647 = vrot.lane.b32.xlu0 %v1575_v55, %s5947_s6  ;;  %v1782_v55 = vld [vmem:[#allocation2 + $0x13a] sm:$0xff] }
 0x1d1   : > { %v1287_v61 = vpop.permute.xlu1 %1286 }
 0x1d2   : > { %1362 = vst.msk [vmem:[#allocation3 + $0xa8] sm:$0xff] %vm1340_vm6, %v1287_v61  ;;  %v1293_v1 = vpop.permute.xlu0 %1292 }
 0x1d3   : > { %1838 = vrot.lane.b32.xlu1 %v1767_v58, %s5948_s12  ;;  %1365 = vst.msk [vmem:[#allocation3 + $0xc0] sm:$0xff] %vm1340_vm6, %v1293_v1  ;;  %v1590_v58 = vld [vmem:[#allocation2 + $0x141] sm:$0xff] }
 0x1d4   : > { %1840 = vrot.lane.b32.xlu0 %v1768_v60, %s5948_s12  ;;  %v1591_v60 = vld [vmem:[#allocation2 + $0x151] sm:$0xff] }
 0x1d5   : > { %v1291_v3 = vpop.permute.xlu1 %1290 }
 0x1d6   : > { %1364 = vst.msk [vmem:[#allocation3 + $0xb8] sm:$0xff] %vm1340_vm6, %v1291_v3  ;;  %v1297_v5 = vpop.permute.xlu0 %1296 }
 0x1d7   : > { %1649 = vrot.lane.b32.xlu1 %v1576_v62, %s5947_s6  ;;  %1367 = vst.msk [vmem:[#allocation3 + $0xd0] sm:$0xff] %vm1340_vm6, %v1297_v5  ;;  %v1783_v62 = vld [vmem:[#allocation2 + $0x142] sm:$0xff] }
 0x1d8   : > { %1651 = vrot.lane.b32.xlu0 %v1577_v2, %s5947_s6  ;;  %v1784_v2 = vld [vmem:[#allocation2 + $0x152] sm:$0xff] }
 0x1d9   : > { %v1295_v7 = vpop.permute.xlu1 %1294 }
 0x1da   : > { %1366 = vst.msk [vmem:[#allocation3 + $0xc8] sm:$0xff] %vm1340_vm6, %v1295_v7  ;;  %v1301_v9 = vpop.permute.xlu0 %1300 }
 0x1db   : > { %1842 = vrot.lane.b32.xlu1 %v1769_v4, %s5948_s12  ;;  %1369 = vst.msk [vmem:[#allocation3 + $0xe0] sm:$0xff] %vm1340_vm6, %v1301_v9  ;;  %v1592_v4 = vld [vmem:[#allocation2 + $0x159] sm:$0xff] }
 0x1dc   : > { %1844 = vrot.lane.b32.xlu0 %v1770_v6, %s5948_s12  ;;  %v1593_v6 = vld [vmem:[#allocation2 + $0x169] sm:$0xff] }
 0x1dd   : > { %v1299_v12 = vpop.permute.xlu1 %1298 }
 0x1de   : > { %1368 = vst.msk [vmem:[#allocation3 + $0xd8] sm:$0xff] %vm1340_vm6, %v1299_v12  ;;  %v1305_v16 = vpop.permute.xlu0 %1304 }
 0x1df   : > { %1653 = vrot.lane.b32.xlu1 %v1578_v8, %s5947_s6  ;;  %1371 = vst.msk [vmem:[#allocation3 + $0xf0] sm:$0xff] %vm1340_vm6, %v1305_v16  ;;  %v1785_v8 = vld [vmem:[#allocation2 + $0x15a] sm:$0xff] }
 0x1e0   : > { %1655 = vrot.lane.b32.xlu0 %v1579_v10, %s5947_s6  ;;  %v1786_v10 = vld [vmem:[#allocation2 + $0x16a] sm:$0xff] }
 0x1e1   : > { %v1303_v20 = vpop.permute.xlu1 %1302 }
 0x1e2   : > { %1370 = vst.msk [vmem:[#allocation3 + $0xe8] sm:$0xff] %vm1340_vm6, %v1303_v20  ;;  %v1439_v41 = vpop.permute.xlu0 %1438 }
 0x1e3   : > { %1846 = vrot.lane.b32.xlu1 %v1771_v13, %s5948_s12  ;;  %1535 = vst.msk [vmem:[#allocation3] sm:$0xff] %vm1534_vm8, %v1439_v41  ;;  %v1594_v13 = vld [vmem:[#allocation2 + $0x171] sm:$0xff] }
 0x1e4   : > { %1848 = vrot.lane.b32.xlu0 %v1772_v17, %s5948_s12  ;;  %v1787_v41 = vld [vmem:[#allocation2 + $0x172] sm:$0xff] }
 0x1e5   : > { %v1307_v21 = vpop.permute.xlu1 %1306 }
 0x1e6   : > { %1372 = vst.msk [vmem:[#allocation3 + $0xf8] sm:$0xff] %vm1340_vm6, %v1307_v21  ;;  %v1443_v28 = vpop.permute.xlu0 %1442  ;;  %vm4101_vm6 = vcmask 588800  }
 0x1e7   : > { %1657 = vrot.lane.b32.xlu1 %v1580_v24, %s5947_s6  ;;  %1537 = vst.msk [vmem:[#allocation3 + $0x10] sm:$0xff] %vm1534_vm8, %v1443_v28 }
 0x1e8   : > { %1659 = vrot.lane.b32.xlu0 %v1581_v48, %s5947_s6 }
 0x1e9   : > { %v1441_v43 = vpop.permute.xlu1 %1440 }
 0x1ea   : > { %1536 = vst.msk [vmem:[#allocation3 + $0x8] sm:$0xff] %vm1534_vm8, %v1441_v43  ;;  %v1447_v46 = vpop.permute.xlu0 %1446 }
 0x1eb   : > { %1850 = vrot.lane.b32.xlu1 %v1773_v42, %s5948_s12  ;;  %1539 = vst.msk [vmem:[#allocation3 + $0x20] sm:$0xff] %vm1534_vm8, %v1447_v46 }
 0x1ec   : > { %1852 = vrot.lane.b32.xlu0 %v1774_v44, %s5948_s12 }
 0x1ed   : > { %v1445_v53 = vpop.permute.xlu1 %1444 }
 0x1ee   : > { %1538 = vst.msk [vmem:[#allocation3 + $0x18] sm:$0xff] %vm1534_vm8, %v1445_v53  ;;  %v1451_v56 = vpop.permute.xlu0 %1450 }
 0x1ef   : > { %1661 = vrot.lane.b32.xlu1 %v1582_v51, %s5947_s6  ;;  %1541 = vst.msk [vmem:[#allocation3 + $0x30] sm:$0xff] %vm1534_vm8, %v1451_v56 }
 0x1f0   : > { %1663 = vrot.lane.b32.xlu0 %v1583_v35, %s5947_s6 }
 0x1f1   : > { %v1449_v11 = vpop.permute.xlu1 %1448 }
 0x1f2   : > { %1540 = vst.msk [vmem:[#allocation3 + $0x28] sm:$0xff] %vm1534_vm8, %v1449_v11  ;;  %v1455_v15 = vpop.permute.xlu0 %1454 }
 0x1f3   : > { %1854 = vrot.lane.b32.xlu1 %v1775_v63, %s5948_s12  ;;  %1543 = vst.msk [vmem:[#allocation3 + $0x40] sm:$0xff] %vm1534_vm8, %v1455_v15 }
 0x1f4   : > { %1856 = vrot.lane.b32.xlu0 %v1776_v14, %s5948_s12 }
 0x1f5   : > { %v1453_v19 = vpop.permute.xlu1 %1452 }
 0x1f6   : > { %1542 = vst.msk [vmem:[#allocation3 + $0x38] sm:$0xff] %vm1534_vm8, %v1453_v19  ;;  %v1459_v34 = vpop.permute.xlu0 %1458 }
 0x1f7   : > { %1665 = vrot.lane.b32.xlu1 %v1584_v18, %s5947_s6  ;;  %1545 = vst.msk [vmem:[#allocation3 + $0x50] sm:$0xff] %vm1534_vm8, %v1459_v34 }
 0x1f8   : > { %1667 = vrot.lane.b32.xlu0 %v1585_v22, %s5947_s6 }
 0x1f9   : > { %v1457_v49 = vpop.permute.xlu1 %1456 }
 0x1fa   : > { %1544 = vst.msk [vmem:[#allocation3 + $0x48] sm:$0xff] %vm1534_vm8, %v1457_v49  ;;  %v1463_v33 = vpop.permute.xlu0 %1462 }
 0x1fb   : > { %1858 = vrot.lane.b32.xlu1 %v1777_v23, %s5948_s12  ;;  %1547 = vst.msk [vmem:[#allocation3 + $0x60] sm:$0xff] %vm1534_vm8, %v1463_v33 }
 0x1fc   : > { %1860 = vrot.lane.b32.xlu0 %v1778_v45, %s5948_s12 }
 0x1fd   : > { %v1461_v47 = vpop.permute.xlu1 %1460 }
 0x1fe   : > { %1546 = vst.msk [vmem:[#allocation3 + $0x58] sm:$0xff] %vm1534_vm8, %v1461_v47  ;;  %v1467_v30 = vpop.permute.xlu0 %1466 }
 0x1ff   : > { %1669 = vrot.lane.b32.xlu1 %v1586_v25, %s5947_s6  ;;  %1549 = vst.msk [vmem:[#allocation3 + $0x70] sm:$0xff] %vm1534_vm8, %v1467_v30 }
 0x200   : > { %1671 = vrot.lane.b32.xlu0 %v1587_v36, %s5947_s6 }
 0x201   : > { %v1465_v32 = vpop.permute.xlu1 %1464 }
 0x202   : > { %1548 = vst.msk [vmem:[#allocation3 + $0x68] sm:$0xff] %vm1534_vm8, %v1465_v32  ;;  %v1471_v39 = vpop.permute.xlu0 %1470 }
 0x203   : > { %1862 = vrot.lane.b32.xlu1 %v1779_v37, %s5948_s12  ;;  %1551 = vst.msk [vmem:[#allocation3 + $0x80] sm:$0xff] %vm1534_vm8, %v1471_v39 }
 0x204   : > { %1864 = vrot.lane.b32.xlu0 %v1780_v0, %s5948_s12 }
 0x205   : > { %v1469_v50 = vpop.permute.xlu1 %1468 }
 0x206   : > { %1550 = vst.msk [vmem:[#allocation3 + $0x78] sm:$0xff] %vm1534_vm8, %v1469_v50  ;;  %v1475_v54 = vpop.permute.xlu0 %1474 }
 0x207   : > { %1673 = vrot.lane.b32.xlu1 %v1588_v38, %s5947_s6  ;;  %1553 = vst.msk [vmem:[#allocation3 + $0x90] sm:$0xff] %vm1534_vm8, %v1475_v54 }
 0x208   : > { %1675 = vrot.lane.b32.xlu0 %v1589_v40, %s5947_s6 }
 0x209   : > { %v1473_v57 = vpop.permute.xlu1 %1472 }
 0x20a   : > { %1552 = vst.msk [vmem:[#allocation3 + $0x88] sm:$0xff] %vm1534_vm8, %v1473_v57  ;;  %v1479_v59 = vpop.permute.xlu0 %1478 }
 0x20b   : > { %1866 = vrot.lane.b32.xlu1 %v1781_v52, %s5948_s12  ;;  %1555 = vst.msk [vmem:[#allocation3 + $0xa0] sm:$0xff] %vm1534_vm8, %v1479_v59 }
 0x20c   : > { %1868 = vrot.lane.b32.xlu0 %v1782_v55, %s5948_s12 }
 0x20d   : > { %v1477_v61 = vpop.permute.xlu1 %1476 }
 0x20e   : > { %1554 = vst.msk [vmem:[#allocation3 + $0x98] sm:$0xff] %vm1534_vm8, %v1477_v61  ;;  %v1483_v1 = vpop.permute.xlu0 %1482 }
 0x20f   : > { %1677 = vrot.lane.b32.xlu1 %v1590_v58, %s5947_s6  ;;  %1557 = vst.msk [vmem:[#allocation3 + $0xb0] sm:$0xff] %vm1534_vm8, %v1483_v1 }
 0x210   : > { %1679 = vrot.lane.b32.xlu0 %v1591_v60, %s5947_s6 }
 0x211   : > { %v1481_v3 = vpop.permute.xlu1 %1480 }
 0x212   : > { %1556 = vst.msk [vmem:[#allocation3 + $0xa8] sm:$0xff] %vm1534_vm8, %v1481_v3  ;;  %v1487_v5 = vpop.permute.xlu0 %1486 }
 0x213   : > { %1870 = vrot.lane.b32.xlu1 %v1783_v62, %s5948_s12  ;;  %1559 = vst.msk [vmem:[#allocation3 + $0xc0] sm:$0xff] %vm1534_vm8, %v1487_v5 }
 0x214   : > { %1872 = vrot.lane.b32.xlu0 %v1784_v2, %s5948_s12 }
 0x215   : > { %v1485_v7 = vpop.permute.xlu1 %1484 }
 0x216   : > { %1558 = vst.msk [vmem:[#allocation3 + $0xb8] sm:$0xff] %vm1534_vm8, %v1485_v7  ;;  %v1491_v9 = vpop.permute.xlu0 %1490 }
 0x217   : > { %1681 = vrot.lane.b32.xlu1 %v1592_v4, %s5947_s6  ;;  %1561 = vst.msk [vmem:[#allocation3 + $0xd0] sm:$0xff] %vm1534_vm8, %v1491_v9 }
 0x218   : > { %1683 = vrot.lane.b32.xlu0 %v1593_v6, %s5947_s6 }
 0x219   : > { %v1489_v12 = vpop.permute.xlu1 %1488 }
 0x21a   : > { %1560 = vst.msk [vmem:[#allocation3 + $0xc8] sm:$0xff] %vm1534_vm8, %v1489_v12  ;;  %v1495_v16 = vpop.permute.xlu0 %1494 }
 0x21b   : > { %1874 = vrot.lane.b32.xlu1 %v1785_v8, %s5948_s12  ;;  %1563 = vst.msk [vmem:[#allocation3 + $0xe0] sm:$0xff] %vm1534_vm8, %v1495_v16 }
 0x21c   : > { %1876 = vrot.lane.b32.xlu0 %v1786_v10, %s5948_s12 }
 0x21d   : > { %v1493_v20 = vpop.permute.xlu1 %1492 }
 0x21e   : > { %1562 = vst.msk [vmem:[#allocation3 + $0xd8] sm:$0xff] %vm1534_vm8, %v1493_v20  ;;  %v1499_v17 = vpop.permute.xlu0 %1498 }
 0x21f   : > { %1685 = vrot.lane.b32.xlu1 %v1594_v13, %s5947_s6  ;;  %1565 = vst.msk [vmem:[#allocation3 + $0xf0] sm:$0xff] %vm1534_vm8, %v1499_v17 }
 0x220   : > { %1687 = vrot.lane.b32.xlu0 %v6772_v29, %s5947_s6 }
 0x221   : > { %v1497_v24 = vpop.permute.xlu1 %1496 }
 0x222   : > { %1564 = vst.msk [vmem:[#allocation3 + $0xe8] sm:$0xff] %vm1534_vm8, %v1497_v24  ;;  %v1632_v21 = vpop.permute.xlu0 %1631  ;;  %v1597_v24 = vld [vmem:[#allocation2 + $0x199] sm:$0xff] }
 0x223   : > { %1878 = vrot.lane.b32.xlu1 %v1787_v41, %s5948_s12  ;;  %1728 = vst.msk [vmem:[#allocation3] sm:$0xff] %vm1727_vm9, %v1632_v21  ;;  %v1598_v21 = vld [vmem:[#allocation2 + $0x1a1] sm:$0xff] }
 0x224   : > { %1880 = vrot.lane.b32.xlu0 %v6872_v26, %s5948_s12 }
 0x225   : > { %v1501_v48 = vpop.permute.xlu1 %1500 }
 0x226   : > { %1566 = vst.msk [vmem:[#allocation3 + $0xf8] sm:$0xff] %vm1534_vm8, %v1501_v48  ;;  %v1636_v28 = vpop.permute.xlu0 %1635  ;;  %v8688_v48 = vmov 0.0   ;;  %vm5369_vm8 = vcmask 1042434  }
 0x227   : > { %1689 = vrot.lane.b32.xlu1 %v6783_v27, %s5947_s6  ;;  %1730 = vst.msk [vmem:[#allocation3 + $0x10] sm:$0xff] %vm1727_vm9, %v1636_v28 }
 0x228   : > { %2361 = vst.msk [vmem:[#allocation4 + $0x20] sm:$0xff] %vm2355_vm12, %v8688_v48  ;;  %2356 = vst.msk [vmem:[#allocation4] sm:$0xff] %vm2355_vm12, %v8688_v48  ;;  %1691 = vrot.lane.b32.xlu0 %v1597_v24, %s5947_s6 }
 0x229   : > { %v1634_v29 = vpop.permute.xlu1 %1633  ;;  %2362 = vst.msk [vmem:[#allocation4 + $0x28] sm:$0x3] %vm2358_vm13, %v8688_v48  ;;  %2359 = vst.msk [vmem:[#allocation4 + $0x10] sm:$0x3] %vm2358_vm13, %v8688_v48 }
 0x22a   : > { %1729 = vst.msk [vmem:[#allocation3 + $0x8] sm:$0xff] %vm1727_vm9, %v1634_v29  ;;  %v1827_v42 = vpop.permute.xlu0 %1826 }
 0x22b   : > { %1882 = vrot.lane.b32.xlu1 %v6883_v31, %s5948_s12  ;;  %1922 = vst.msk [vmem:[#allocation3 + $0x8] sm:$0xff] %vm1920_vm10, %v1827_v42 }
 0x22c   : > { %2357 = vst.msk [vmem:[#allocation4 + $0x8] sm:$0xff] %vm2355_vm12, %v8688_v48  ;;  %2360 = vst.msk [vmem:[#allocation4 + $0x18] sm:$0xff] %vm2355_vm12, %v8688_v48 }
 0x22d   : > { %v1825_v43 = vpop.permute.xlu1 %1824  ;;  %2363 = vst.msk [vmem:[#allocation4 + $0x30] sm:$0xff] %vm2355_vm12, %v8688_v48  ;;  %2364 = vst.msk [vmem:[#allocation4 + $0x38] sm:$0xff] %vm2355_vm12, %v8688_v48 }
 0x22e   : > { %1921 = vst.msk [vmem:[#allocation3] sm:$0xff] %vm1920_vm10, %v1825_v43  ;;  %v1829_v26 = vpop.permute.xlu0 %1828  ;;  %v1790_v43 = vld [vmem:[#allocation2 + $0x19a] sm:$0xff] }
 0x22f   : > { %1923 = vst.msk [vmem:[#allocation3 + $0x10] sm:$0xff] %vm1920_vm10, %v1829_v26  ;;  %1693 = vrot.lane.b32.xlu1 %v1598_v21, %s5947_s6  ;;  %v1791_v26 = vld [vmem:[#allocation2 + $0x1a2] sm:$0xff]  ;;  %1884 = vrot.lane.b32.xlu0 %v1790_v43, %s5948_s12 }
 0x230   : > { %2365 = vst.msk [vmem:[#allocation4 + $0x40] sm:$0x3] %vm2358_vm13, %v8688_v48  ;;  %2368 = vst.msk [vmem:[#allocation4 + $0x58] sm:$0x3] %vm2358_vm13, %v8688_v48 }
 0x231   : > { %v1638_v27 = vpop.permute.xlu1 %1637  ;;  %2366 = vst.msk [vmem:[#allocation4 + $0x48] sm:$0xff] %vm2355_vm12, %v8688_v48  ;;  %2367 = vst.msk [vmem:[#allocation4 + $0x50] sm:$0xff] %vm2355_vm12, %v8688_v48 }
 0x232   : > { %1731 = vst.msk [vmem:[#allocation3 + $0x18] sm:$0xff] %vm1727_vm9, %v1638_v27  ;;  %v1640_v44 = vpop.permute.xlu0 %1639  ;;  %v1954_v46 = vld [vmem:[#allocation3 + $0x8] sm:$0xff] }
 0x233   : > { %1732 = vst.msk [vmem:[#allocation3 + $0x20] sm:$0xff] %vm1727_vm9, %v1640_v44  ;;  %1886 = vrot.lane.b32.xlu1 %v1791_v26, %s5948_s12 }
 0x234   : > { %2369 = vst.msk [vmem:[#allocation4 + $0x60] sm:$0xff] %vm2355_vm12, %v8688_v48  ;;  %2370 = vst.msk [vmem:[#allocation4 + $0x68] sm:$0xff] %vm2355_vm12, %v8688_v48 }
 0x235   : > { %v1831_v51 = vpop.permute.xlu1 %1830  ;;  %v1953_v53 = vld [vmem:[#allocation3] sm:$0xff]  ;;  %2371 = vst.msk [vmem:[#allocation4 + $0x70] sm:$0x3] %vm2358_vm13, %v8688_v48  ;;  %2374 = vst.msk [vmem:[#allocation4 + $0x88] sm:$0x3] %vm2358_vm13, %v8688_v48 }
 0x236   : > { %1924 = vst.msk [vmem:[#allocation3 + $0x18] sm:$0xff] %vm1920_vm10, %v1831_v51  ;;  %5691 = vmatprep.mubr.msk.f32.mxu0 %vm1997_vm11, %v1953_v53  ;;  %v1833_v31 = vpop.permute.xlu0 %1832  ;;  %v1955_v35 = vld [vmem:[#allocation3 + $0x10] sm:$0xff]  ;;  %v2508_v51 = vld [vmem:[#allocation4 + $0x1] sm:$0xff] }
 0x237   : > { %5692 = vmatmul.mubr.msk.f32.vlgmr.msra.gmra.mxu0 %vm1997_vm11, %v1954_v46  ;;  %1925 = vst.msk [vmem:[#allocation3 + $0x20] sm:$0xff] %vm1920_vm10, %v1833_v31  ;;  %v2509_v53 = vld [vmem:[#allocation4 + $0x9] sm:$0xff]  ;;  %2572 = vrot.lane.b32.xlu0 %v2508_v51, %s5942_s11 }
 0x238   : > { %5694 = vmatprep.mubr.msk.f32.mxu0 %vm1997_vm11, %v1955_v35  ;;  %2372 = vst.msk [vmem:[#allocation4 + $0x78] sm:$0xff] %vm2355_vm12, %v8688_v48  ;;  %2373 = vst.msk [vmem:[#allocation4 + $0x80] sm:$0xff] %vm2355_vm12, %v8688_v48  ;;  %2574 = vrot.lane.b32.xlu1 %v2509_v53, %s5942_s11 }
 0x239   : > { %v1642_v56 = vpop.permute.xlu1 %1641  ;;  %2375 = vst.msk [vmem:[#allocation4 + $0x90] sm:$0xff] %vm2355_vm12, %v8688_v48  ;;  %2376 = vst.msk [vmem:[#allocation4 + $0x98] sm:$0xff] %vm2355_vm12, %v8688_v48 }
 0x23a   : > { %1733 = vst.msk [vmem:[#allocation3 + $0x28] sm:$0xff] %vm1727_vm9, %v1642_v56  ;;  %v1644_v63 = vpop.permute.xlu0 %1643 }
 0x23b   : > { %1734 = vst.msk [vmem:[#allocation3 + $0x30] sm:$0xff] %vm1727_vm9, %v1644_v63 }
 0x23c   : > { %2377 = vst.msk [vmem:[#allocation4 + $0xa0] sm:$0x3] %vm2358_vm13, %v8688_v48  ;;  %2380 = vst.msk [vmem:[#allocation4 + $0xb8] sm:$0x3] %vm2358_vm13, %v8688_v48 }
 0x23d   : > { %v1835_v11 = vpop.permute.xlu1 %1834  ;;  %v1956_v14 = vld [vmem:[#allocation3 + $0x18] sm:$0xff]  ;;  %2378 = vst.msk [vmem:[#allocation4 + $0xa8] sm:$0xff] %vm2355_vm12, %v8688_v48  ;;  %2379 = vst.msk [vmem:[#allocation4 + $0xb0] sm:$0xff] %vm2355_vm12, %v8688_v48 }
 0x23e   : > { %1926 = vst.msk [vmem:[#allocation3 + $0x28] sm:$0xff] %vm1920_vm10, %v1835_v11  ;;  %5695 = vmatmul.mubr.msk.f32.gmra.mxu0 %vm1997_vm11, %v1956_v14  ;;  %v1837_v15 = vpop.permute.xlu0 %1836  ;;  %v1957_v18 = vld [vmem:[#allocation3 + $0x20] sm:$0xff] }
 0x23f   : > { %1927 = vst.msk [vmem:[#allocation3 + $0x30] sm:$0xff] %vm1920_vm10, %v1837_v15  ;;  %5697 = vmatprep.mubr.msk.f32.mxu0 %vm1997_vm11, %v1957_v18 }
 0x240   : > { %2381 = vst.msk [vmem:[#allocation4 + $0xc0] sm:$0xff] %vm2355_vm12, %v8688_v48  ;;  %2382 = vst.msk [vmem:[#allocation4 + $0xc8] sm:$0xff] %vm2355_vm12, %v8688_v48 }
 0x241   : > { %v1646_v19 = vpop.permute.xlu1 %1645  ;;  %2383 = vst.msk [vmem:[#allocation4 + $0xd0] sm:$0x3] %vm2358_vm13, %v8688_v48  ;;  %2386 = vst.msk [vmem:[#allocation4 + $0xe8] sm:$0x3] %vm2358_vm13, %v8688_v48 }
 0x242   : > { %1735 = vst.msk [vmem:[#allocation3 + $0x38] sm:$0xff] %vm1727_vm9, %v1646_v19  ;;  %v1648_v22 = vpop.permute.xlu0 %1647 }
 0x243   : > { %1736 = vst.msk [vmem:[#allocation3 + $0x40] sm:$0xff] %vm1727_vm9, %v1648_v22 }
 0x244   : > { %2384 = vst.msk [vmem:[#allocation4 + $0xd8] sm:$0xff] %vm2355_vm12, %v8688_v48  ;;  %2385 = vst.msk [vmem:[#allocation4 + $0xe0] sm:$0xff] %vm2355_vm12, %v8688_v48 }
 0x245   : > { %v1839_v34 = vpop.permute.xlu1 %1838  ;;  %v1958_v23 = vld [vmem:[#allocation3 + $0x28] sm:$0xff]  ;;  %2387 = vst.msk [vmem:[#allocation4 + $0xf0] sm:$0xff] %vm2355_vm12, %v8688_v48  ;;  %2388 = vst.msk [vmem:[#allocation4 + $0xf8] sm:$0xff] %vm2355_vm12, %v8688_v48 }
 0x246   : > { %1928 = vst.msk [vmem:[#allocation3 + $0x38] sm:$0xff] %vm1920_vm10, %v1839_v34  ;;  %5698 = vmatmul.mubr.msk.f32.gmra.mxu0 %vm1997_vm11, %v1958_v23  ;;  %v1841_v49 = vpop.permute.xlu0 %1840  ;;  %v1959_v45 = vld [vmem:[#allocation3 + $0x30] sm:$0xff] }
 0x247   : > { %1929 = vst.msk [vmem:[#allocation3 + $0x40] sm:$0xff] %vm1920_vm10, %v1841_v49  ;;  %5700 = vmatprep.mubr.msk.f32.mxu0 %vm1997_vm11, %v1959_v45 }
 0x248   : > { %2389 = vst.msk [vmem:[#allocation4 + $0x100] sm:$0x3] %vm2358_vm13, %v8688_v48  ;;  %2392 = vst.msk [vmem:[#allocation4 + $0x118] sm:$0x3] %vm2358_vm13, %v8688_v48 }
 0x249   : > { %v1650_v33 = vpop.permute.xlu1 %1649  ;;  %2390 = vst.msk [vmem:[#allocation4 + $0x108] sm:$0xff] %vm2355_vm12, %v8688_v48  ;;  %2391 = vst.msk [vmem:[#allocation4 + $0x110] sm:$0xff] %vm2355_vm12, %v8688_v48 }
 0x24a   : > { %1737 = vst.msk [vmem:[#allocation3 + $0x48] sm:$0xff] %vm1727_vm9, %v1650_v33  ;;  %v1652_v25 = vpop.permute.xlu0 %1651 }
 0x24b   : > { %1738 = vst.msk [vmem:[#allocation3 + $0x50] sm:$0xff] %vm1727_vm9, %v1652_v25 }
 0x24c   : > { %2393 = vst.msk [vmem:[#allocation4 + $0x120] sm:$0xff] %vm2355_vm12, %v8688_v48  ;;  %2394 = vst.msk [vmem:[#allocation4 + $0x128] sm:$0xff] %vm2355_vm12, %v8688_v48 }
 0x24d   : > { %v1843_v47 = vpop.permute.xlu1 %1842  ;;  %v1960_v36 = vld [vmem:[#allocation3 + $0x38] sm:$0xff]  ;;  %2395 = vst.msk [vmem:[#allocation4 + $0x130] sm:$0x3] %vm2358_vm13, %v8688_v48  ;;  %2398 = vst.msk [vmem:[#allocation4 + $0x148] sm:$0x3] %vm2358_vm13, %v8688_v48 }
 0x24e   : > { %1930 = vst.msk [vmem:[#allocation3 + $0x48] sm:$0xff] %vm1920_vm10, %v1843_v47  ;;  %5701 = vmatmul.mubr.msk.f32.gmra.mxu0 %vm1997_vm11, %v1960_v36  ;;  %v1845_v30 = vpop.permute.xlu0 %1844  ;;  %v1961_v37 = vld [vmem:[#allocation3 + $0x40] sm:$0xff] }
 0x24f   : > { %1931 = vst.msk [vmem:[#allocation3 + $0x50] sm:$0xff] %vm1920_vm10, %v1845_v30  ;;  %5703 = vmatprep.mubr.msk.f32.mxu0 %vm1997_vm11, %v1961_v37 }
 0x250   : > { %2396 = vst.msk [vmem:[#allocation4 + $0x138] sm:$0xff] %vm2355_vm12, %v8688_v48  ;;  %2397 = vst.msk [vmem:[#allocation4 + $0x140] sm:$0xff] %vm2355_vm12, %v8688_v48 }
 0x251   : > { %v1654_v32 = vpop.permute.xlu1 %1653  ;;  %2399 = vst.msk [vmem:[#allocation4 + $0x150] sm:$0xff] %vm2355_vm12, %v8688_v48  ;;  %2400 = vst.msk [vmem:[#allocation4 + $0x158] sm:$0xff] %vm2355_vm12, %v8688_v48 }
 0x252   : > { %1739 = vst.msk [vmem:[#allocation3 + $0x58] sm:$0xff] %vm1727_vm9, %v1654_v32  ;;  %v1656_v0 = vpop.permute.xlu0 %1655 }
 0x253   : > { %1740 = vst.msk [vmem:[#allocation3 + $0x60] sm:$0xff] %vm1727_vm9, %v1656_v0 }
 0x254   : > { %2401 = vst.msk [vmem:[#allocation4 + $0x160] sm:$0x3] %vm2358_vm13, %v8688_v48  ;;  %2404 = vst.msk [vmem:[#allocation4 + $0x178] sm:$0x3] %vm2358_vm13, %v8688_v48 }
 0x255   : > { %v1847_v39 = vpop.permute.xlu1 %1846  ;;  %v1962_v38 = vld [vmem:[#allocation3 + $0x48] sm:$0xff]  ;;  %2402 = vst.msk [vmem:[#allocation4 + $0x168] sm:$0xff] %vm2355_vm12, %v8688_v48  ;;  %2403 = vst.msk [vmem:[#allocation4 + $0x170] sm:$0xff] %vm2355_vm12, %v8688_v48 }
 0x256   : > { %1932 = vst.msk [vmem:[#allocation3 + $0x58] sm:$0xff] %vm1920_vm10, %v1847_v39  ;;  %5704 = vmatmul.mubr.msk.f32.gmra.mxu0 %vm1997_vm11, %v1962_v38  ;;  %v1849_v50 = vpop.permute.xlu0 %1848  ;;  %v1963_v40 = vld [vmem:[#allocation3 + $0x50] sm:$0xff] }
 0x257   : > { %1933 = vst.msk [vmem:[#allocation3 + $0x60] sm:$0xff] %vm1920_vm10, %v1849_v50  ;;  %5706 = vmatprep.mubr.msk.f32.mxu0 %vm1997_vm11, %v1963_v40 }
 0x258   : > { %2405 = vst.msk [vmem:[#allocation4 + $0x180] sm:$0xff] %vm2355_vm12, %v8688_v48  ;;  %2406 = vst.msk [vmem:[#allocation4 + $0x188] sm:$0xff] %vm2355_vm12, %v8688_v48 }
 0x259   : > { %v1658_v54 = vpop.permute.xlu1 %1657  ;;  %2407 = vst.msk [vmem:[#allocation4 + $0x190] sm:$0x3] %vm2358_vm13, %v8688_v48  ;;  %2410 = vst.msk [vmem:[#allocation4 + $0x1a8] sm:$0x3] %vm2358_vm13, %v8688_v48 }
 0x25a   : > { %1741 = vst.msk [vmem:[#allocation3 + $0x68] sm:$0xff] %vm1727_vm9, %v1658_v54  ;;  %v1660_v52 = vpop.permute.xlu0 %1659  ;;  %v2444_v54 = vld [vmem:[#allocation4] sm:$0xff] }
 0x25b   : > { %1742 = vst.msk [vmem:[#allocation3 + $0x70] sm:$0xff] %vm1727_vm9, %v1660_v52  ;;  %v2445_v52 = vld [vmem:[#allocation4 + $0x8] sm:$0xff] }
 0x25c   : > { %2408 = vst.msk [vmem:[#allocation4 + $0x198] sm:$0xff] %vm2355_vm12, %v8688_v48  ;;  %2409 = vst.msk [vmem:[#allocation4 + $0x1a0] sm:$0xff] %vm2355_vm12, %v8688_v48 }
 0x25d   : > { %v1851_v57 = vpop.permute.xlu1 %1850  ;;  %v1964_v55 = vld [vmem:[#allocation3 + $0x58] sm:$0xff]  ;;  %2476 = vst.msk [vmem:[#allocation5] sm:$0xff] %vm2355_vm12, %v2444_v54  ;;  %2477 = vst.msk [vmem:[#allocation5 + $0x8] sm:$0xff] %vm2355_vm12, %v2445_v52 }
 0x25e   : > { %1934 = vst.msk [vmem:[#allocation3 + $0x68] sm:$0xff] %vm1920_vm10, %v1851_v57  ;;  %5707 = vmatmul.mubr.msk.f32.gmra.mxu0 %vm1997_vm11, %v1964_v55  ;;  %v1853_v59 = vpop.permute.xlu0 %1852  ;;  %v1965_v58 = vld [vmem:[#allocation3 + $0x60] sm:$0xff]  ;;  %v7331_v55 = vld [vmem:[%s8590_s2] ss:$0 sm:$0xff] }
 0x25f   : > { %1935 = vst.msk [vmem:[#allocation3 + $0x70] sm:$0xff] %vm1920_vm10, %v1853_v59  ;;  %5709 = vmatprep.mubr.msk.f32.mxu0 %vm1997_vm11, %v1965_v58 }
 0x261   : > { %v1662_v61 = vpop.permute.xlu1 %1661 }
 0x262   : > { %1743 = vst.msk [vmem:[#allocation3 + $0x78] sm:$0xff] %vm1727_vm9, %v1662_v61  ;;  %v1664_v60 = vpop.permute.xlu0 %1663 }
 0x263   : > { %1744 = vst.msk [vmem:[#allocation3 + $0x80] sm:$0xff] %vm1727_vm9, %v1664_v60 }
 0x265   : > { %v1855_v1 = vpop.permute.xlu1 %1854  ;;  %v1966_v62 = vld [vmem:[#allocation3 + $0x68] sm:$0xff] }
 0x266   : > { %1936 = vst.msk [vmem:[#allocation3 + $0x78] sm:$0xff] %vm1920_vm10, %v1855_v1  ;;  %5710 = vmatmul.mubr.msk.f32.gmra.mxu0 %vm1997_vm11, %v1966_v62  ;;  %v1857_v3 = vpop.permute.xlu0 %1856  ;;  %v1967_v2 = vld [vmem:[#allocation3 + $0x70] sm:$0xff] }
 0x267   : > { %1937 = vst.msk [vmem:[#allocation3 + $0x80] sm:$0xff] %vm1920_vm10, %v1857_v3  ;;  %5712 = vmatprep.mubr.msk.f32.mxu0 %vm1997_vm11, %v1967_v2 }
 0x269   : > { %v1666_v5 = vpop.permute.xlu1 %1665 }
 0x26a   : > { %1745 = vst.msk [vmem:[#allocation3 + $0x88] sm:$0xff] %vm1727_vm9, %v1666_v5  ;;  %v1668_v4 = vpop.permute.xlu0 %1667 }
 0x26b   : > { %1746 = vst.msk [vmem:[#allocation3 + $0x90] sm:$0xff] %vm1727_vm9, %v1668_v4 }
 0x26d   : > { %v1859_v7 = vpop.permute.xlu1 %1858  ;;  %v1968_v6 = vld [vmem:[#allocation3 + $0x78] sm:$0xff] }
 0x26e   : > { %1938 = vst.msk [vmem:[#allocation3 + $0x88] sm:$0xff] %vm1920_vm10, %v1859_v7  ;;  %5713 = vmatmul.mubr.msk.f32.gmra.mxu0 %vm1997_vm11, %v1968_v6  ;;  %v1861_v9 = vpop.permute.xlu0 %1860  ;;  %v1969_v8 = vld [vmem:[#allocation3 + $0x80] sm:$0xff] }
 0x26f   : > { %1939 = vst.msk [vmem:[#allocation3 + $0x90] sm:$0xff] %vm1920_vm10, %v1861_v9  ;;  %5715 = vmatprep.mubr.msk.f32.mxu0 %vm1997_vm11, %v1969_v8 }
 0x271   : > { %v1670_v12 = vpop.permute.xlu1 %1669 }
 0x272   : > { %1747 = vst.msk [vmem:[#allocation3 + $0x98] sm:$0xff] %vm1727_vm9, %v1670_v12  ;;  %v1672_v10 = vpop.permute.xlu0 %1671 }
 0x273   : > { %1748 = vst.msk [vmem:[#allocation3 + $0xa0] sm:$0xff] %vm1727_vm9, %v1672_v10 }
 0x275   : > { %v1863_v16 = vpop.permute.xlu1 %1862  ;;  %v1970_v13 = vld [vmem:[#allocation3 + $0x88] sm:$0xff] }
 0x276   : > { %1940 = vst.msk [vmem:[#allocation3 + $0x98] sm:$0xff] %vm1920_vm10, %v1863_v16  ;;  %5716 = vmatmul.mubr.msk.f32.gmra.mxu0 %vm1997_vm11, %v1970_v13  ;;  %v1865_v20 = vpop.permute.xlu0 %1864  ;;  %v1971_v17 = vld [vmem:[#allocation3 + $0x90] sm:$0xff] }
 0x277   : > { %1941 = vst.msk [vmem:[#allocation3 + $0xa0] sm:$0xff] %vm1920_vm10, %v1865_v20  ;;  %5718 = vmatprep.mubr.msk.f32.mxu0 %vm1997_vm11, %v1971_v17 }
 0x279   : > { %v1674_v41 = vpop.permute.xlu1 %1673 }
 0x27a   : > { %1749 = vst.msk [vmem:[#allocation3 + $0xa8] sm:$0xff] %vm1727_vm9, %v1674_v41  ;;  %v1676_v28 = vpop.permute.xlu0 %1675 }
 0x27b   : > { %1750 = vst.msk [vmem:[#allocation3 + $0xb0] sm:$0xff] %vm1727_vm9, %v1676_v28 }
 0x27d   : > { %v1867_v29 = vpop.permute.xlu1 %1866  ;;  %v1972_v42 = vld [vmem:[#allocation3 + $0x98] sm:$0xff] }
 0x27e   : > { %1942 = vst.msk [vmem:[#allocation3 + $0xa8] sm:$0xff] %vm1920_vm10, %v1867_v29  ;;  %5719 = vmatmul.mubr.msk.f32.gmra.mxu0 %vm1997_vm11, %v1972_v42  ;;  %v1869_v27 = vpop.permute.xlu0 %1868  ;;  %v1973_v44 = vld [vmem:[#allocation3 + $0xa0] sm:$0xff] }
 0x27f   : > { %1943 = vst.msk [vmem:[#allocation3 + $0xb0] sm:$0xff] %vm1920_vm10, %v1869_v27  ;;  %5721 = vmatprep.mubr.msk.f32.mxu0 %vm1997_vm11, %v1973_v44 }
 0x281   : > { %v1678_v46 = vpop.permute.xlu1 %1677 }
 0x282   : > { %1751 = vst.msk [vmem:[#allocation3 + $0xb8] sm:$0xff] %vm1727_vm9, %v1678_v46  ;;  %v1680_v31 = vpop.permute.xlu0 %1679 }
 0x283   : > { %1752 = vst.msk [vmem:[#allocation3 + $0xc0] sm:$0xff] %vm1727_vm9, %v1680_v31 }
 0x285   : > { %v1871_v35 = vpop.permute.xlu1 %1870  ;;  %v1974_v56 = vld [vmem:[#allocation3 + $0xa8] sm:$0xff] }
 0x286   : > { %1944 = vst.msk [vmem:[#allocation3 + $0xb8] sm:$0xff] %vm1920_vm10, %v1871_v35  ;;  %5722 = vmatmul.mubr.msk.f32.gmra.mxu0 %vm1997_vm11, %v1974_v56  ;;  %v1873_v63 = vpop.permute.xlu0 %1872  ;;  %v1975_v11 = vld [vmem:[#allocation3 + $0xb0] sm:$0xff] }
 0x287   : > { %1945 = vst.msk [vmem:[#allocation3 + $0xc0] sm:$0xff] %vm1920_vm10, %v1873_v63  ;;  %5724 = vmatprep.mubr.msk.f32.mxu0 %vm1997_vm11, %v1975_v11 }
 0x289   : > { %v1682_v14 = vpop.permute.xlu1 %1681 }
 0x28a   : > { %1753 = vst.msk [vmem:[#allocation3 + $0xc8] sm:$0xff] %vm1727_vm9, %v1682_v14  ;;  %v1684_v15 = vpop.permute.xlu0 %1683 }
 0x28b   : > { %1754 = vst.msk [vmem:[#allocation3 + $0xd0] sm:$0xff] %vm1727_vm9, %v1684_v15 }
 0x28d   : > { %v1875_v18 = vpop.permute.xlu1 %1874  ;;  %v1976_v19 = vld [vmem:[#allocation3 + $0xb8] sm:$0xff] }
 0x28e   : > { %1946 = vst.msk [vmem:[#allocation3 + $0xc8] sm:$0xff] %vm1920_vm10, %v1875_v18  ;;  %5725 = vmatmul.mubr.msk.f32.gmra.mxu0 %vm1997_vm11, %v1976_v19  ;;  %v1877_v22 = vpop.permute.xlu0 %1876  ;;  %v1977_v34 = vld [vmem:[#allocation3 + $0xc0] sm:$0xff] }
 0x28f   : > { %1947 = vst.msk [vmem:[#allocation3 + $0xd0] sm:$0xff] %vm1920_vm10, %v1877_v22  ;;  %5727 = vmatprep.mubr.msk.f32.mxu0 %vm1997_vm11, %v1977_v34 }
 0x291   : > { %v1686_v23 = vpop.permute.xlu1 %1685 }
 0x292   : > { %1755 = vst.msk [vmem:[#allocation3 + $0xd8] sm:$0xff] %vm1727_vm9, %v1686_v23  ;;  %v1688_v49 = vpop.permute.xlu0 %1687 }
 0x293   : > { %1756 = vst.msk [vmem:[#allocation3 + $0xe0] sm:$0xff] %vm1727_vm9, %v1688_v49 }
 0x295   : > { %v1879_v45 = vpop.permute.xlu1 %1878  ;;  %v1978_v33 = vld [vmem:[#allocation3 + $0xc8] sm:$0xff] }
 0x296   : > { %1948 = vst.msk [vmem:[#allocation3 + $0xd8] sm:$0xff] %vm1920_vm10, %v1879_v45  ;;  %5728 = vmatmul.mubr.msk.f32.gmra.mxu0 %vm1997_vm11, %v1978_v33  ;;  %v1881_v25 = vpop.permute.xlu0 %1880  ;;  %v1979_v47 = vld [vmem:[#allocation3 + $0xd0] sm:$0xff] }
 0x297   : > { %1949 = vst.msk [vmem:[#allocation3 + $0xe0] sm:$0xff] %vm1920_vm10, %v1881_v25  ;;  %5730 = vmatprep.mubr.msk.f32.mxu0 %vm1997_vm11, %v1979_v47 }
 0x299   : > { %v1690_v36 = vpop.permute.xlu1 %1689 }
 0x29a   : > { %1757 = vst.msk [vmem:[#allocation3 + $0xe8] sm:$0xff] %vm1727_vm9, %v1690_v36  ;;  %v1692_v39 = vpop.permute.xlu0 %1691 }
 0x29b   : > { %1758 = vst.msk [vmem:[#allocation3 + $0xf0] sm:$0xff] %vm1727_vm9, %v1692_v39 }
 0x29d   : > { %v1883_v30 = vpop.permute.xlu1 %1882  ;;  %v1980_v37 = vld [vmem:[#allocation3 + $0xd8] sm:$0xff] }
 0x29e   : > { %1950 = vst.msk [vmem:[#allocation3 + $0xe8] sm:$0xff] %vm1920_vm10, %v1883_v30  ;;  %5731 = vmatmul.mubr.msk.f32.gmra.mxu0 %vm1997_vm11, %v1980_v37  ;;  %v1981_v32 = vld [vmem:[#allocation3 + $0xe0] sm:$0xff] }
 0x29f   : > { %5733 = vmatprep.mubr.msk.f32.mxu0 %vm1997_vm11, %v1981_v32 }
 0x2a1   : > { %v1694_v38 = vpop.permute.xlu1 %1693  ;;  %v1885_v50 = vpop.permute.xlu0 %1884 }
 0x2a2   : > { %1759 = vst.msk [vmem:[#allocation3 + $0xf8] sm:$0xff] %vm1727_vm9, %v1694_v38  ;;  %vm5371_vm9 = vcmask 1043459  }
 0x2a3   : > { %1951 = vst.msk [vmem:[#allocation3 + $0xf0] sm:$0xff] %vm1920_vm10, %v1885_v50 }
 0x2a5   : > { %v1982_v0 = vld [vmem:[#allocation3 + $0xe8] sm:$0xff]  ;;  %v1887_v40 = vpop.permute.xlu1 %1886 }
 0x2a6   : > { %5734 = vmatmul.mubr.msk.f32.gmra.mxu0 %vm1997_vm11, %v1982_v0  ;;  %1952 = vst.msk [vmem:[#allocation3 + $0xf8] sm:$0xff] %vm1920_vm10, %v1887_v40  ;;  %vm5373_vm10 = vcmask 1044484  }
 0x2a9   : > { %v2573_v57 = vpop.permute.xlu0 %2572 }
 0x2aa   : > { %2669 = vst.msk [vmem:[#allocation5] sm:$0xff] %vm2668_vm14, %v2573_v57  ;;  %v2575_v59 = vpop.permute.xlu1 %2574 }
 0x2ab   : > { %2670 = vst.msk [vmem:[#allocation5 + $0x8] sm:$0xff] %vm2668_vm14, %v2575_v59 }
 0x2f7   : > { %v5693_v58 = vpop.f32.mrf.mxu0 }
 0x2f8   : > { %v2170_v61 = vadd.f32 %v5693_v58, %v7331_v55  ;;  %v1983_v58 = vld [vmem:[#allocation3 + $0xf0] sm:$0xff] }
 0x2f9   : > { %v2164_v60 = vpop.f32.mrf.mxu0  ;;  %5736 = vmatprep.mubr.msk.f32.mxu0 %vm1997_vm11, %v1983_v58 }
 0x2fa   : > { %v2324_v1 = vmax.f32 %v2170_v61, 0.0  ;;  %v2165_v62 = vadd.f32 %v7331_v55, %v2164_v60 }
 0x2fc   : > { %2413 = vst.msk [vmem:[#allocation4 + $0x21] sm:$0xff] %vm2355_vm12, %v2324_v1  ;;  %v2323_v3 = vmax.f32 %v2165_v62, 0.0 }
 0x2fe   : > { %2412 = vst.msk [vmem:[#allocation4 + $0x19] sm:$0xff] %vm2355_vm12, %v2323_v3  ;;  %v5696_v2 = vpop.f32.mrf.mxu0  ;;  %v1984_v3 = vld [vmem:[#allocation3 + $0xf8] sm:$0xff] }
 0x2ff   : > { %v2180_v5 = vadd.f32 %v5696_v2, %v7331_v55  ;;  %5737 = vmatmul.mubr.msk.f32.gmra.mxu0 %vm1997_vm11, %v1984_v3  ;;  %vm5375_vm11 = vcmask 1045509  }
 0x300   : > { %v2174_v4 = vpop.f32.mrf.mxu0 }
 0x301   : > { %v2326_v7 = vmax.f32 %v2180_v5, 0.0  ;;  %v2175_v6 = vadd.f32 %v7331_v55, %v2174_v4 }
 0x303   : > { %2415 = vst.msk [vmem:[#allocation4 + $0x39] sm:$0xff] %vm2355_vm12, %v2326_v7  ;;  %v2325_v9 = vmax.f32 %v2175_v6, 0.0  ;;  %v2511_v8 = vld [vmem:[#allocation4 + $0x21] sm:$0xff] }
 0x304   : > { %2578 = vrot.lane.b32.xlu1 %v2511_v8, %s5942_s11 }
 0x305   : > { %2414 = vst.msk [vmem:[#allocation4 + $0x31] sm:$0xff] %vm2355_vm12, %v2325_v9  ;;  %v2510_v12 = vld [vmem:[#allocation4 + $0x19] sm:$0xff] }
 0x306   : > { %v7344_v10 = vld [vmem:[#allocation4 + $0x18] sm:$0xff]  ;;  %v7346_v16 = vld [vmem:[#allocation4 + $0x20] sm:$0xff]  ;;  %2576 = vrot.lane.b32.xlu0 %v2510_v12, %s5942_s11  ;;  %v5699_v13 = vpop.f32.mrf.mxu0 }
 0x307   : > { %2478 = vst.msk [vmem:[#allocation5 + $0x10] sm:$0xff] %vm2355_vm12, %v7344_v10  ;;  %2479 = vst.msk [vmem:[#allocation5 + $0x18] sm:$0xff] %vm2355_vm12, %v7346_v16  ;;  %v2190_v20 = vadd.f32 %v5699_v13, %v7331_v55 }
 0x308   : > { %v2184_v17 = vpop.f32.mrf.mxu0 }
 0x309   : > { %v2328_v41 = vmax.f32 %v2190_v20, 0.0  ;;  %v2185_v24 = vadd.f32 %v7331_v55, %v2184_v17 }
 0x30a   : > { %v7355_v21 = vld [vmem:[#allocation4 + $0x39] sm:$0xff] }
 0x30b   : > { %2417 = vst.msk [vmem:[#allocation4 + $0x51] sm:$0xff] %vm2355_vm12, %v2328_v41  ;;  %v2327_v48 = vmax.f32 %v2185_v24, 0.0  ;;  %2582 = vrot.lane.b32.xlu1 %v7355_v21, %s5942_s11 }
 0x30c   : > { %v7360_v28 = vld [vmem:[#allocation4 + $0x31] sm:$0xff] }
 0x30d   : > { %v7362_v29 = vld [vmem:[#allocation4 + $0x38] sm:$0xff]  ;;  %v7364_v42 = vld [vmem:[#allocation4 + $0x30] sm:$0xff]  ;;  %2416 = vst.msk [vmem:[#allocation4 + $0x49] sm:$0xff] %vm2355_vm12, %v2327_v48  ;;  %2580 = vrot.lane.b32.xlu0 %v7360_v28, %s5942_s11 }
 0x30e   : > { %2481 = vst.msk [vmem:[#allocation5 + $0x28] sm:$0xff] %vm2355_vm12, %v7362_v29  ;;  %2480 = vst.msk [vmem:[#allocation5 + $0x20] sm:$0xff] %vm2355_vm12, %v7364_v42  ;;  %v5702_v43 = vpop.f32.mrf.mxu0 }
 0x30f   : > { %v2200_v26 = vadd.f32 %v5702_v43, %v7331_v55 }
 0x310   : > { %v2194_v27 = vpop.f32.mrf.mxu0 }
 0x311   : > { %v2330_v44 = vmax.f32 %v2200_v26, 0.0  ;;  %v2195_v46 = vadd.f32 %v7331_v55, %v2194_v27 }
 0x312   : > { %v7375_v51 = vld [vmem:[#allocation4 + $0x51] sm:$0xff] }
 0x313   : > { %2419 = vst.msk [vmem:[#allocation4 + $0x69] sm:$0xff] %vm2355_vm12, %v2330_v44  ;;  %v2329_v53 = vmax.f32 %v2195_v46, 0.0  ;;  %2586 = vrot.lane.b32.xlu1 %v7375_v51, %s5942_s11 }
 0x314   : > { %v7380_v31 = vld [vmem:[#allocation4 + $0x49] sm:$0xff] }
 0x315   : > { %v7382_v35 = vld [vmem:[#allocation4 + $0x50] sm:$0xff]  ;;  %2418 = vst.msk [vmem:[#allocation4 + $0x61] sm:$0xff] %vm2355_vm12, %v2329_v53  ;;  %2584 = vrot.lane.b32.xlu0 %v7380_v31, %s5942_s11  ;;  %v7389_v56 = vld [vmem:[#allocation4 + $0x48] sm:$0xff] }
 0x316   : > { %2483 = vst.msk [vmem:[#allocation5 + $0x38] sm:$0xff] %vm2355_vm12, %v7382_v35  ;;  %v5705_v63 = vpop.f32.mrf.mxu0  ;;  %2482 = vst.msk [vmem:[#allocation5 + $0x30] sm:$0xff] %vm2355_vm12, %v7389_v56 }
 0x317   : > { %v2210_v11 = vadd.f32 %v5705_v63, %v7331_v55 }
 0x318   : > { %v2204_v14 = vpop.f32.mrf.mxu0 }
 0x319   : > { %v2332_v15 = vmax.f32 %v2210_v11, 0.0  ;;  %v2205_v18 = vadd.f32 %v7331_v55, %v2204_v14 }
 0x31a   : > { %v7395_v19 = vld [vmem:[#allocation4 + $0x69] sm:$0xff] }
 0x31b   : > { %2421 = vst.msk [vmem:[#allocation4 + $0x81] sm:$0xff] %vm2355_vm12, %v2332_v15  ;;  %v2331_v22 = vmax.f32 %v2205_v18, 0.0  ;;  %2590 = vrot.lane.b32.xlu1 %v7395_v19, %s5942_s11 }
 0x31c   : > { %v7400_v34 = vld [vmem:[#allocation4 + $0x61] sm:$0xff] }
 0x31d   : > { %v7402_v23 = vld [vmem:[#allocation4 + $0x68] sm:$0xff]  ;;  %2420 = vst.msk [vmem:[#allocation4 + $0x79] sm:$0xff] %vm2355_vm12, %v2331_v22  ;;  %2588 = vrot.lane.b32.xlu0 %v7400_v34, %s5942_s11  ;;  %v7409_v49 = vld [vmem:[#allocation4 + $0x60] sm:$0xff] }
 0x31e   : > { %2485 = vst.msk [vmem:[#allocation5 + $0x48] sm:$0xff] %vm2355_vm12, %v7402_v23  ;;  %v5708_v45 = vpop.f32.mrf.mxu0  ;;  %2484 = vst.msk [vmem:[#allocation5 + $0x40] sm:$0xff] %vm2355_vm12, %v7409_v49 }
 0x31f   : > { %v2220_v33 = vadd.f32 %v5708_v45, %v7331_v55 }
 0x320   : > { %v2214_v25 = vpop.f32.mrf.mxu0 }
 0x321   : > { %v2334_v47 = vmax.f32 %v2220_v33, 0.0  ;;  %v2215_v36 = vadd.f32 %v7331_v55, %v2214_v25 }
 0x322   : > { %v7415_v30 = vld [vmem:[#allocation4 + $0x81] sm:$0xff] }
 0x323   : > { %2423 = vst.msk [vmem:[#allocation4 + $0x99] sm:$0xff] %vm2355_vm12, %v2334_v47  ;;  %v2333_v37 = vmax.f32 %v2215_v36, 0.0  ;;  %2594 = vrot.lane.b32.xlu1 %v7415_v30, %s5942_s11 }
 0x324   : > { %v7420_v32 = vld [vmem:[#allocation4 + $0x79] sm:$0xff] }
 0x325   : > { %v7422_v0 = vld [vmem:[#allocation4 + $0x80] sm:$0xff]  ;;  %2422 = vst.msk [vmem:[#allocation4 + $0x91] sm:$0xff] %vm2355_vm12, %v2333_v37  ;;  %2592 = vrot.lane.b32.xlu0 %v7420_v32, %s5942_s11  ;;  %v7429_v39 = vld [vmem:[#allocation4 + $0x78] sm:$0xff] }
 0x326   : > { %2487 = vst.msk [vmem:[#allocation5 + $0x58] sm:$0xff] %vm2355_vm12, %v7422_v0  ;;  %v5711_v38 = vpop.f32.mrf.mxu0  ;;  %2486 = vst.msk [vmem:[#allocation5 + $0x50] sm:$0xff] %vm2355_vm12, %v7429_v39 }
 0x327   : > { %v2230_v50 = vadd.f32 %v5711_v38, %v7331_v55 }
 0x328   : > { %v2224_v40 = vpop.f32.mrf.mxu0 }
 0x329   : > { %v2336_v54 = vmax.f32 %v2230_v50, 0.0  ;;  %v2225_v52 = vadd.f32 %v7331_v55, %v2224_v40 }
 0x32a   : > { %v7435_v57 = vld [vmem:[#allocation4 + $0x99] sm:$0xff] }
 0x32b   : > { %2425 = vst.msk [vmem:[#allocation4 + $0xb1] sm:$0xff] %vm2355_vm12, %v2336_v54  ;;  %v2335_v59 = vmax.f32 %v2225_v52, 0.0  ;;  %2598 = vrot.lane.b32.xlu1 %v7435_v57, %s5942_s11 }
 0x32c   : > { %v7440_v61 = vld [vmem:[#allocation4 + $0x91] sm:$0xff] }
 0x32d   : > { %v7442_v60 = vld [vmem:[#allocation4 + $0x98] sm:$0xff]  ;;  %2424 = vst.msk [vmem:[#allocation4 + $0xa9] sm:$0xff] %vm2355_vm12, %v2335_v59  ;;  %2596 = vrot.lane.b32.xlu0 %v7440_v61, %s5942_s11  ;;  %v7450_v1 = vld [vmem:[#allocation4 + $0x90] sm:$0xff] }
 0x32e   : > { %2489 = vst.msk [vmem:[#allocation5 + $0x68] sm:$0xff] %vm2355_vm12, %v7442_v60  ;;  %v5714_v62 = vpop.f32.mrf.mxu0  ;;  %2488 = vst.msk [vmem:[#allocation5 + $0x60] sm:$0xff] %vm2355_vm12, %v7450_v1 }
 0x32f   : > { %v2240_v2 = vadd.f32 %v5714_v62, %v7331_v55 }
 0x330   : > { %v2234_v5 = vpop.f32.mrf.mxu0 }
 0x331   : > { %v2338_v4 = vmax.f32 %v2240_v2, 0.0  ;;  %v2235_v7 = vadd.f32 %v7331_v55, %v2234_v5 }
 0x332   : > { %v7457_v6 = vld [vmem:[#allocation4 + $0xb1] sm:$0xff] }
 0x333   : > { %2427 = vst.msk [vmem:[#allocation4 + $0xc9] sm:$0xff] %vm2355_vm12, %v2338_v4  ;;  %v2337_v9 = vmax.f32 %v2235_v7, 0.0  ;;  %2602 = vrot.lane.b32.xlu1 %v7457_v6, %s5942_s11 }
 0x334   : > { %v7462_v8 = vld [vmem:[#allocation4 + $0xa9] sm:$0xff] }
 0x335   : > { %v7464_v12 = vld [vmem:[#allocation4 + $0xb0] sm:$0xff]  ;;  %2426 = vst.msk [vmem:[#allocation4 + $0xc1] sm:$0xff] %vm2355_vm12, %v2337_v9  ;;  %2600 = vrot.lane.b32.xlu0 %v7462_v8, %s5942_s11  ;;  %v7471_v13 = vld [vmem:[#allocation4 + $0xa8] sm:$0xff] }
 0x336   : > { %2491 = vst.msk [vmem:[#allocation5 + $0x78] sm:$0xff] %vm2355_vm12, %v7464_v12  ;;  %v5717_v20 = vpop.f32.mrf.mxu0  ;;  %2490 = vst.msk [vmem:[#allocation5 + $0x70] sm:$0xff] %vm2355_vm12, %v7471_v13 }
 0x337   : > { %v2250_v17 = vadd.f32 %v5717_v20, %v7331_v55 }
 0x338   : > { %v2244_v41 = vpop.f32.mrf.mxu0 }
 0x339   : > { %v2340_v24 = vmax.f32 %v2250_v17, 0.0  ;;  %v2245_v48 = vadd.f32 %v7331_v55, %v2244_v41 }
 0x33a   : > { %v2525_v43 = vld [vmem:[#allocation4 + $0xc9] sm:$0xff] }
 0x33b   : > { %2429 = vst.msk [vmem:[#allocation4 + $0xe1] sm:$0xff] %vm2355_vm12, %v2340_v24  ;;  %v2339_v26 = vmax.f32 %v2245_v48, 0.0  ;;  %2606 = vrot.lane.b32.xlu1 %v2525_v43, %s5942_s11 }
 0x33c   : > { %v2524_v27 = vld [vmem:[#allocation4 + $0xc1] sm:$0xff] }
 0x33d   : > { %v7479_v44 = vld [vmem:[#allocation4 + $0xc8] sm:$0xff]  ;;  %2428 = vst.msk [vmem:[#allocation4 + $0xd9] sm:$0xff] %vm2355_vm12, %v2339_v26  ;;  %2604 = vrot.lane.b32.xlu0 %v2524_v27, %s5942_s11  ;;  %v7485_v46 = vld [vmem:[#allocation4 + $0xc0] sm:$0xff] }
 0x33e   : > { %2493 = vst.msk [vmem:[#allocation5 + $0x88] sm:$0xff] %vm2355_vm12, %v7479_v44  ;;  %v5720_v53 = vpop.f32.mrf.mxu0  ;;  %2492 = vst.msk [vmem:[#allocation5 + $0x80] sm:$0xff] %vm2355_vm12, %v7485_v46 }
 0x33f   : > { %v2260_v63 = vadd.f32 %v5720_v53, %v7331_v55 }
 0x340   : > { %v2254_v11 = vpop.f32.mrf.mxu0 }
 0x341   : > { %v2342_v14 = vmax.f32 %v2260_v63, 0.0  ;;  %v2255_v15 = vadd.f32 %v7331_v55, %v2254_v11 }
 0x342   : > { %v2527_v18 = vld [vmem:[#allocation4 + $0xe1] sm:$0xff] }
 0x343   : > { %2431 = vst.msk [vmem:[#allocation4 + $0xf9] sm:$0xff] %vm2355_vm12, %v2342_v14  ;;  %v2341_v22 = vmax.f32 %v2255_v15, 0.0  ;;  %2610 = vrot.lane.b32.xlu1 %v2527_v18, %s5942_s11 }
 0x344   : > { %v2526_v45 = vld [vmem:[#allocation4 + $0xd9] sm:$0xff] }
 0x345   : > { %v7493_v33 = vld [vmem:[#allocation4 + $0xe0] sm:$0xff]  ;;  %2430 = vst.msk [vmem:[#allocation4 + $0xf1] sm:$0xff] %vm2355_vm12, %v2341_v22  ;;  %2608 = vrot.lane.b32.xlu0 %v2526_v45, %s5942_s11  ;;  %v7499_v25 = vld [vmem:[#allocation4 + $0xd8] sm:$0xff] }
 0x346   : > { %2495 = vst.msk [vmem:[#allocation5 + $0x98] sm:$0xff] %vm2355_vm12, %v7493_v33  ;;  %v5723_v47 = vpop.f32.mrf.mxu0  ;;  %2494 = vst.msk [vmem:[#allocation5 + $0x90] sm:$0xff] %vm2355_vm12, %v7499_v25 }
 0x347   : > { %v2270_v36 = vadd.f32 %v5723_v47, %v7331_v55 }
 0x348   : > { %v2264_v37 = vpop.f32.mrf.mxu0 }
 0x349   : > { %v2344_v38 = vmax.f32 %v2270_v36, 0.0  ;;  %v2265_v50 = vadd.f32 %v7331_v55, %v2264_v37 }
 0x34a   : > { %v2529_v40 = vld [vmem:[#allocation4 + $0xf9] sm:$0xff] }
 0x34b   : > { %2433 = vst.msk [vmem:[#allocation4 + $0x111] sm:$0xff] %vm2355_vm12, %v2344_v38  ;;  %v2343_v54 = vmax.f32 %v2265_v50, 0.0  ;;  %2614 = vrot.lane.b32.xlu1 %v2529_v40, %s5942_s11 }
 0x34c   : > { %v2528_v52 = vld [vmem:[#allocation4 + $0xf1] sm:$0xff] }
 0x34d   : > { %v7507_v59 = vld [vmem:[#allocation4 + $0xf8] sm:$0xff]  ;;  %2432 = vst.msk [vmem:[#allocation4 + $0x109] sm:$0xff] %vm2355_vm12, %v2343_v54  ;;  %2612 = vrot.lane.b32.xlu0 %v2528_v52, %s5942_s11  ;;  %v7513_v58 = vld [vmem:[#allocation4 + $0xf0] sm:$0xff] }
 0x34e   : > { %2497 = vst.msk [vmem:[#allocation5 + $0xa8] sm:$0xff] %vm2355_vm12, %v7507_v59  ;;  %v5726_v62 = vpop.f32.mrf.mxu0  ;;  %2496 = vst.msk [vmem:[#allocation5 + $0xa0] sm:$0xff] %vm2355_vm12, %v7513_v58 }
 0x34f   : > { %v2280_v3 = vadd.f32 %v5726_v62, %v7331_v55 }
 0x350   : > { %v2274_v2 = vpop.f32.mrf.mxu0 }
 0x351   : > { %v2346_v5 = vmax.f32 %v2280_v3, 0.0  ;;  %v2275_v4 = vadd.f32 %v7331_v55, %v2274_v2 }
 0x352   : > { %v2531_v7 = vld [vmem:[#allocation4 + $0x111] sm:$0xff] }
 0x353   : > { %2435 = vst.msk [vmem:[#allocation4 + $0x129] sm:$0xff] %vm2355_vm12, %v2346_v5  ;;  %v2345_v9 = vmax.f32 %v2275_v4, 0.0  ;;  %2618 = vrot.lane.b32.xlu1 %v2531_v7, %s5942_s11 }
 0x354   : > { %v2530_v20 = vld [vmem:[#allocation4 + $0x109] sm:$0xff] }
 0x355   : > { %v7521_v17 = vld [vmem:[#allocation4 + $0x110] sm:$0xff]  ;;  %2434 = vst.msk [vmem:[#allocation4 + $0x121] sm:$0xff] %vm2355_vm12, %v2345_v9  ;;  %2616 = vrot.lane.b32.xlu0 %v2530_v20, %s5942_s11  ;;  %v7527_v41 = vld [vmem:[#allocation4 + $0x108] sm:$0xff] }
 0x356   : > { %2499 = vst.msk [vmem:[#allocation5 + $0xb8] sm:$0xff] %vm2355_vm12, %v7521_v17  ;;  %v5729_v24 = vpop.f32.mrf.mxu0  ;;  %2498 = vst.msk [vmem:[#allocation5 + $0xb0] sm:$0xff] %vm2355_vm12, %v7527_v41 }
 0x357   : > { %v2290_v48 = vadd.f32 %v5729_v24, %v7331_v55 }
 0x358   : > { %v2284_v43 = vpop.f32.mrf.mxu0 }
 0x359   : > { %v2348_v26 = vmax.f32 %v2290_v48, 0.0  ;;  %v2285_v27 = vadd.f32 %v7331_v55, %v2284_v43 }
 0x35a   : > { %v2533_v53 = vld [vmem:[#allocation4 + $0x129] sm:$0xff] }
 0x35b   : > { %2437 = vst.msk [vmem:[#allocation4 + $0x141] sm:$0xff] %vm2355_vm12, %v2348_v26  ;;  %v2347_v63 = vmax.f32 %v2285_v27, 0.0  ;;  %2622 = vrot.lane.b32.xlu1 %v2533_v53, %s5942_s11  ;;  %v2702_v26 = vld [vmem:[#allocation4 + $0xa] sm:$0xff] }
 0x35c   : > { %v2532_v11 = vld [vmem:[#allocation4 + $0x121] sm:$0xff] }
 0x35d   : > { %v7535_v14 = vld [vmem:[#allocation4 + $0x128] sm:$0xff]  ;;  %2436 = vst.msk [vmem:[#allocation4 + $0x139] sm:$0xff] %vm2355_vm12, %v2347_v63  ;;  %2620 = vrot.lane.b32.xlu0 %v2532_v11, %s5942_s11  ;;  %v7541_v15 = vld [vmem:[#allocation4 + $0x120] sm:$0xff] }
 0x35e   : > { %2501 = vst.msk [vmem:[#allocation5 + $0xc8] sm:$0xff] %vm2355_vm12, %v7535_v14  ;;  %v5732_v18 = vpop.f32.mrf.mxu0  ;;  %2500 = vst.msk [vmem:[#allocation5 + $0xc0] sm:$0xff] %vm2355_vm12, %v7541_v15  ;;  %v2701_v11 = vld [vmem:[#allocation4 + $0x2] sm:$0xff] }
 0x35f   : > { %v2300_v22 = vadd.f32 %v5732_v18, %v7331_v55 }
 0x360   : > { %v2294_v45 = vpop.f32.mrf.mxu0 }
 0x361   : > { %v2350_v47 = vmax.f32 %v2300_v22, 0.0  ;;  %v2295_v36 = vadd.f32 %v7331_v55, %v2294_v45  ;;  %v2704_v22 = vld [vmem:[#allocation4 + $0x22] sm:$0xff]  ;;  %v2703_v45 = vld [vmem:[#allocation4 + $0x1a] sm:$0xff] }
 0x362   : > { %v2535_v37 = vld [vmem:[#allocation4 + $0x141] sm:$0xff] }
 0x363   : > { %2439 = vst.msk [vmem:[#allocation4 + $0x159] sm:$0xff] %vm2355_vm12, %v2350_v47  ;;  %v2349_v38 = vmax.f32 %v2295_v36, 0.0  ;;  %2626 = vrot.lane.b32.xlu1 %v2535_v37, %s5942_s11  ;;  %v7572_v36 = vld [vmem:[#allocation4 + $0x3a] sm:$0xff] }
 0x364   : > { %v2534_v50 = vld [vmem:[#allocation4 + $0x139] sm:$0xff] }
 0x365   : > { %v2471_v40 = vld [vmem:[#allocation4 + $0x140] sm:$0xff]  ;;  %2438 = vst.msk [vmem:[#allocation4 + $0x151] sm:$0xff] %vm2355_vm12, %v2349_v38  ;;  %2624 = vrot.lane.b32.xlu0 %v2534_v50, %s5942_s11  ;;  %v2470_v54 = vld [vmem:[#allocation4 + $0x138] sm:$0xff] }
 0x366   : > { %2503 = vst.msk [vmem:[#allocation5 + $0xd8] sm:$0xff] %vm2355_vm12, %v2471_v40  ;;  %v5735_v52 = vpop.f32.mrf.mxu0  ;;  %2502 = vst.msk [vmem:[#allocation5 + $0xd0] sm:$0xff] %vm2355_vm12, %v2470_v54  ;;  %v7577_v38 = vld [vmem:[#allocation4 + $0x32] sm:$0xff]  ;;  %v7585_v40 = vld [vmem:[#allocation4 + $0x4a] sm:$0xff] }
 0x367   : > { %v2310_v62 = vadd.f32 %v5735_v52, %v7331_v55  ;;  %v7581_v50 = vld [vmem:[#allocation4 + $0x52] sm:$0xff]  ;;  %v7590_v52 = vld [vmem:[#allocation4 + $0x6a] sm:$0xff] }
 0x368   : > { %v2304_v3 = vpop.f32.mrf.mxu0 }
 0x369   : > { %v2352_v2 = vmax.f32 %v2310_v62, 0.0  ;;  %v2305_v5 = vadd.f32 %v7331_v55, %v2304_v3  ;;  %v7595_v3 = vld [vmem:[#allocation4 + $0x62] sm:$0xff] }
 0x36a   : > { %v2537_v4 = vld [vmem:[#allocation4 + $0x159] sm:$0xff] }
 0x36b   : > { %2441 = vst.msk [vmem:[#allocation4 + $0x171] sm:$0xff] %vm2355_vm12, %v2352_v2  ;;  %v2351_v7 = vmax.f32 %v2305_v5, 0.0  ;;  %2630 = vrot.lane.b32.xlu1 %v2537_v4, %s5942_s11  ;;  %v7599_v2 = vld [vmem:[#allocation4 + $0x82] sm:$0xff]  ;;  %v7603_v5 = vld [vmem:[#allocation4 + $0x7a] sm:$0xff] }
 0x36c   : > { %v2536_v9 = vld [vmem:[#allocation4 + $0x151] sm:$0xff] }
 0x36d   : > { %v2473_v20 = vld [vmem:[#allocation4 + $0x158] sm:$0xff]  ;;  %2440 = vst.msk [vmem:[#allocation4 + $0x169] sm:$0xff] %vm2355_vm12, %v2351_v7  ;;  %2628 = vrot.lane.b32.xlu0 %v2536_v9, %s5942_s11  ;;  %v2472_v24 = vld [vmem:[#allocation4 + $0x150] sm:$0xff] }
 0x36e   : > { %2505 = vst.msk [vmem:[#allocation5 + $0xe8] sm:$0xff] %vm2355_vm12, %v2473_v20  ;;  %2504 = vst.msk [vmem:[#allocation5 + $0xe0] sm:$0xff] %vm2355_vm12, %v2472_v24  ;;  %v7608_v7 = vld [vmem:[#allocation4 + $0x9a] sm:$0xff]  ;;  %v7613_v20 = vld [vmem:[#allocation4 + $0x92] sm:$0xff] }
 0x36f   : > { %v7617_v24 = vld [vmem:[#allocation4 + $0xb2] sm:$0xff] }
 0x372   : > { %v2539_v48 = vld [vmem:[#allocation4 + $0x171] sm:$0xff] }
 0x373   : > { %2634 = vrot.lane.b32.xlu1 %v2539_v48, %s5942_s11  ;;  %v7621_v48 = vld [vmem:[#allocation4 + $0xaa] sm:$0xff] }
 0x374   : > { %v2538_v43 = vld [vmem:[#allocation4 + $0x169] sm:$0xff] }
 0x375   : > { %v2475_v27 = vld [vmem:[#allocation4 + $0x170] sm:$0xff]  ;;  %2632 = vrot.lane.b32.xlu0 %v2538_v43, %s5942_s11  ;;  %v2474_v53 = vld [vmem:[#allocation4 + $0x168] sm:$0xff] }
 0x376   : > { %2507 = vst.msk [vmem:[#allocation5 + $0xf8] sm:$0xff] %vm2355_vm12, %v2475_v27  ;;  %v2579_v63 = vpop.permute.xlu1 %2578  ;;  %2506 = vst.msk [vmem:[#allocation5 + $0xf0] sm:$0xff] %vm2355_vm12, %v2474_v53  ;;  %v7631_v53 = vld [vmem:[#allocation4 + $0xc2] sm:$0xff] }
 0x377   : > { %2767 = vrot.lane.b32.xlu1 %v2702_v26, %s5944_s13  ;;  %2672 = vst.msk [vmem:[#allocation5 + $0x18] sm:$0xff] %vm2668_vm14, %v2579_v63  ;;  %v7626_v26 = vld [vmem:[#allocation4 + $0xca] sm:$0xff]  ;;  %v7635_v63 = vld [vmem:[#allocation4 + $0xe2] sm:$0xff] }
 0x378   : > { %v2577_v18 = vpop.permute.xlu0 %2576 }
 0x379   : > { %2671 = vst.msk [vmem:[#allocation5 + $0x10] sm:$0xff] %vm2668_vm14, %v2577_v18  ;;  %2765 = vrot.lane.b32.xlu0 %v2701_v11, %s5944_s13  ;;  %v7639_v11 = vld [vmem:[#allocation4 + $0xda] sm:$0xff] }
 0x37b   : > { %2771 = vrot.lane.b32.xlu1 %v2704_v22, %s5944_s13  ;;  %v2722_v22 = vld [vmem:[#allocation4 + $0xfa] sm:$0xff] }
 0x37d   : > { %v2583_v47 = vpop.permute.xlu1 %2582  ;;  %2769 = vrot.lane.b32.xlu0 %v2703_v45, %s5944_s13 }
 0x37e   : > { %2674 = vst.msk [vmem:[#allocation5 + $0x28] sm:$0xff] %vm2668_vm14, %v2583_v47  ;;  %v7646_v47 = vld [vmem:[#allocation4 + $0xf2] sm:$0xff] }
 0x37f   : > { %2775 = vrot.lane.b32.xlu1 %v7572_v36, %s5944_s13  ;;  %v2581_v37 = vpop.permute.xlu0 %2580 }
 0x380   : > { %2673 = vst.msk [vmem:[#allocation5 + $0x20] sm:$0xff] %vm2668_vm14, %v2581_v37  ;;  %v2724_v37 = vld [vmem:[#allocation4 + $0x112] sm:$0xff] }
 0x381   : > { %2773 = vrot.lane.b32.xlu0 %v7577_v38, %s5944_s13 }
 0x383   : > { %2779 = vrot.lane.b32.xlu1 %v7581_v50, %s5944_s13 }
 0x385   : > { %v2587_v54 = vpop.permute.xlu1 %2586  ;;  %2777 = vrot.lane.b32.xlu0 %v7585_v40, %s5944_s13 }
 0x386   : > { %2676 = vst.msk [vmem:[#allocation5 + $0x38] sm:$0xff] %vm2668_vm14, %v2587_v54  ;;  %v2723_v54 = vld [vmem:[#allocation4 + $0x10a] sm:$0xff] }
 0x387   : > { %2783 = vrot.lane.b32.xlu1 %v7590_v52, %s5944_s13  ;;  %v2585_v62 = vpop.permute.xlu0 %2584 }
 0x388   : > { %2675 = vst.msk [vmem:[#allocation5 + $0x30] sm:$0xff] %vm2668_vm14, %v2585_v62 }
 0x389   : > { %2781 = vrot.lane.b32.xlu0 %v7595_v3, %s5944_s13 }
 0x38b   : > { %2787 = vrot.lane.b32.xlu1 %v7599_v2, %s5944_s13 }
 0x38d   : > { %v2591_v4 = vpop.permute.xlu1 %2590  ;;  %2785 = vrot.lane.b32.xlu0 %v7603_v5, %s5944_s13 }
 0x38e   : > { %2678 = vst.msk [vmem:[#allocation5 + $0x48] sm:$0xff] %vm2668_vm14, %v2591_v4  ;;  %v2726_v4 = vld [vmem:[#allocation4 + $0x12a] sm:$0xff] }
 0x38f   : > { %2791 = vrot.lane.b32.xlu1 %v7608_v7, %s5944_s13  ;;  %v2589_v9 = vpop.permute.xlu0 %2588 }
 0x390   : > { %2677 = vst.msk [vmem:[#allocation5 + $0x40] sm:$0xff] %vm2668_vm14, %v2589_v9 }
 0x391   : > { %2789 = vrot.lane.b32.xlu0 %v7613_v20, %s5944_s13 }
 0x393   : > { %2795 = vrot.lane.b32.xlu1 %v7617_v24, %s5944_s13 }
 0x395   : > { %v2595_v43 = vpop.permute.xlu1 %2594  ;;  %2793 = vrot.lane.b32.xlu0 %v7621_v48, %s5944_s13 }
 0x396   : > { %2680 = vst.msk [vmem:[#allocation5 + $0x58] sm:$0xff] %vm2668_vm14, %v2595_v43  ;;  %v2725_v43 = vld [vmem:[#allocation4 + $0x122] sm:$0xff] }
 0x397   : > { %2799 = vrot.lane.b32.xlu1 %v7626_v26, %s5944_s13  ;;  %v2593_v27 = vpop.permute.xlu0 %2592 }
 0x398   : > { %2679 = vst.msk [vmem:[#allocation5 + $0x50] sm:$0xff] %vm2668_vm14, %v2593_v27  ;;  %v2728_v27 = vld [vmem:[#allocation4 + $0x142] sm:$0xff] }
 0x399   : > { %2797 = vrot.lane.b32.xlu0 %v7631_v53, %s5944_s13 }
 0x39b   : > { %2803 = vrot.lane.b32.xlu1 %v7635_v63, %s5944_s13 }
 0x39d   : > { %v2599_v18 = vpop.permute.xlu1 %2598  ;;  %2801 = vrot.lane.b32.xlu0 %v7639_v11, %s5944_s13 }
 0x39e   : > { %2682 = vst.msk [vmem:[#allocation5 + $0x68] sm:$0xff] %vm2668_vm14, %v2599_v18  ;;  %v2727_v18 = vld [vmem:[#allocation4 + $0x13a] sm:$0xff] }
 0x39f   : > { %2807 = vrot.lane.b32.xlu1 %v2722_v22, %s5944_s13  ;;  %v2597_v45 = vpop.permute.xlu0 %2596 }
 0x3a0   : > { %2681 = vst.msk [vmem:[#allocation5 + $0x60] sm:$0xff] %vm2668_vm14, %v2597_v45  ;;  %v2730_v45 = vld [vmem:[#allocation4 + $0x15a] sm:$0xff] }
 0x3a1   : > { %2805 = vrot.lane.b32.xlu0 %v7646_v47, %s5944_s13 }
 0x3a3   : > { %2811 = vrot.lane.b32.xlu1 %v2724_v37, %s5944_s13 }
 0x3a5   : > { %v2603_v62 = vpop.permute.xlu1 %2602  ;;  %2809 = vrot.lane.b32.xlu0 %v2723_v54, %s5944_s13  ;;  %v2729_v54 = vld [vmem:[#allocation4 + $0x152] sm:$0xff] }
 0x3a6   : > { %2684 = vst.msk [vmem:[#allocation5 + $0x78] sm:$0xff] %vm2668_vm14, %v2603_v62  ;;  %v2732_v62 = vld [vmem:[#allocation4 + $0x172] sm:$0xff] }
 0x3a7   : > { %2815 = vrot.lane.b32.xlu1 %v2726_v4, %s5944_s13  ;;  %v2601_v9 = vpop.permute.xlu0 %2600  ;;  %v2731_v4 = vld [vmem:[#allocation4 + $0x16a] sm:$0xff] }
 0x3a8   : > { %2683 = vst.msk [vmem:[#allocation5 + $0x70] sm:$0xff] %vm2668_vm14, %v2601_v9 }
 0x3a9   : > { %2813 = vrot.lane.b32.xlu0 %v2725_v43, %s5944_s13 }
 0x3ab   : > { %2819 = vrot.lane.b32.xlu1 %v2728_v27, %s5944_s13 }
 0x3ad   : > { %v2607_v22 = vpop.permute.xlu1 %2606  ;;  %2817 = vrot.lane.b32.xlu0 %v2727_v18, %s5944_s13 }
 0x3ae   : > { %2686 = vst.msk [vmem:[#allocation5 + $0x88] sm:$0xff] %vm2668_vm14, %v2607_v22  ;;  %v4093_v22 = vld [vmem:[%s8591_s3 + $0x40] sm:$0xff] }
 0x3af   : > { %2823 = vrot.lane.b32.xlu1 %v2730_v45, %s5944_s13  ;;  %v2605_v37 = vpop.permute.xlu0 %2604  ;;  %5805 = vmatprep.subr.mxu1 %v4093_v22 }
 0x3b0   : > { %2685 = vst.msk [vmem:[#allocation5 + $0x80] sm:$0xff] %vm2668_vm14, %v2605_v37  ;;  %5814 = vmatpush3.msra.mxu1 %v4093_v22  ;;  %v4092_v37 = vld [vmem:[%s8591_s3 + $0x38] sm:$0xff]  ;;  %5739 = vmatprep.subr.mxu0 %v4093_v22 }
 0x3b1   : > { %2821 = vrot.lane.b32.xlu0 %v2729_v54, %s5944_s13  ;;  %5806 = vmatprep.subr.mxu1 %v4092_v37  ;;  %v4091_v54 = vld [vmem:[%s8591_s3 + $0x30] sm:$0xff] }
 0x3b2   : > { %5815 = vmatpush3.msra.mxu1 %v4092_v37  ;;  %5740 = vmatpush3.msra.mxu0 %v4093_v22 }
 0x3b3   : > { %2827 = vrot.lane.b32.xlu1 %v2732_v62, %s5944_s13  ;;  %5807 = vmatprep.subr.mxu1 %v4091_v54  ;;  %v4090_v62 = vld [vmem:[%s8591_s3 + $0x28] sm:$0xff] }
 0x3b4   : > { %5816 = vmatpush3.msra.mxu1 %v4091_v54  ;;  %5741 = vmatprep.subr.mxu0 %v4092_v37 }
 0x3b5   : > { %v2611_v9 = vpop.permute.xlu1 %2610  ;;  %2825 = vrot.lane.b32.xlu0 %v2731_v4, %s5944_s13  ;;  %5808 = vmatprep.subr.mxu1 %v4090_v62 }
 0x3b6   : > { %2688 = vst.msk [vmem:[#allocation5 + $0x98] sm:$0xff] %vm2668_vm14, %v2611_v9  ;;  %5817 = vmatpush3.msra.mxu1 %v4090_v62  ;;  %5742 = vmatpush3.msra.mxu0 %v4092_v37  ;;  %v4086_v9 = vld [vmem:[%s8591_s3 + $0x8] sm:$0xff] }
 0x3b7   : > { %2960 = vrot.lane.b32.xlu1 %v7346_v16, %s5946_s15  ;;  %v2609_v43 = vpop.permute.xlu0 %2608  ;;  %5743 = vmatprep.subr.mxu0 %v4091_v54 }
 0x3b8   : > { %2687 = vst.msk [vmem:[#allocation5 + $0x90] sm:$0xff] %vm2668_vm14, %v2609_v43  ;;  %5744 = vmatpush3.msra.mxu0 %v4091_v54  ;;  %v4085_v43 = vld [vmem:[%s8591_s3] sm:$0xff] }
 0x3b9   : > { %2958 = vrot.lane.b32.xlu0 %v7344_v10, %s5946_s15  ;;  %5745 = vmatprep.subr.mxu0 %v4090_v62 }
 0x3ba   : > { %5746 = vmatpush3.msra.mxu0 %v4090_v62 }
 0x3bb   : > { %2964 = vrot.lane.b32.xlu1 %v7362_v29, %s5946_s15 }
 0x3bd   : > { %v2615_v27 = vpop.permute.xlu1 %2614  ;;  %2962 = vrot.lane.b32.xlu0 %v7364_v42, %s5946_s15 }
 0x3be   : > { %2690 = vst.msk [vmem:[#allocation5 + $0xa8] sm:$0xff] %vm2668_vm14, %v2615_v27 }
 0x3bf   : > { %2968 = vrot.lane.b32.xlu1 %v7382_v35, %s5946_s15  ;;  %v2613_v18 = vpop.permute.xlu0 %2612 }
 0x3c0   : > { %2689 = vst.msk [vmem:[#allocation5 + $0xa0] sm:$0xff] %vm2668_vm14, %v2613_v18 }
 0x3c1   : > { %2966 = vrot.lane.b32.xlu0 %v7389_v56, %s5946_s15 }
 0x3c3   : > { %2972 = vrot.lane.b32.xlu1 %v7402_v23, %s5946_s15 }
 0x3c5   : > { %v2619_v10 = vpop.permute.xlu1 %2618  ;;  %2970 = vrot.lane.b32.xlu0 %v7409_v49, %s5946_s15 }
 0x3c6   : > { %2692 = vst.msk [vmem:[#allocation5 + $0xb8] sm:$0xff] %vm2668_vm14, %v2619_v10 }
 0x3c7   : > { %2976 = vrot.lane.b32.xlu1 %v7422_v0, %s5946_s15  ;;  %v2617_v16 = vpop.permute.xlu0 %2616 }
 0x3c8   : > { %2691 = vst.msk [vmem:[#allocation5 + $0xb0] sm:$0xff] %vm2668_vm14, %v2617_v16  ;;  %v5738_v16 = vpop.f32.mrf.mxu0 }
 0x3c9   : > { %2974 = vrot.lane.b32.xlu0 %v7429_v39, %s5946_s15 }
 0x3ca   : > { %v2314_v22 = vpop.f32.mrf.mxu0 }
 0x3cb   : > { %2980 = vrot.lane.b32.xlu1 %v7442_v60, %s5946_s15 }
 0x3cd   : > { %v2623_v29 = vpop.permute.xlu1 %2622  ;;  %2978 = vrot.lane.b32.xlu0 %v7450_v1, %s5946_s15 }
 0x3ce   : > { %2694 = vst.msk [vmem:[#allocation5 + $0xc8] sm:$0xff] %vm2668_vm14, %v2623_v29  ;;  %v2320_v29 = vadd.f32 %v5738_v16, %v7331_v55  ;;  %v3679_v16 = vld [vmem:[#allocation4 + $0xc1] sm:$0xff] }
 0x3cf   : > { %2984 = vrot.lane.b32.xlu1 %v7464_v12, %s5946_s15  ;;  %v2621_v42 = vpop.permute.xlu0 %2620 }
 0x3d0   : > { %2693 = vst.msk [vmem:[#allocation5 + $0xc0] sm:$0xff] %vm2668_vm14, %v2621_v42 }
 0x3d1   : > { %2982 = vrot.lane.b32.xlu0 %v7471_v13, %s5946_s15 }
 0x3d3   : > { %3155 = vrot.lane.b32.xlu1 %v7360_v28, %s5948_s12 }
 0x3d5   : > { %v2627_v45 = vpop.permute.xlu1 %2626  ;;  %2986 = vrot.lane.b32.xlu0 %v7485_v46, %s5946_s15 }
 0x3d6   : > { %2696 = vst.msk [vmem:[#allocation5 + $0xd8] sm:$0xff] %vm2668_vm14, %v2627_v45  ;;  %v2315_v45 = vadd.f32 %v7331_v55, %v2314_v22  ;;  %v3680_v22 = vld [vmem:[#allocation4 + $0xc9] sm:$0xff] }
 0x3d7   : > { %3348 = vrot.lane.b32.xlu1 %v7577_v38, %s5949_s26  ;;  %v2625_v28 = vpop.permute.xlu0 %2624  ;;  %v4089_v38 = vld [vmem:[%s8591_s3 + $0x20] sm:$0xff] }
 0x3d8   : > { %2695 = vst.msk [vmem:[#allocation5 + $0xd0] sm:$0xff] %vm2668_vm14, %v2625_v28  ;;  %5809 = vmatprep.subr.mxu1 %v4089_v38  ;;  %5747 = vmatprep.subr.mxu0 %v4089_v38  ;;  %v2353_v37 = vmax.f32 %v2315_v45, 0.0 }
 0x3d9   : > { %3157 = vrot.lane.b32.xlu0 %v7355_v21, %s5948_s12  ;;  %5818 = vmatpush3.msra.mxu1 %v4089_v38  ;;  %v4088_v21 = vld [vmem:[%s8591_s3 + $0x18] sm:$0xff] }
 0x3da   : > { %5810 = vmatprep.subr.mxu1 %v4088_v21  ;;  %5748 = vmatpush3.msra.mxu0 %v4089_v38  ;;  %2442 = vst.msk [vmem:[#allocation4 + $0x181] sm:$0xff] %vm2355_vm12, %v2353_v37 }
 0x3db   : > { %3542 = vrot.lane.b32.xlu1 %v7389_v56, %s5950_s9  ;;  %5819 = vmatpush3.msra.mxu1 %v4088_v21 }
 0x3dc   : > { %5749 = vmatprep.subr.mxu0 %v4088_v21 }
 0x3dd   : > { %v2631_v4 = vpop.permute.xlu1 %2630  ;;  %3350 = vrot.lane.b32.xlu0 %v7572_v36, %s5949_s26  ;;  %v4087_v36 = vld [vmem:[%s8591_s3 + $0x10] sm:$0xff]  ;;  %5750 = vmatpush3.msra.mxu0 %v4088_v21 }
 0x3de   : > { %2698 = vst.msk [vmem:[#allocation5 + $0xe8] sm:$0xff] %vm2668_vm14, %v2631_v4  ;;  %5811 = vmatprep.subr.mxu1 %v4087_v36  ;;  %5751 = vmatprep.subr.mxu0 %v4087_v36 }
 0x3df   : > { %3735 = vrot.lane.b32.xlu1 %v7380_v31, %s5951_s17  ;;  %v2629_v56 = vpop.permute.xlu0 %2628  ;;  %5820 = vmatpush3.msra.mxu1 %v4087_v36 }
 0x3e0   : > { %2697 = vst.msk [vmem:[#allocation5 + $0xe0] sm:$0xff] %vm2668_vm14, %v2629_v56  ;;  %5812 = vmatprep.subr.mxu1 %v4086_v9  ;;  %5752 = vmatpush3.msra.mxu0 %v4087_v36 }
 0x3e1   : > { %3544 = vrot.lane.b32.xlu0 %v7382_v35, %s5950_s9  ;;  %5821 = vmatpush3.msra.mxu1 %v4086_v9 }
 0x3e2   : > { %5813 = vmatprep.subr.mxu1 %v4085_v43  ;;  %5753 = vmatprep.subr.mxu0 %v4086_v9 }
 0x3e3   : > { %3737 = vrot.lane.b32.xlu1 %v7375_v51, %s5951_s17  ;;  %5822 = vmatpush3.msra.mxu1 %v4085_v43 }
 0x3e4   : > { %5754 = vmatpush3.msra.mxu0 %v4086_v9 }
 0x3e5   : > { %v2635_v27 = vpop.permute.xlu1 %2634  ;;  %3159 = vrot.lane.b32.xlu0 %v7380_v31, %s5948_s12  ;;  %5755 = vmatprep.subr.mxu0 %v4085_v43 }
 0x3e6   : > { %2700 = vst.msk [vmem:[#allocation5 + $0xf8] sm:$0xff] %vm2668_vm14, %v2635_v27  ;;  %5756 = vmatpush3.msra.mxu0 %v4085_v43 }
 0x3e7   : > { %3161 = vrot.lane.b32.xlu1 %v7375_v51, %s5948_s12  ;;  %v2633_v35 = vpop.permute.xlu0 %2632 }
 0x3e8   : > { %2699 = vst.msk [vmem:[#allocation5 + $0xf0] sm:$0xff] %vm2668_vm14, %v2633_v35  ;;  %vm5377_vm14 = vcmask 1046534  }
 0x3e9   : > { %v2768_v18 = vpop.permute.xlu1 %2767  ;;  %3928 = vrot.lane.b32.xlu0 %v7585_v40, %s5952_s10 }
 0x3ea   : > { %2863 = vst.msk [vmem:[#allocation5 + $0x8] sm:$0xff] %vm2861_vm15, %v2768_v18 }
 0x3eb   : > { %3930 = vrot.lane.b32.xlu1 %v7581_v50, %s5952_s10  ;;  %v2766_v31 = vpop.permute.xlu0 %2765 }
 0x3ec   : > { %2862 = vst.msk [vmem:[#allocation5] sm:$0xff] %vm2861_vm15, %v2766_v31 }
 0x3ed   : > { %v2772_v51 = vpop.permute.xlu1 %2771  ;;  %3352 = vrot.lane.b32.xlu0 %v7585_v40, %s5949_s26  ;;  %v2354_v40 = vmax.f32 %v2320_v29, 0.0 }
 0x3ee   : > { %2865 = vst.msk [vmem:[#allocation5 + $0x18] sm:$0xff] %vm2861_vm15, %v2772_v51 }
 0x3ef   : > { %3546 = vrot.lane.b32.xlu1 %v7409_v49, %s5950_s9  ;;  %v2770_v10 = vpop.permute.xlu0 %2769  ;;  %2443 = vst.msk [vmem:[#allocation4 + $0x189] sm:$0xff] %vm2355_vm12, %v2354_v40 }
 0x3f0   : > { %2864 = vst.msk [vmem:[#allocation5 + $0x10] sm:$0xff] %vm2861_vm15, %v2770_v10 }
 0x3f1   : > { %v2776_v42 = vpop.permute.xlu1 %2775  ;;  %3354 = vrot.lane.b32.xlu0 %v7581_v50, %s5949_s26 }
 0x3f2   : > { %2867 = vst.msk [vmem:[#allocation5 + $0x28] sm:$0xff] %vm2861_vm15, %v2776_v42 }
 0x3f3   : > { %3739 = vrot.lane.b32.xlu1 %v7400_v34, %s5951_s17  ;;  %v2774_v49 = vpop.permute.xlu0 %2773 }
 0x3f4   : > { %2866 = vst.msk [vmem:[#allocation5 + $0x20] sm:$0xff] %vm2861_vm15, %v2774_v49 }
 0x3f5   : > { %v2780_v28 = vpop.permute.xlu1 %2779  ;;  %3548 = vrot.lane.b32.xlu0 %v7402_v23, %s5950_s9 }
 0x3f6   : > { %2869 = vst.msk [vmem:[#allocation5 + $0x38] sm:$0xff] %vm2861_vm15, %v2780_v28 }
 0x3f7   : > { %3741 = vrot.lane.b32.xlu1 %v7395_v19, %s5951_s17  ;;  %v2778_v55 = vpop.permute.xlu0 %2777 }
 0x3f8   : > { %2868 = vst.msk [vmem:[#allocation5 + $0x30] sm:$0xff] %vm2861_vm15, %v2778_v55  ;;  %v3681_v55 = vld [vmem:[#allocation4 + $0xd9] sm:$0xff] }
 0x3f9   : > { %v2784_v50 = vpop.permute.xlu1 %2783  ;;  %3163 = vrot.lane.b32.xlu0 %v7400_v34, %s5948_s12 }
 0x3fa   : > { %2871 = vst.msk [vmem:[#allocation5 + $0x48] sm:$0xff] %vm2861_vm15, %v2784_v50 }
 0x3fb   : > { %3165 = vrot.lane.b32.xlu1 %v7395_v19, %s5948_s12  ;;  %v2782_v23 = vpop.permute.xlu0 %2781 }
 0x3fc   : > { %2870 = vst.msk [vmem:[#allocation5 + $0x40] sm:$0xff] %vm2861_vm15, %v2782_v23 }
 0x3fd   : > { %v2788_v54 = vpop.permute.xlu1 %2787  ;;  %3932 = vrot.lane.b32.xlu0 %v7595_v3, %s5952_s10 }
 0x3fe   : > { %2873 = vst.msk [vmem:[#allocation5 + $0x58] sm:$0xff] %vm2861_vm15, %v2788_v54 }
 0x3ff   : > { %3934 = vrot.lane.b32.xlu1 %v7590_v52, %s5952_s10  ;;  %v2786_v62 = vpop.permute.xlu0 %2785 }
 0x400   : > { %2872 = vst.msk [vmem:[#allocation5 + $0x50] sm:$0xff] %vm2861_vm15, %v2786_v62 }
 0x401   : > { %v2792_v34 = vpop.permute.xlu1 %2791  ;;  %3356 = vrot.lane.b32.xlu0 %v7595_v3, %s5949_s26 }
 0x402   : > { %2875 = vst.msk [vmem:[#allocation5 + $0x68] sm:$0xff] %vm2861_vm15, %v2792_v34  ;;  %v3682_v34 = vld [vmem:[#allocation4 + $0xe1] sm:$0xff] }
 0x403   : > { %3550 = vrot.lane.b32.xlu1 %v7429_v39, %s5950_s9  ;;  %v2790_v19 = vpop.permute.xlu0 %2789 }
 0x404   : > { %2874 = vst.msk [vmem:[#allocation5 + $0x60] sm:$0xff] %vm2861_vm15, %v2790_v19 }
 0x405   : > { %v2796_v38 = vpop.permute.xlu1 %2795  ;;  %3358 = vrot.lane.b32.xlu0 %v7590_v52, %s5949_s26 }
 0x406   : > { %2877 = vst.msk [vmem:[#allocation5 + $0x78] sm:$0xff] %vm2861_vm15, %v2796_v38 }
 0x407   : > { %3743 = vrot.lane.b32.xlu1 %v7420_v32, %s5951_s17  ;;  %v2794_v4 = vpop.permute.xlu0 %2793 }
 0x408   : > { %2876 = vst.msk [vmem:[#allocation5 + $0x70] sm:$0xff] %vm2861_vm15, %v2794_v4 }
 0x409   : > { %v2800_v3 = vpop.permute.xlu1 %2799  ;;  %3552 = vrot.lane.b32.xlu0 %v7422_v0, %s5950_s9 }
 0x40a   : > { %2879 = vst.msk [vmem:[#allocation5 + $0x88] sm:$0xff] %vm2861_vm15, %v2800_v3 }
 0x40b   : > { %3745 = vrot.lane.b32.xlu1 %v7415_v30, %s5951_s17  ;;  %v2798_v39 = vpop.permute.xlu0 %2797 }
 0x40c   : > { %2878 = vst.msk [vmem:[#allocation5 + $0x80] sm:$0xff] %vm2861_vm15, %v2798_v39 }
 0x40d   : > { %v2804_v52 = vpop.permute.xlu1 %2803  ;;  %3167 = vrot.lane.b32.xlu0 %v7420_v32, %s5948_s12 }
 0x40e   : > { %2881 = vst.msk [vmem:[#allocation5 + $0x98] sm:$0xff] %vm2861_vm15, %v2804_v52 }
 0x40f   : > { %3169 = vrot.lane.b32.xlu1 %v7415_v30, %s5948_s12  ;;  %v2802_v21 = vpop.permute.xlu0 %2801 }
 0x410   : > { %2880 = vst.msk [vmem:[#allocation5 + $0x90] sm:$0xff] %vm2861_vm15, %v2802_v21  ;;  %v3683_v21 = vld [vmem:[#allocation4 + $0xf1] sm:$0xff] }
 0x411   : > { %v2808_v0 = vpop.permute.xlu1 %2807  ;;  %3936 = vrot.lane.b32.xlu0 %v7603_v5, %s5952_s10 }
 0x412   : > { %2883 = vst.msk [vmem:[#allocation5 + $0xa8] sm:$0xff] %vm2861_vm15, %v2808_v0 }
 0x413   : > { %3938 = vrot.lane.b32.xlu1 %v7599_v2, %s5952_s10  ;;  %v2806_v56 = vpop.permute.xlu0 %2805 }
 0x414   : > { %2882 = vst.msk [vmem:[#allocation5 + $0xa0] sm:$0xff] %vm2861_vm15, %v2806_v56 }
 0x415   : > { %v2812_v32 = vpop.permute.xlu1 %2811  ;;  %3360 = vrot.lane.b32.xlu0 %v7603_v5, %s5949_s26 }
 0x416   : > { %2885 = vst.msk [vmem:[#allocation5 + $0xb8] sm:$0xff] %vm2861_vm15, %v2812_v32 }
 0x417   : > { %3554 = vrot.lane.b32.xlu1 %v7450_v1, %s5950_s9  ;;  %v2810_v30 = vpop.permute.xlu0 %2809 }
 0x418   : > { %2884 = vst.msk [vmem:[#allocation5 + $0xb0] sm:$0xff] %vm2861_vm15, %v2810_v30 }
 0x419   : > { %v2816_v36 = vpop.permute.xlu1 %2815  ;;  %3362 = vrot.lane.b32.xlu0 %v7599_v2, %s5949_s26 }
 0x41a   : > { %2887 = vst.msk [vmem:[#allocation5 + $0xc8] sm:$0xff] %vm2861_vm15, %v2816_v36 }
 0x41b   : > { %3747 = vrot.lane.b32.xlu1 %v7440_v61, %s5951_s17  ;;  %v2814_v9 = vpop.permute.xlu0 %2813 }
 0x41c   : > { %2886 = vst.msk [vmem:[#allocation5 + $0xc0] sm:$0xff] %vm2861_vm15, %v2814_v9  ;;  %v3684_v9 = vld [vmem:[#allocation4 + $0xf9] sm:$0xff] }
 0x41d   : > { %v2820_v5 = vpop.permute.xlu1 %2819  ;;  %3556 = vrot.lane.b32.xlu0 %v7442_v60, %s5950_s9 }
 0x41e   : > { %2889 = vst.msk [vmem:[#allocation5 + $0xd8] sm:$0xff] %vm2861_vm15, %v2820_v5 }
 0x41f   : > { %3749 = vrot.lane.b32.xlu1 %v7435_v57, %s5951_s17  ;;  %v2818_v1 = vpop.permute.xlu0 %2817 }
 0x420   : > { %2888 = vst.msk [vmem:[#allocation5 + $0xd0] sm:$0xff] %vm2861_vm15, %v2818_v1 }
 0x421   : > { %v2824_v2 = vpop.permute.xlu1 %2823  ;;  %3171 = vrot.lane.b32.xlu0 %v7440_v61, %s5948_s12 }
 0x422   : > { %2891 = vst.msk [vmem:[#allocation5 + $0xe8] sm:$0xff] %vm2861_vm15, %v2824_v2  ;;  %v3299_v2 = vld [vmem:[#allocation4 + $0xfa] sm:$0xff] }
 0x423   : > { %3173 = vrot.lane.b32.xlu1 %v7435_v57, %s5948_s12  ;;  %v2822_v43 = vpop.permute.xlu0 %2821 }
 0x424   : > { %2890 = vst.msk [vmem:[#allocation5 + $0xe0] sm:$0xff] %vm2861_vm15, %v2822_v43 }
 0x425   : > { %v2828_v60 = vpop.permute.xlu1 %2827  ;;  %3940 = vrot.lane.b32.xlu0 %v7613_v20, %s5952_s10 }
 0x426   : > { %2893 = vst.msk [vmem:[#allocation5 + $0xf8] sm:$0xff] %vm2861_vm15, %v2828_v60 }
 0x427   : > { %3942 = vrot.lane.b32.xlu1 %v7608_v7, %s5952_s10  ;;  %v2826_v27 = vpop.permute.xlu0 %2825 }
 0x428   : > { %2892 = vst.msk [vmem:[#allocation5 + $0xf0] sm:$0xff] %vm2861_vm15, %v2826_v27  ;;  %vm5379_vm15 = vcmask 1047559  }
 0x429   : > { %v2961_v61 = vpop.permute.xlu1 %2960  ;;  %3364 = vrot.lane.b32.xlu0 %v7613_v20, %s5949_s26 }
 0x42a   : > { %3056 = vst.msk [vmem:[#allocation5 + $0x8] sm:$0xff] %vm3054_vm0, %v2961_v61  ;;  %v3685_v61 = vld [vmem:[#allocation4 + $0x109] sm:$0xff] }
 0x42b   : > { %3558 = vrot.lane.b32.xlu1 %v7471_v13, %s5950_s9  ;;  %v2959_v57 = vpop.permute.xlu0 %2958 }
 0x42c   : > { %3055 = vst.msk [vmem:[#allocation5] sm:$0xff] %vm3054_vm0, %v2959_v57 }
 0x42d   : > { %v2965_v35 = vpop.permute.xlu1 %2964  ;;  %3366 = vrot.lane.b32.xlu0 %v7608_v7, %s5949_s26 }
 0x42e   : > { %3058 = vst.msk [vmem:[#allocation5 + $0x18] sm:$0xff] %vm3054_vm0, %v2965_v35 }
 0x42f   : > { %3751 = vrot.lane.b32.xlu1 %v7462_v8, %s5951_s17  ;;  %v2963_v18 = vpop.permute.xlu0 %2962 }
 0x430   : > { %3057 = vst.msk [vmem:[#allocation5 + $0x10] sm:$0xff] %vm3054_vm0, %v2963_v18 }
 0x431   : > { %v2969_v20 = vpop.permute.xlu1 %2968  ;;  %3560 = vrot.lane.b32.xlu0 %v7464_v12, %s5950_s9 }
 0x432   : > { %3060 = vst.msk [vmem:[#allocation5 + $0x28] sm:$0xff] %vm3054_vm0, %v2969_v20 }
 0x433   : > { %3753 = vrot.lane.b32.xlu1 %v7457_v6, %s5951_s17  ;;  %v2967_v13 = vpop.permute.xlu0 %2966 }
 0x434   : > { %3059 = vst.msk [vmem:[#allocation5 + $0x20] sm:$0xff] %vm3054_vm0, %v2967_v13 }
 0x435   : > { %v2973_v7 = vpop.permute.xlu1 %2972  ;;  %3175 = vrot.lane.b32.xlu0 %v7462_v8, %s5948_s12 }
 0x436   : > { %3062 = vst.msk [vmem:[#allocation5 + $0x38] sm:$0xff] %vm3054_vm0, %v2973_v7  ;;  %v3878_v7 = vld [vmem:[#allocation4 + $0x10a] sm:$0xff] }
 0x437   : > { %3177 = vrot.lane.b32.xlu1 %v7457_v6, %s5948_s12  ;;  %v2971_v31 = vpop.permute.xlu0 %2970 }
 0x438   : > { %3061 = vst.msk [vmem:[#allocation5 + $0x30] sm:$0xff] %vm3054_vm0, %v2971_v31 }
 0x439   : > { %v2977_v12 = vpop.permute.xlu1 %2976  ;;  %3944 = vrot.lane.b32.xlu0 %v7621_v48, %s5952_s10 }
 0x43a   : > { %3064 = vst.msk [vmem:[#allocation5 + $0x48] sm:$0xff] %vm3054_vm0, %v2977_v12  ;;  %v3686_v12 = vld [vmem:[#allocation4 + $0x111] sm:$0xff] }
 0x43b   : > { %3946 = vrot.lane.b32.xlu1 %v7617_v24, %s5952_s10  ;;  %v2975_v51 = vpop.permute.xlu0 %2974 }
 0x43c   : > { %3063 = vst.msk [vmem:[#allocation5 + $0x40] sm:$0xff] %vm3054_vm0, %v2975_v51 }
 0x43d   : > { %v2981_v8 = vpop.permute.xlu1 %2980  ;;  %3368 = vrot.lane.b32.xlu0 %v7621_v48, %s5949_s26 }
 0x43e   : > { %3066 = vst.msk [vmem:[#allocation5 + $0x58] sm:$0xff] %vm3054_vm0, %v2981_v8 }
 0x43f   : > { %3562 = vrot.lane.b32.xlu1 %v7485_v46, %s5950_s9  ;;  %v2979_v6 = vpop.permute.xlu0 %2978 }
 0x440   : > { %3065 = vst.msk [vmem:[#allocation5 + $0x50] sm:$0xff] %vm3054_vm0, %v2979_v6  ;;  %v3301_v6 = vld [vmem:[#allocation4 + $0x112] sm:$0xff] }
 0x441   : > { %v2985_v10 = vpop.permute.xlu1 %2984  ;;  %3370 = vrot.lane.b32.xlu0 %v7617_v24, %s5949_s26 }
 0x442   : > { %3068 = vst.msk [vmem:[#allocation5 + $0x68] sm:$0xff] %vm3054_vm0, %v2985_v10 }
 0x443   : > { %3755 = vrot.lane.b32.xlu1 %v3679_v16, %s5951_s17  ;;  %v2983_v29 = vpop.permute.xlu0 %2982 }
 0x444   : > { %3067 = vst.msk [vmem:[#allocation5 + $0x60] sm:$0xff] %vm3054_vm0, %v2983_v29 }
 0x445   : > { %v3156_v48 = vpop.permute.xlu1 %3155  ;;  %3564 = vrot.lane.b32.xlu0 %v7479_v44, %s5950_s9 }
 0x446   : > { %3250 = vst.msk [vmem:[#allocation5 + $0x10] sm:$0xff] %vm3247_vm1, %v3156_v48 }
 0x447   : > { %3179 = vrot.lane.b32.xlu1 %v3679_v16, %s5948_s12  ;;  %v2987_v46 = vpop.permute.xlu0 %2986 }
 0x448   : > { %3069 = vst.msk [vmem:[#allocation5 + $0x70] sm:$0xff] %vm3054_vm0, %v2987_v46 }
 0x449   : > { %v3349_v24 = vpop.permute.xlu1 %3348  ;;  %2988 = vrot.lane.b32.xlu0 %v7479_v44, %s5946_s15 }
 0x44a   : > { %3443 = vst.msk [vmem:[#allocation5 + $0x10] sm:$0xff] %vm3440_vm2, %v3349_v24 }
 0x44b   : > { %3948 = vrot.lane.b32.xlu1 %v7631_v53, %s5952_s10  ;;  %v3158_v42 = vpop.permute.xlu0 %3157 }
 0x44c   : > { %3251 = vst.msk [vmem:[#allocation5 + $0x18] sm:$0xff] %vm3247_vm1, %v3158_v42  ;;  %v3687_v42 = vld [vmem:[#allocation4 + $0x121] sm:$0xff] }
 0x44d   : > { %v3543_v40 = vpop.permute.xlu1 %3542  ;;  %3757 = vrot.lane.b32.xlu0 %v3680_v22, %s5951_s17 }
 0x44e   : > { %3637 = vst.msk [vmem:[#allocation5 + $0x10] sm:$0xff] %vm3634_vm3, %v3543_v40 }
 0x44f   : > { %3372 = vrot.lane.b32.xlu1 %v7631_v53, %s5949_s26  ;;  %v3351_v45 = vpop.permute.xlu0 %3350 }
 0x450   : > { %3444 = vst.msk [vmem:[#allocation5 + $0x18] sm:$0xff] %vm3440_vm2, %v3351_v45 }
 0x451   : > { %v3736_v44 = vpop.permute.xlu1 %3735  ;;  %3181 = vrot.lane.b32.xlu0 %v3680_v22, %s5948_s12 }
 0x452   : > { %3830 = vst.msk [vmem:[#allocation5 + $0x10] sm:$0xff] %vm3827_vm4, %v3736_v44  ;;  %v3880_v44 = vld [vmem:[#allocation4 + $0x122] sm:$0xff] }
 0x453   : > { %3374 = vrot.lane.b32.xlu1 %v7626_v26, %s5949_s26  ;;  %v3545_v49 = vpop.permute.xlu0 %3544 }
 0x454   : > { %3638 = vst.msk [vmem:[#allocation5 + $0x18] sm:$0xff] %vm3634_vm3, %v3545_v49 }
 0x455   : > { %v3738_v37 = vpop.permute.xlu1 %3737  ;;  %3950 = vrot.lane.b32.xlu0 %v7626_v26, %s5952_s10 }
 0x456   : > { %3831 = vst.msk [vmem:[#allocation5 + $0x18] sm:$0xff] %vm3827_vm4, %v3738_v37  ;;  %v3688_v37 = vld [vmem:[#allocation4 + $0x129] sm:$0xff] }
 0x457   : > { %2990 = vrot.lane.b32.xlu1 %v7499_v25, %s5946_s15  ;;  %v3160_v53 = vpop.permute.xlu0 %3159 }
 0x458   : > { %3252 = vst.msk [vmem:[#allocation5 + $0x20] sm:$0xff] %vm3247_vm1, %v3160_v53 }
 0x459   : > { %v3162_v28 = vpop.permute.xlu1 %3161  ;;  %3566 = vrot.lane.b32.xlu0 %v7499_v25, %s5950_s9 }
 0x45a   : > { %3253 = vst.msk [vmem:[#allocation5 + $0x28] sm:$0xff] %vm3247_vm1, %v3162_v28 }
 0x45b   : > { %3759 = vrot.lane.b32.xlu1 %v3681_v55, %s5951_s17  ;;  %v3929_v50 = vpop.permute.xlu0 %3928 }
 0x45c   : > { %4023 = vst.msk [vmem:[#allocation5 + $0x10] sm:$0xff] %vm4020_vm5, %v3929_v50 }
 0x45d   : > { %v3931_v26 = vpop.permute.xlu1 %3930  ;;  %3568 = vrot.lane.b32.xlu0 %v7493_v33, %s5950_s9 }
 0x45e   : > { %4024 = vst.msk [vmem:[#allocation5 + $0x18] sm:$0xff] %vm4020_vm5, %v3931_v26 }
 0x45f   : > { %3183 = vrot.lane.b32.xlu1 %v3681_v55, %s5948_s12  ;;  %v3353_v23 = vpop.permute.xlu0 %3352  ;;  %v3303_v55 = vld [vmem:[#allocation4 + $0x12a] sm:$0xff] }
 0x460   : > { %3445 = vst.msk [vmem:[#allocation5 + $0x20] sm:$0xff] %vm3440_vm2, %v3353_v23 }
 0x461   : > { %v3547_v25 = vpop.permute.xlu1 %3546  ;;  %2992 = vrot.lane.b32.xlu0 %v7493_v33, %s5946_s15 }
 0x462   : > { %3639 = vst.msk [vmem:[#allocation5 + $0x20] sm:$0xff] %vm3634_vm3, %v3547_v25 }
 0x463   : > { %3952 = vrot.lane.b32.xlu1 %v7639_v11, %s5952_s10  ;;  %v3355_v54 = vpop.permute.xlu0 %3354  ;;  %v4055_v62 = vld [vmem:[#allocation5 + $0x10] sm:$0xff] }
 0x464   : > { %3446 = vst.msk [vmem:[#allocation5 + $0x28] sm:$0xff] %vm3440_vm2, %v3355_v54  ;;  %5760 = vmatprep.mubr.msk.f32.mxu1 %vm4101_vm6, %v4055_v62  ;;  %v2918_v54 = vld [vmem:[#allocation4 + $0x138] sm:$0xff] }
 0x465   : > { %v3740_v19 = vpop.permute.xlu1 %3739  ;;  %3761 = vrot.lane.b32.xlu0 %v3682_v34, %s5951_s17  ;;  %v4056_v38 = vld [vmem:[#allocation5 + $0x18] sm:$0xff] }
 0x466   : > { %3832 = vst.msk [vmem:[#allocation5 + $0x20] sm:$0xff] %vm3827_vm4, %v3740_v19  ;;  %5761 = vmatmul.mubr.msk.f32.vlgmr.msra.gmra.mxu1 %vm4101_vm6, %v4056_v38  ;;  %v3689_v19 = vld [vmem:[#allocation4 + $0x139] sm:$0xff] }
 0x467   : > { %3376 = vrot.lane.b32.xlu1 %v7639_v11, %s5949_s26  ;;  %v3549_v33 = vpop.permute.xlu0 %3548 }
 0x468   : > { %3640 = vst.msk [vmem:[#allocation5 + $0x28] sm:$0xff] %vm3634_vm3, %v3549_v33  ;;  %v3497_v33 = vld [vmem:[#allocation4 + $0x140] sm:$0xff] }
 0x469   : > { %v3742_v4 = vpop.permute.xlu1 %3741  ;;  %3185 = vrot.lane.b32.xlu0 %v3682_v34, %s5948_s12 }
 0x46a   : > { %3833 = vst.msk [vmem:[#allocation5 + $0x28] sm:$0xff] %vm3827_vm4, %v3742_v4 }
 0x46b   : > { %3378 = vrot.lane.b32.xlu1 %v7635_v63, %s5949_s26  ;;  %v3164_v3 = vpop.permute.xlu0 %3163 }
 0x46c   : > { %3254 = vst.msk [vmem:[#allocation5 + $0x30] sm:$0xff] %vm3247_vm1, %v3164_v3 }
 0x46d   : > { %v3166_v39 = vpop.permute.xlu1 %3165  ;;  %3954 = vrot.lane.b32.xlu0 %v7635_v63, %s5952_s10 }
 0x46e   : > { %3255 = vst.msk [vmem:[#allocation5 + $0x38] sm:$0xff] %vm3247_vm1, %v3166_v39 }
 0x46f   : > { %2994 = vrot.lane.b32.xlu1 %v7513_v58, %s5946_s15  ;;  %v3933_v11 = vpop.permute.xlu0 %3932 }
 0x470   : > { %4025 = vst.msk [vmem:[#allocation5 + $0x20] sm:$0xff] %vm4020_vm5, %v3933_v11  ;;  %v3882_v11 = vld [vmem:[#allocation4 + $0x13a] sm:$0xff] }
 0x471   : > { %v3935_v52 = vpop.permute.xlu1 %3934  ;;  %3570 = vrot.lane.b32.xlu0 %v7513_v58, %s5950_s9 }
 0x472   : > { %4026 = vst.msk [vmem:[#allocation5 + $0x28] sm:$0xff] %vm4020_vm5, %v3935_v52 }
 0x473   : > { %3763 = vrot.lane.b32.xlu1 %v3683_v21, %s5951_s17  ;;  %v3357_v0 = vpop.permute.xlu0 %3356 }
 0x474   : > { %3447 = vst.msk [vmem:[#allocation5 + $0x30] sm:$0xff] %vm3440_vm2, %v3357_v0 }
 0x475   : > { %v3551_v63 = vpop.permute.xlu1 %3550  ;;  %3572 = vrot.lane.b32.xlu0 %v7507_v59, %s5950_s9 }
 0x476   : > { %3641 = vst.msk [vmem:[#allocation5 + $0x30] sm:$0xff] %vm3634_vm3, %v3551_v63 }
 0x477   : > { %3187 = vrot.lane.b32.xlu1 %v3683_v21, %s5948_s12  ;;  %v3359_v56 = vpop.permute.xlu0 %3358  ;;  %v4057_v32 = vld [vmem:[#allocation5 + $0x20] sm:$0xff]  ;;  %v3690_v21 = vld [vmem:[#allocation4 + $0x141] sm:$0xff] }
 0x478   : > { %3448 = vst.msk [vmem:[#allocation5 + $0x38] sm:$0xff] %vm3440_vm2, %v3359_v56  ;;  %5763 = vmatprep.mubr.msk.f32.mxu1 %vm4101_vm6, %v4057_v32 }
 0x479   : > { %v3744_v58 = vpop.permute.xlu1 %3743  ;;  %2996 = vrot.lane.b32.xlu0 %v7507_v59, %s5946_s15  ;;  %v4058_v30 = vld [vmem:[#allocation5 + $0x28] sm:$0xff] }
 0x47a   : > { %3834 = vst.msk [vmem:[#allocation5 + $0x30] sm:$0xff] %vm3827_vm4, %v3744_v58  ;;  %5764 = vmatmul.mubr.msk.f32.gmra.mxu1 %vm4101_vm6, %v4058_v30  ;;  %v3305_v58 = vld [vmem:[#allocation4 + $0x142] sm:$0xff] }
 0x47b   : > { %3956 = vrot.lane.b32.xlu1 %v7646_v47, %s5952_s10  ;;  %v3553_v36 = vpop.permute.xlu0 %3552 }
 0x47c   : > { %3642 = vst.msk [vmem:[#allocation5 + $0x38] sm:$0xff] %vm3634_vm3, %v3553_v36 }
 0x47d   : > { %v3746_v5 = vpop.permute.xlu1 %3745  ;;  %3765 = vrot.lane.b32.xlu0 %v3684_v9, %s5951_s17 }
 0x47e   : > { %3835 = vst.msk [vmem:[#allocation5 + $0x38] sm:$0xff] %vm3827_vm4, %v3746_v5 }
 0x47f   : > { %3380 = vrot.lane.b32.xlu1 %v7646_v47, %s5949_s26  ;;  %v3168_v59 = vpop.permute.xlu0 %3167 }
 0x480   : > { %3256 = vst.msk [vmem:[#allocation5 + $0x40] sm:$0xff] %vm3247_vm1, %v3168_v59 }
 0x481   : > { %v3170_v1 = vpop.permute.xlu1 %3169  ;;  %3189 = vrot.lane.b32.xlu0 %v3684_v9, %s5948_s12  ;;  %v2920_v9 = vld [vmem:[#allocation4 + $0x150] sm:$0xff] }
 0x482   : > { %3257 = vst.msk [vmem:[#allocation5 + $0x48] sm:$0xff] %vm3247_vm1, %v3170_v1 }
 0x483   : > { %3382 = vrot.lane.b32.xlu1 %v3299_v2, %s5949_s26  ;;  %v3937_v43 = vpop.permute.xlu0 %3936 }
 0x484   : > { %4027 = vst.msk [vmem:[#allocation5 + $0x30] sm:$0xff] %vm4020_vm5, %v3937_v43 }
 0x485   : > { %v3939_v60 = vpop.permute.xlu1 %3938  ;;  %3958 = vrot.lane.b32.xlu0 %v3299_v2, %s5952_s10  ;;  %v3691_v2 = vld [vmem:[#allocation4 + $0x151] sm:$0xff] }
 0x486   : > { %4028 = vst.msk [vmem:[#allocation5 + $0x38] sm:$0xff] %vm4020_vm5, %v3939_v60  ;;  %v3499_v60 = vld [vmem:[#allocation4 + $0x158] sm:$0xff] }
 0x487   : > { %2998 = vrot.lane.b32.xlu1 %v7527_v41, %s5946_s15  ;;  %v3361_v47 = vpop.permute.xlu0 %3360 }
 0x488   : > { %3449 = vst.msk [vmem:[#allocation5 + $0x40] sm:$0xff] %vm3440_vm2, %v3361_v47 }
 0x489   : > { %v3555_v27 = vpop.permute.xlu1 %3554  ;;  %3574 = vrot.lane.b32.xlu0 %v7527_v41, %s5950_s9 }
 0x48a   : > { %3643 = vst.msk [vmem:[#allocation5 + $0x40] sm:$0xff] %vm3634_vm3, %v3555_v27 }
 0x48b   : > { %3767 = vrot.lane.b32.xlu1 %v3685_v61, %s5951_s17  ;;  %v3363_v57 = vpop.permute.xlu0 %3362  ;;  %v4059_v35 = vld [vmem:[#allocation5 + $0x30] sm:$0xff] }
 0x48c   : > { %3450 = vst.msk [vmem:[#allocation5 + $0x48] sm:$0xff] %vm3440_vm2, %v3363_v57  ;;  %5766 = vmatprep.mubr.msk.f32.mxu1 %vm4101_vm6, %v4059_v35  ;;  %v3884_v57 = vld [vmem:[#allocation4 + $0x152] sm:$0xff] }
 0x48d   : > { %v3748_v18 = vpop.permute.xlu1 %3747  ;;  %3576 = vrot.lane.b32.xlu0 %v7521_v17, %s5950_s9  ;;  %v4060_v20 = vld [vmem:[#allocation5 + $0x38] sm:$0xff] }
 0x48e   : > { %3836 = vst.msk [vmem:[#allocation5 + $0x40] sm:$0xff] %vm3827_vm4, %v3748_v18  ;;  %5767 = vmatmul.mubr.msk.f32.gmra.mxu1 %vm4101_vm6, %v4060_v20  ;;  %v3692_v18 = vld [vmem:[#allocation4 + $0x159] sm:$0xff] }
 0x48f   : > { %3191 = vrot.lane.b32.xlu1 %v3685_v61, %s5948_s12  ;;  %v3557_v41 = vpop.permute.xlu0 %3556 }
 0x490   : > { %3644 = vst.msk [vmem:[#allocation5 + $0x48] sm:$0xff] %vm3634_vm3, %v3557_v41 }
 0x491   : > { %v3750_v13 = vpop.permute.xlu1 %3749  ;;  %3000 = vrot.lane.b32.xlu0 %v7521_v17, %s5946_s15 }
 0x492   : > { %3837 = vst.msk [vmem:[#allocation5 + $0x48] sm:$0xff] %vm3827_vm4, %v3750_v13 }
 0x493   : > { %3960 = vrot.lane.b32.xlu1 %v3878_v7, %s5952_s10  ;;  %v3172_v31 = vpop.permute.xlu0 %3171 }
 0x494   : > { %3258 = vst.msk [vmem:[#allocation5 + $0x50] sm:$0xff] %vm3247_vm1, %v3172_v31  ;;  %v3307_v31 = vld [vmem:[#allocation4 + $0x15a] sm:$0xff] }
 0x495   : > { %v3174_v51 = vpop.permute.xlu1 %3173  ;;  %3769 = vrot.lane.b32.xlu0 %v3686_v12, %s5951_s17 }
 0x496   : > { %3259 = vst.msk [vmem:[#allocation5 + $0x58] sm:$0xff] %vm3247_vm1, %v3174_v51 }
 0x497   : > { %3384 = vrot.lane.b32.xlu1 %v3878_v7, %s5949_s26  ;;  %v3941_v8 = vpop.permute.xlu0 %3940 }
 0x498   : > { %4029 = vst.msk [vmem:[#allocation5 + $0x40] sm:$0xff] %vm4020_vm5, %v3941_v8  ;;  %v2922_v8 = vld [vmem:[#allocation4 + $0x168] sm:$0xff] }
 0x499   : > { %v3943_v17 = vpop.permute.xlu1 %3942  ;;  %3193 = vrot.lane.b32.xlu0 %v3686_v12, %s5948_s12 }
 0x49a   : > { %4030 = vst.msk [vmem:[#allocation5 + $0x48] sm:$0xff] %vm4020_vm5, %v3943_v17 }
 0x49b   : > { %3386 = vrot.lane.b32.xlu1 %v3301_v6, %s5949_s26  ;;  %v3365_v10 = vpop.permute.xlu0 %3364 }
 0x49c   : > { %3451 = vst.msk [vmem:[#allocation5 + $0x50] sm:$0xff] %vm3440_vm2, %v3365_v10 }
 0x49d   : > { %v3559_v16 = vpop.permute.xlu1 %3558  ;;  %3962 = vrot.lane.b32.xlu0 %v3301_v6, %s5952_s10 }
 0x49e   : > { %3645 = vst.msk [vmem:[#allocation5 + $0x50] sm:$0xff] %vm3634_vm3, %v3559_v16  ;;  %v3693_v16 = vld [vmem:[#allocation4 + $0x169] sm:$0xff] }
 0x49f   : > { %3002 = vrot.lane.b32.xlu1 %v7541_v15, %s5946_s15  ;;  %v3367_v29 = vpop.permute.xlu0 %3366  ;;  %v4061_v48 = vld [vmem:[#allocation5 + $0x40] sm:$0xff] }
 0x4a0   : > { %3452 = vst.msk [vmem:[#allocation5 + $0x58] sm:$0xff] %vm3440_vm2, %v3367_v29  ;;  %5769 = vmatprep.mubr.msk.f32.mxu1 %vm4101_vm6, %v4061_v48  ;;  %v3501_v48 = vld [vmem:[#allocation4 + $0x170] sm:$0xff] }
 0x4a1   : > { %v3752_v46 = vpop.permute.xlu1 %3751  ;;  %3578 = vrot.lane.b32.xlu0 %v7541_v15, %s5950_s9  ;;  %v4062_v24 = vld [vmem:[#allocation5 + $0x48] sm:$0xff] }
 0x4a2   : > { %3838 = vst.msk [vmem:[#allocation5 + $0x50] sm:$0xff] %vm3827_vm4, %v3752_v46  ;;  %5770 = vmatmul.mubr.msk.f32.gmra.mxu1 %vm4101_vm6, %v4062_v24 }
 0x4a3   : > { %3771 = vrot.lane.b32.xlu1 %v3687_v42, %s5951_s17  ;;  %v3561_v22 = vpop.permute.xlu0 %3560 }
 0x4a4   : > { %3646 = vst.msk [vmem:[#allocation5 + $0x58] sm:$0xff] %vm3634_vm3, %v3561_v22  ;;  %v3886_v22 = vld [vmem:[#allocation4 + $0x16a] sm:$0xff] }
 0x4a5   : > { %v3754_v40 = vpop.permute.xlu1 %3753  ;;  %3580 = vrot.lane.b32.xlu0 %v7535_v14, %s5950_s9 }
 0x4a6   : > { %3839 = vst.msk [vmem:[#allocation5 + $0x58] sm:$0xff] %vm3827_vm4, %v3754_v40 }
 0x4a7   : > { %3195 = vrot.lane.b32.xlu1 %v3687_v42, %s5948_s12  ;;  %v3176_v15 = vpop.permute.xlu0 %3175 }
 0x4a8   : > { %3260 = vst.msk [vmem:[#allocation5 + $0x60] sm:$0xff] %vm3247_vm1, %v3176_v15  ;;  %v3694_v15 = vld [vmem:[#allocation4 + $0x171] sm:$0xff] }
 0x4a9   : > { %v3178_v45 = vpop.permute.xlu1 %3177  ;;  %3004 = vrot.lane.b32.xlu0 %v7535_v14, %s5946_s15 }
 0x4aa   : > { %3261 = vst.msk [vmem:[#allocation5 + $0x68] sm:$0xff] %vm3247_vm1, %v3178_v45 }
 0x4ab   : > { %3964 = vrot.lane.b32.xlu1 %v3880_v44, %s5952_s10  ;;  %v3945_v49 = vpop.permute.xlu0 %3944 }
 0x4ac   : > { %4031 = vst.msk [vmem:[#allocation5 + $0x50] sm:$0xff] %vm4020_vm5, %v3945_v49 }
 0x4ad   : > { %v3947_v53 = vpop.permute.xlu1 %3946  ;;  %3773 = vrot.lane.b32.xlu0 %v3688_v37, %s5951_s17 }
 0x4ae   : > { %4032 = vst.msk [vmem:[#allocation5 + $0x58] sm:$0xff] %vm4020_vm5, %v3947_v53  ;;  %v3309_v53 = vld [vmem:[#allocation4 + $0x172] sm:$0xff] }
 0x4af   : > { %3388 = vrot.lane.b32.xlu1 %v3880_v44, %s5949_s26  ;;  %v3369_v28 = vpop.permute.xlu0 %3368 }
 0x4b0   : > { %3453 = vst.msk [vmem:[#allocation5 + $0x60] sm:$0xff] %vm3440_vm2, %v3369_v28 }
 0x4b1   : > { %v3563_v14 = vpop.permute.xlu1 %3562  ;;  %3197 = vrot.lane.b32.xlu0 %v3688_v37, %s5948_s12 }
 0x4b2   : > { %3647 = vst.msk [vmem:[#allocation5 + $0x60] sm:$0xff] %vm3634_vm3, %v3563_v14 }
 0x4b3   : > { %3390 = vrot.lane.b32.xlu1 %v3303_v55, %s5949_s26  ;;  %v3371_v50 = vpop.permute.xlu0 %3370  ;;  %v4063_v26 = vld [vmem:[#allocation5 + $0x50] sm:$0xff] }
 0x4b4   : > { %3454 = vst.msk [vmem:[#allocation5 + $0x68] sm:$0xff] %vm3440_vm2, %v3371_v50  ;;  %5772 = vmatprep.mubr.msk.f32.mxu1 %vm4101_vm6, %v4063_v26 }
 0x4b5   : > { %v3756_v23 = vpop.permute.xlu1 %3755  ;;  %3966 = vrot.lane.b32.xlu0 %v3303_v55, %s5952_s10  ;;  %v4064_v25 = vld [vmem:[#allocation5 + $0x58] sm:$0xff]  ;;  %v2924_v55 = vld [vmem:[#allocation4 + $0x180] sm:$0xff] }
 0x4b6   : > { %3840 = vst.msk [vmem:[#allocation5 + $0x60] sm:$0xff] %vm3827_vm4, %v3756_v23  ;;  %5773 = vmatmul.mubr.msk.f32.gmra.mxu1 %vm4101_vm6, %v4064_v25  ;;  %v3695_v25 = vld [vmem:[#allocation4 + $0x181] sm:$0xff] }
 0x4b7   : > { %3006 = vrot.lane.b32.xlu1 %v2918_v54, %s5946_s15  ;;  %v3565_v62 = vpop.permute.xlu0 %3564 }
 0x4b8   : > { %3648 = vst.msk [vmem:[#allocation5 + $0x68] sm:$0xff] %vm3634_vm3, %v3565_v62  ;;  %v3503_v62 = vld [vmem:[#allocation4 + $0x188] sm:$0xff] }
 0x4b9   : > { %v3180_v34 = vpop.permute.xlu1 %3179  ;;  %3582 = vrot.lane.b32.xlu0 %v2918_v54, %s5950_s9 }
 0x4ba   : > { %3262 = vst.msk [vmem:[#allocation5 + $0x70] sm:$0xff] %vm3247_vm1, %v3180_v34 }
 0x4bb   : > { %3775 = vrot.lane.b32.xlu1 %v3689_v19, %s5951_s17  ;;  %v2989_v38 = vpop.permute.xlu0 %2988 }
 0x4bc   : > { %3070 = vst.msk [vmem:[#allocation5 + $0x78] sm:$0xff] %vm3054_vm0, %v2989_v38 }
 0x4bd   : > { %v3949_v4 = vpop.permute.xlu1 %3948  ;;  %3584 = vrot.lane.b32.xlu0 %v3497_v33, %s5950_s9 }
 0x4be   : > { %4033 = vst.msk [vmem:[#allocation5 + $0x60] sm:$0xff] %vm4020_vm5, %v3949_v4  ;;  %v3696_v4 = vld [vmem:[#allocation4 + $0x189] sm:$0xff] }
 0x4bf   : > { %3199 = vrot.lane.b32.xlu1 %v3689_v19, %s5948_s12  ;;  %v3758_v3 = vpop.permute.xlu0 %3757  ;;  %v3087_v19 = vld [vmem:[#allocation4 + $0x19] sm:$0xff] }
 0x4c0   : > { %3841 = vst.msk [vmem:[#allocation5 + $0x68] sm:$0xff] %vm3827_vm4, %v3758_v3 }
 0x4c1   : > { %v3373_v39 = vpop.permute.xlu1 %3372  ;;  %3008 = vrot.lane.b32.xlu0 %v3497_v33, %s5946_s15 }
 0x4c2   : > { %3455 = vst.msk [vmem:[#allocation5 + $0x70] sm:$0xff] %vm3440_vm2, %v3373_v39 }
 0x4c3   : > { %3968 = vrot.lane.b32.xlu1 %v3882_v11, %s5952_s10  ;;  %v3182_v52 = vpop.permute.xlu0 %3181 }
 0x4c4   : > { %3263 = vst.msk [vmem:[#allocation5 + $0x78] sm:$0xff] %vm3247_vm1, %v3182_v52  ;;  %v3088_v52 = vld [vmem:[#allocation4 + $0x21] sm:$0xff] }
 0x4c5   : > { %v3375_v0 = vpop.permute.xlu1 %3374  ;;  %3777 = vrot.lane.b32.xlu0 %v3690_v21, %s5951_s17  ;;  %v4065_v63 = vld [vmem:[#allocation5 + $0x60] sm:$0xff] }
 0x4c6   : > { %3456 = vst.msk [vmem:[#allocation5 + $0x78] sm:$0xff] %vm3440_vm2, %v3375_v0  ;;  %5775 = vmatprep.mubr.msk.f32.mxu1 %vm4101_vm6, %v4065_v63  ;;  %v3888_v0 = vld [vmem:[#allocation4 + $0x182] sm:$0xff] }
 0x4c7   : > { %3392 = vrot.lane.b32.xlu1 %v3882_v11, %s5949_s26  ;;  %v3951_v56 = vpop.permute.xlu0 %3950 }
 0x4c8   : > { %4034 = vst.msk [vmem:[#allocation5 + $0x68] sm:$0xff] %vm4020_vm5, %v3951_v56  ;;  %v3280_v56 = vld [vmem:[#allocation4 + $0x1a] sm:$0xff] }
 0x4c9   : > { %v2991_v32 = vpop.permute.xlu1 %2990  ;;  %3201 = vrot.lane.b32.xlu0 %v3690_v21, %s5948_s12 }
 0x4ca   : > { %3071 = vst.msk [vmem:[#allocation5 + $0x80] sm:$0xff] %vm3054_vm0, %v2991_v32 }
 0x4cb   : > { %3394 = vrot.lane.b32.xlu1 %v3305_v58, %s5949_s26  ;;  %v3567_v30 = vpop.permute.xlu0 %3566 }
 0x4cc   : > { %3649 = vst.msk [vmem:[#allocation5 + $0x70] sm:$0xff] %vm3634_vm3, %v3567_v30  ;;  %v3889_v30 = vld [vmem:[#allocation4 + $0x18a] sm:$0xff] }
 0x4cd   : > { %v3760_v36 = vpop.permute.xlu1 %3759  ;;  %3970 = vrot.lane.b32.xlu0 %v3305_v58, %s5952_s10 }
 0x4ce   : > { %3842 = vst.msk [vmem:[#allocation5 + $0x70] sm:$0xff] %vm3827_vm4, %v3760_v36 }
 0x4cf   : > { %3010 = vrot.lane.b32.xlu1 %v2920_v9, %s5946_s15  ;;  %v3569_v5 = vpop.permute.xlu0 %3568  ;;  %v4066_v59 = vld [vmem:[#allocation5 + $0x68] sm:$0xff] }
 0x4d0   : > { %3650 = vst.msk [vmem:[#allocation5 + $0x78] sm:$0xff] %vm3634_vm3, %v3569_v5  ;;  %5776 = vmatmul.mubr.msk.f32.gmra.mxu1 %vm4101_vm6, %v4066_v59 }
 0x4d1   : > { %v3184_v1 = vpop.permute.xlu1 %3183  ;;  %3586 = vrot.lane.b32.xlu0 %v2920_v9, %s5950_s9 }
 0x4d2   : > { %3264 = vst.msk [vmem:[#allocation5 + $0x80] sm:$0xff] %vm3247_vm1, %v3184_v1  ;;  %v3281_v1 = vld [vmem:[#allocation4 + $0x22] sm:$0xff] }
 0x4d3   : > { %3779 = vrot.lane.b32.xlu1 %v3691_v2, %s5951_s17  ;;  %v2993_v43 = vpop.permute.xlu0 %2992 }
 0x4d4   : > { %3072 = vst.msk [vmem:[#allocation5 + $0x88] sm:$0xff] %vm3054_vm0, %v2993_v43 }
 0x4d5   : > { %v3953_v47 = vpop.permute.xlu1 %3952  ;;  %3588 = vrot.lane.b32.xlu0 %v3499_v60, %s5950_s9 }
 0x4d6   : > { %4035 = vst.msk [vmem:[#allocation5 + $0x70] sm:$0xff] %vm4020_vm5, %v3953_v47  ;;  %v3474_v47 = vld [vmem:[#allocation4 + $0x30] sm:$0xff] }
 0x4d7   : > { %3203 = vrot.lane.b32.xlu1 %v3691_v2, %s5948_s12  ;;  %v3762_v27 = vpop.permute.xlu0 %3761  ;;  %v3504_v2 = vld [vmem:[#allocation4 + $0x198] sm:$0xff] }
 0x4d8   : > { %3843 = vst.msk [vmem:[#allocation5 + $0x78] sm:$0xff] %vm3827_vm4, %v3762_v27  ;;  %v3505_v27 = vld [vmem:[#allocation4 + $0x1a0] sm:$0xff] }
 0x4d9   : > { %v3377_v61 = vpop.permute.xlu1 %3376  ;;  %3012 = vrot.lane.b32.xlu0 %v3499_v60, %s5946_s15 }
 0x4da   : > { %3457 = vst.msk [vmem:[#allocation5 + $0x80] sm:$0xff] %vm3440_vm2, %v3377_v61 }
 0x4db   : > { %3972 = vrot.lane.b32.xlu1 %v3884_v57, %s5952_s10  ;;  %v3186_v35 = vpop.permute.xlu0 %3185 }
 0x4dc   : > { %3265 = vst.msk [vmem:[#allocation5 + $0x88] sm:$0xff] %vm3247_vm1, %v3186_v35  ;;  %v3475_v35 = vld [vmem:[#allocation4 + $0x38] sm:$0xff] }
 0x4dd   : > { %v3379_v20 = vpop.permute.xlu1 %3378  ;;  %3781 = vrot.lane.b32.xlu0 %v3692_v18, %s5951_s17  ;;  %v4067_v41 = vld [vmem:[#allocation5 + $0x70] sm:$0xff] }
 0x4de   : > { %3458 = vst.msk [vmem:[#allocation5 + $0x88] sm:$0xff] %vm3440_vm2, %v3379_v20  ;;  %5778 = vmatprep.mubr.msk.f32.mxu1 %vm4101_vm6, %v4067_v41 }
 0x4df   : > { %3396 = vrot.lane.b32.xlu1 %v3884_v57, %s5949_s26  ;;  %v3955_v13 = vpop.permute.xlu0 %3954 }
 0x4e0   : > { %4036 = vst.msk [vmem:[#allocation5 + $0x78] sm:$0xff] %vm4020_vm5, %v3955_v13 }
 0x4e1   : > { %v2995_v7 = vpop.permute.xlu1 %2994  ;;  %3205 = vrot.lane.b32.xlu0 %v3692_v18, %s5948_s12  ;;  %v3697_v18 = vld [vmem:[#allocation4 + $0x199] sm:$0xff] }
 0x4e2   : > { %3073 = vst.msk [vmem:[#allocation5 + $0x90] sm:$0xff] %vm3054_vm0, %v2995_v7  ;;  %v3667_v7 = vld [vmem:[#allocation4 + $0x31] sm:$0xff] }
 0x4e3   : > { %3398 = vrot.lane.b32.xlu1 %v3307_v31, %s5949_s26  ;;  %v3571_v12 = vpop.permute.xlu0 %3570 }
 0x4e4   : > { %3651 = vst.msk [vmem:[#allocation5 + $0x80] sm:$0xff] %vm3634_vm3, %v3571_v12 }
 0x4e5   : > { %v3764_v51 = vpop.permute.xlu1 %3763  ;;  %3974 = vrot.lane.b32.xlu0 %v3307_v31, %s5952_s10  ;;  %v3698_v31 = vld [vmem:[#allocation4 + $0x1a1] sm:$0xff] }
 0x4e6   : > { %3844 = vst.msk [vmem:[#allocation5 + $0x80] sm:$0xff] %vm3827_vm4, %v3764_v51 }
 0x4e7   : > { %3014 = vrot.lane.b32.xlu1 %v2922_v8, %s5946_s15  ;;  %v3573_v17 = vpop.permute.xlu0 %3572  ;;  %v4068_v6 = vld [vmem:[#allocation5 + $0x78] sm:$0xff] }
 0x4e8   : > { %3652 = vst.msk [vmem:[#allocation5 + $0x88] sm:$0xff] %vm3634_vm3, %v3573_v17  ;;  %5779 = vmatmul.mubr.msk.f32.gmra.mxu1 %vm4101_vm6, %v4068_v6  ;;  %v3890_v17 = vld [vmem:[#allocation4 + $0x19a] sm:$0xff] }
 0x4e9   : > { %v3188_v10 = vpop.permute.xlu1 %3187  ;;  %3590 = vrot.lane.b32.xlu0 %v2922_v8, %s5950_s9  ;;  %v3668_v8 = vld [vmem:[#allocation4 + $0x39] sm:$0xff] }
 0x4ea   : > { %3266 = vst.msk [vmem:[#allocation5 + $0x90] sm:$0xff] %vm3247_vm1, %v3188_v10 }
 0x4eb   : > { %3783 = vrot.lane.b32.xlu1 %v3693_v16, %s5951_s17  ;;  %v2997_v29 = vpop.permute.xlu0 %2996 }
 0x4ec   : > { %3074 = vst.msk [vmem:[#allocation5 + $0x98] sm:$0xff] %vm3054_vm0, %v2997_v29  ;;  %v3860_v29 = vld [vmem:[#allocation4 + $0x32] sm:$0xff] }
 0x4ed   : > { %v3957_v46 = vpop.permute.xlu1 %3956  ;;  %3592 = vrot.lane.b32.xlu0 %v3501_v48, %s5950_s9 }
 0x4ee   : > { %4037 = vst.msk [vmem:[#allocation5 + $0x80] sm:$0xff] %vm4020_vm5, %v3957_v46 }
 0x4ef   : > { %3207 = vrot.lane.b32.xlu1 %v3693_v16, %s5948_s12  ;;  %v3766_v24 = vpop.permute.xlu0 %3765 }
 0x4f0   : > { %3845 = vst.msk [vmem:[#allocation5 + $0x88] sm:$0xff] %vm3827_vm4, %v3766_v24 }
 0x4f1   : > { %v3381_v42 = vpop.permute.xlu1 %3380  ;;  %3016 = vrot.lane.b32.xlu0 %v3501_v48, %s5946_s15  ;;  %v3891_v48 = vld [vmem:[#allocation4 + $0x1a2] sm:$0xff] }
 0x4f2   : > { %3459 = vst.msk [vmem:[#allocation5 + $0x90] sm:$0xff] %vm3440_vm2, %v3381_v42  ;;  %v3861_v42 = vld [vmem:[#allocation4 + $0x3a] sm:$0xff] }
 0x4f3   : > { %3976 = vrot.lane.b32.xlu1 %v3886_v22, %s5952_s10  ;;  %v3190_v40 = vpop.permute.xlu0 %3189 }
 0x4f4   : > { %3267 = vst.msk [vmem:[#allocation5 + $0x98] sm:$0xff] %vm3247_vm1, %v3190_v40 }
 0x4f5   : > { %v3383_v45 = vpop.permute.xlu1 %3382  ;;  %3785 = vrot.lane.b32.xlu0 %v3694_v15, %s5951_s17  ;;  %v4069_v44 = vld [vmem:[#allocation5 + $0x80] sm:$0xff] }
 0x4f6   : > { %3460 = vst.msk [vmem:[#allocation5 + $0x98] sm:$0xff] %vm3440_vm2, %v3383_v45  ;;  %5781 = vmatprep.mubr.msk.f32.mxu1 %vm4101_vm6, %v4069_v44 }
 0x4f7   : > { %3400 = vrot.lane.b32.xlu1 %v3886_v22, %s5949_s26  ;;  %v3959_v49 = vpop.permute.xlu0 %3958 }
 0x4f8   : > { %4038 = vst.msk [vmem:[#allocation5 + $0x88] sm:$0xff] %vm4020_vm5, %v3959_v49 }
 0x4f9   : > { %v2999_v37 = vpop.permute.xlu1 %2998  ;;  %3209 = vrot.lane.b32.xlu0 %v3694_v15, %s5948_s12 }
 0x4fa   : > { %3075 = vst.msk [vmem:[#allocation5 + $0xa0] sm:$0xff] %vm3054_vm0, %v2999_v37 }
 0x4fb   : > { %3402 = vrot.lane.b32.xlu1 %v3309_v53, %s5949_s26  ;;  %v3575_v28 = vpop.permute.xlu0 %3574 }
 0x4fc   : > { %3653 = vst.msk [vmem:[#allocation5 + $0x90] sm:$0xff] %vm3634_vm3, %v3575_v28 }
 0x4fd   : > { %v3768_v14 = vpop.permute.xlu1 %3767  ;;  %3978 = vrot.lane.b32.xlu0 %v3309_v53, %s5952_s10 }
 0x4fe   : > { %3846 = vst.msk [vmem:[#allocation5 + $0x90] sm:$0xff] %vm3827_vm4, %v3768_v14 }
 0x4ff   : > { %3018 = vrot.lane.b32.xlu1 %v2924_v55, %s5946_s15  ;;  %v3577_v50 = vpop.permute.xlu0 %3576  ;;  %v4070_v26 = vld [vmem:[#allocation5 + $0x88] sm:$0xff] }
 0x500   : > { %3654 = vst.msk [vmem:[#allocation5 + $0x98] sm:$0xff] %vm3634_vm3, %v3577_v50  ;;  %5782 = vmatmul.mubr.msk.f32.gmra.mxu1 %vm4101_vm6, %v4070_v26 }
 0x501   : > { %v3192_v23 = vpop.permute.xlu1 %3191  ;;  %3594 = vrot.lane.b32.xlu0 %v2924_v55, %s5950_s9 }
 0x502   : > { %3268 = vst.msk [vmem:[#allocation5 + $0xa0] sm:$0xff] %vm3247_vm1, %v3192_v23 }
 0x503   : > { %3787 = vrot.lane.b32.xlu1 %v3695_v25, %s5951_s17  ;;  %v3001_v54 = vpop.permute.xlu0 %3000 }
 0x504   : > { %3076 = vst.msk [vmem:[#allocation5 + $0xa8] sm:$0xff] %vm3054_vm0, %v3001_v54 }
 0x505   : > { %v3961_v34 = vpop.permute.xlu1 %3960  ;;  %3596 = vrot.lane.b32.xlu0 %v3503_v62, %s5950_s9 }
 0x506   : > { %4039 = vst.msk [vmem:[#allocation5 + $0x90] sm:$0xff] %vm4020_vm5, %v3961_v34 }
 0x507   : > { %3151 = vrot.lane.b32.xlu1 %v3087_v19, %s5948_s12  ;;  %v3770_v38 = vpop.permute.xlu0 %3769  ;;  %v5953_v19 = vmov 1983009808  }
 0x508   : > { %3847 = vst.msk [vmem:[#allocation5 + $0x98] sm:$0xff] %vm3827_vm4, %v3770_v38  ;;  %v4521_v38 = vunpack.c.l.s4 %v5953_v19 }
 0x509   : > { %v3385_v33 = vpop.permute.xlu1 %3384  ;;  %3020 = vrot.lane.b32.xlu0 %v3503_v62, %s5946_s15  ;;  %v8204_v62 = vld [vmem:[%s8592_s4] ss:$0 sm:$0xff] }
 0x50a   : > { %3461 = vst.msk [vmem:[#allocation5 + $0xa0] sm:$0xff] %vm3440_vm2, %v3385_v33  ;;  %v4523_v33 = vlaneseq }
 0x50b   : > { %3789 = vrot.lane.b32.xlu1 %v3696_v4, %s5951_s17  ;;  %v3194_v3 = vpop.permute.xlu0 %3193 }
 0x50c   : > { %3269 = vst.msk [vmem:[#allocation5 + $0xa8] sm:$0xff] %vm3247_vm1, %v3194_v3 }
 0x50d   : > { %v3387_v39 = vpop.permute.xlu1 %3386  ;;  %3211 = vrot.lane.b32.xlu0 %v3695_v25, %s5948_s12  ;;  %v4071_v11 = vld [vmem:[#allocation5 + $0x90] sm:$0xff] }
 0x50e   : > { %3462 = vst.msk [vmem:[#allocation5 + $0xa8] sm:$0xff] %vm3440_vm2, %v3387_v39  ;;  %5784 = vmatprep.mubr.msk.f32.mxu1 %vm4101_vm6, %v4071_v11 }
 0x50f   : > { %3153 = vrot.lane.b32.xlu1 %v3088_v52, %s5948_s12  ;;  %v3963_v21 = vpop.permute.xlu0 %3962 }
 0x510   : > { %4040 = vst.msk [vmem:[#allocation5 + $0x98] sm:$0xff] %vm4020_vm5, %v3963_v21  ;;  %v4522_v21 = vunpack.c.0.s8 %v4521_v38 }
 0x511   : > { %v3003_v63 = vpop.permute.xlu1 %3002  ;;  %3980 = vrot.lane.b32.xlu0 %v3888_v0, %s5952_s10 }
 0x512   : > { %3077 = vst.msk [vmem:[#allocation5 + $0xb0] sm:$0xff] %vm3054_vm0, %v3003_v63 }
 0x513   : > { %3344 = vrot.lane.b32.xlu1 %v3280_v56, %s5949_s26  ;;  %v3579_v32 = vpop.permute.xlu0 %3578 }
 0x514   : > { %3655 = vst.msk [vmem:[#allocation5 + $0xa0] sm:$0xff] %vm3634_vm3, %v3579_v32 }
 0x515   : > { %v3772_v58 = vpop.permute.xlu1 %3771  ;;  %3213 = vrot.lane.b32.xlu0 %v3696_v4, %s5948_s12 }
 0x516   : > { %3848 = vst.msk [vmem:[#allocation5 + $0xa0] sm:$0xff] %vm3827_vm4, %v3772_v58 }
 0x517   : > { %3982 = vrot.lane.b32.xlu1 %v3889_v30, %s5952_s10  ;;  %v3581_v36 = vpop.permute.xlu0 %3580  ;;  %v4072_v9 = vld [vmem:[#allocation5 + $0x98] sm:$0xff] }
 0x518   : > { %3656 = vst.msk [vmem:[#allocation5 + $0xa8] sm:$0xff] %vm3634_vm3, %v3581_v36  ;;  %5785 = vmatmul.mubr.msk.f32.gmra.mxu1 %vm4101_vm6, %v4072_v9 }
 0x519   : > { %v3196_v5 = vpop.permute.xlu1 %3195  ;;  %3404 = vrot.lane.b32.xlu0 %v3888_v0, %s5949_s26  ;;  %v4524_v0 = vshrl.u32 %v4523_v33, 7 }
 0x51a   : > { %3270 = vst.msk [vmem:[#allocation5 + $0xb0] sm:$0xff] %vm3247_vm1, %v3196_v5 }
 0x51b   : > { %3406 = vrot.lane.b32.xlu1 %v3889_v30, %s5949_s26  ;;  %v3005_v59 = vpop.permute.xlu0 %3004 }
 0x51c   : > { %3078 = vst.msk [vmem:[#allocation5 + $0xb8] sm:$0xff] %vm3054_vm0, %v3005_v59  ;;  %v8214_v59 = vsub.s32 %v4522_v21, %v4524_v0 }
 0x51d   : > { %v3965_v43 = vpop.permute.xlu1 %3964  ;;  %3346 = vrot.lane.b32.xlu0 %v3281_v1, %s5949_s26  ;;  %s215_s26 = sand.u32 1, %s5930_s19  }
 0x51e   : > { %4041 = vst.msk [vmem:[#allocation5 + $0xa0] sm:$0xff] %vm4020_vm5, %v3965_v43 }
 0x51f   : > { %3598 = vrot.lane.b32.xlu1 %v3504_v2, %s5950_s9  ;;  %v3774_v60 = vpop.permute.xlu0 %3773 }
 0x520   : > { %3849 = vst.msk [vmem:[#allocation5 + $0xa8] sm:$0xff] %vm3827_vm4, %v3774_v60 }
 0x521   : > { %v3389_v61 = vpop.permute.xlu1 %3388  ;;  %3538 = vrot.lane.b32.xlu0 %v3474_v47, %s5950_s9 }
 0x522   : > { %3463 = vst.msk [vmem:[#allocation5 + $0xb0] sm:$0xff] %vm3440_vm2, %v3389_v61 }
 0x523   : > { %3600 = vrot.lane.b32.xlu1 %v3505_v27, %s5950_s9  ;;  %v3198_v57 = vpop.permute.xlu0 %3197 }
 0x524   : > { %3271 = vst.msk [vmem:[#allocation5 + $0xb8] sm:$0xff] %vm3247_vm1, %v3198_v57 }
 0x525   : > { %v3391_v20 = vpop.permute.xlu1 %3390  ;;  %3540 = vrot.lane.b32.xlu0 %v3475_v35, %s5950_s9  ;;  %v4073_v41 = vld [vmem:[#allocation5 + $0xa0] sm:$0xff]  ;;  %s5526_s9 = sshll.u32 %s215_s26, 6 }
 0x526   : > { %3464 = vst.msk [vmem:[#allocation5 + $0xb8] sm:$0xff] %vm3440_vm2, %v3391_v20  ;;  %5787 = vmatprep.mubr.msk.f32.mxu1 %vm4101_vm6, %v4073_v41  ;;  %v8191_v53 = vpop.f32.mrf.mxu1  ;;  %s8262_s14 = scalar_lea.vmem [#allocation6], %s5526_s9 }
 0x527   : > { %3791 = vrot.lane.b32.xlu1 %v3697_v18, %s5951_s17  ;;  %v3967_v13 = vpop.permute.xlu0 %3966  ;;  %s5460_s23 = sshll.u32 %s8262_s14, 4  ;;  %s8540_s23 = int_to_ptr.vmem [resolvable:$true] %s5460_s23 }
 0x528   : > { %4042 = vst.msk [vmem:[#allocation5 + $0xa8] sm:$0xff] %vm4020_vm5, %v3967_v13  ;;  %v8195_v55 = vpop.f32.mrf.mxu1  ;;  %s5878_s7 = scalar_lea.vmem %s8540_s23, 1024 }
 0x529   : > { %v3007_v12 = vpop.permute.xlu1 %3006  ;;  %3731 = vrot.lane.b32.xlu0 %v3667_v7, %s5951_s17  ;;  %p5879_p11 = scmp.ne.s32.totalorder %s8540_s23, %s5878_s7 }
 0x52a   : > { %3079 = vst.msk [vmem:[#allocation5 + $0xc0] sm:$0xff] %vm3054_vm0, %v3007_v12 }
 0x52b   : > { %3793 = vrot.lane.b32.xlu1 %v3698_v31, %s5951_s17  ;;  %v3583_v51 = vpop.permute.xlu0 %3582  ;;  %p5880_p12 = pnand %p5879_p11, %p6024_p5 }
 0x52c   : > { %3657 = vst.msk [vmem:[#allocation5 + $0xb0] sm:$0xff] %vm3634_vm3, %v3583_v51 }
 0x52d   : > { %v3776_v6 = vpop.permute.xlu1 %3775  ;;  %3733 = vrot.lane.b32.xlu0 %v3668_v8, %s5951_s17  ;;  %s5602_s17 = sshll.u32 %s6007_s22, 10  ;;  %s8547_s22 = scalar_lea.sflag [#allocation7], %s215_s26 }
 0x52e   : > { %3850 = vst.msk [vmem:[#allocation5 + $0xb0] sm:$0xff] %vm3827_vm4, %v3776_v6  ;;  %s8537_s6 = scalar_lea.hbm %s8593_s5, %s5602_s17  ;;  %p5881_p13 = pneg %p5880_p12 }
 0x52f   : > { %3984 = vrot.lane.b32.xlu1 %v3890_v17, %s5952_s10  ;;  %v3585_v10 = vpop.permute.xlu0 %3584  ;;  %v4074_v16 = vld [vmem:[#allocation5 + $0xa8] sm:$0xff] }
 0x530   : > { %3658 = vst.msk [vmem:[#allocation5 + $0xb8] sm:$0xff] %vm3634_vm3, %v3585_v10  ;;  %5788 = vmatmul.mubr.msk.f32.gmra.mxu1 %vm4101_vm6, %v4074_v16 }
 0x531   : > { %v3200_v46 = vpop.permute.xlu1 %3199  ;;  %3924 = vrot.lane.b32.xlu0 %v3860_v29, %s5952_s10 }
 0x532   : > { %3272 = vst.msk [vmem:[#allocation5 + $0xc0] sm:$0xff] %vm3247_vm1, %v3200_v46 }
 0x533   : > { %3986 = vrot.lane.b32.xlu1 %v3891_v48, %s5952_s10  ;;  %v3009_v24 = vpop.permute.xlu0 %3008 }
 0x534   : > { %3080 = vst.msk [vmem:[#allocation5 + $0xc8] sm:$0xff] %vm3054_vm0, %v3009_v24 }
 0x535   : > { %v3969_v22 = vpop.permute.xlu1 %3968  ;;  %3926 = vrot.lane.b32.xlu0 %v3861_v42, %s5952_s10  ;;  %s5882_s10 = sshll.u32 %s5954_s8, 4  ;;  %s5883_s10 = int_to_ptr.vmem [resolvable:$false] %s5882_s10 }
 0x536   : > { %4043 = vst.msk [vmem:[#allocation5 + $0xb0] sm:$0xff] %vm4020_vm5, %v3969_v22  ;;  %s5884_s15 = scalar_lea.vmem %s5883_s10, 2048  ;;  %p5885_p0 = scmp.lt.s32.totalorder %s8540_s23, %s5883_s10 }
 0x537   : > { %v3778_v40 = vpop.permute.xlu0 %3777  ;;  %p5886_p1 = scmp.lt.s32.totalorder %s5884_s15, %s5878_s7 }
 0x538   : > { %3851 = vst.msk [vmem:[#allocation5 + $0xb8] sm:$0xff] %vm3827_vm4, %v3778_v40 }
 0x539   : > { %v3393_v15 = vpop.permute.xlu1 %3392  ;;  %p5887_p2 = por %p5886_p1, %p5885_p0 }
 0x53a   : > { %3465 = vst.msk [vmem:[#allocation5 + $0xc0] sm:$0xff] %vm3440_vm2, %v3393_v15  ;;  %v5765_v26 = vpop.f32.mrf.mxu1 }
 0x53b   : > { %v3202_v45 = vpop.permute.xlu0 %3201  ;;  %v4290_v4 = vadd.f32 %v5765_v26, %v8204_v62  ;;  %p5888_p3 = pnand %p5887_p2, %p5881_p13 }
 0x53c   : > { %3273 = vst.msk [vmem:[#allocation5 + $0xc8] sm:$0xff] %vm3247_vm1, %v3202_v45  ;;  %v4284_v34 = vpop.f32.mrf.mxu1 }
 0x53d   : > { %v3395_v44 = vpop.permute.xlu1 %3394  ;;  %v4075_v49 = vld [vmem:[#allocation5 + $0xb0] sm:$0xff]  ;;  %v4285_v39 = vadd.f32 %v8204_v62, %v4284_v34  ;;  %v4428_v63 = vmax.f32 %v4290_v4, 0.0 }
 0x53e   : > { %3466 = vst.msk [vmem:[#allocation5 + $0xc8] sm:$0xff] %vm3440_vm2, %v3395_v44  ;;  %5790 = vmatprep.mubr.msk.f32.mxu1 %vm4101_vm6, %v4075_v49 }
 0x53f   : > { %v3971_v37 = vpop.permute.xlu0 %3970  ;;  %v4427_v30 = vmax.f32 %v4285_v39, 0.0  ;;  %v4464_v1 = vsel %vm2355_vm12, %v4428_v63, -inf }
 0x540   : > { %4044 = vst.msk [vmem:[#allocation5 + $0xb8] sm:$0xff] %vm4020_vm5, %v3971_v37 }
 0x541   : > { %v3011_v28 = vpop.permute.xlu1 %3010  ;;  %v4461_v27 = vsel %vm2355_vm12, %v4427_v30, -inf }
 0x542   : > { %3081 = vst.msk [vmem:[#allocation5 + $0xd0] sm:$0xff] %vm3054_vm0, %v3011_v28 }
 0x543   : > { %v3587_v14 = vpop.permute.xlu0 %3586 }
 0x544   : > { %3659 = vst.msk [vmem:[#allocation5 + $0xc0] sm:$0xff] %vm3634_vm3, %v3587_v14 }
 0x545   : > { %v3780_v50 = vpop.permute.xlu1 %3779 }
 0x546   : > { %3852 = vst.msk [vmem:[#allocation5 + $0xc0] sm:$0xff] %vm3827_vm4, %v3780_v50 }
 0x547   : > { %v3589_v23 = vpop.permute.xlu0 %3588  ;;  %v4076_v25 = vld [vmem:[#allocation5 + $0xb8] sm:$0xff] }
 0x548   : > { %3660 = vst.msk [vmem:[#allocation5 + $0xc8] sm:$0xff] %vm3634_vm3, %v3589_v23  ;;  %5791 = vmatmul.mubr.msk.f32.gmra.mxu1 %vm4101_vm6, %v4076_v25 }
 0x549   : > { %v3204_v54 = vpop.permute.xlu1 %3203 }
 0x54a   : > { %3274 = vst.msk [vmem:[#allocation5 + $0xd0] sm:$0xff] %vm3247_vm1, %v3204_v54 }
 0x54b   : > { %v3013_v3 = vpop.permute.xlu0 %3012 }
 0x54c   : > { %3082 = vst.msk [vmem:[#allocation5 + $0xd8] sm:$0xff] %vm3054_vm0, %v3013_v3 }
 0x54d   : > { %v3973_v11 = vpop.permute.xlu1 %3972 }
 0x54e   : > { %4045 = vst.msk [vmem:[#allocation5 + $0xc0] sm:$0xff] %vm4020_vm5, %v3973_v11  ;;  %v5768_v52 = vpop.f32.mrf.mxu1 }
 0x54f   : > { %v4300_v56 = vadd.f32 %v5768_v52, %v8204_v62  ;;  %v3782_v32 = vpop.permute.xlu0 %3781 }
 0x550   : > { %3853 = vst.msk [vmem:[#allocation5 + $0xc8] sm:$0xff] %vm3827_vm4, %v3782_v32  ;;  %v4294_v58 = vpop.f32.mrf.mxu1 }
 0x551   : > { %v4430_v36 = vmax.f32 %v4300_v56, 0.0  ;;  %v4295_v9 = vadd.f32 %v8204_v62, %v4294_v58  ;;  %v3397_v5 = vpop.permute.xlu1 %3396 }
 0x552   : > { %3467 = vst.msk [vmem:[#allocation5 + $0xd0] sm:$0xff] %vm3440_vm2, %v3397_v5 }
 0x553   : > { %v4465_v2 = vsel %vm2355_vm12, %v4430_v36, -inf  ;;  %v4429_v43 = vmax.f32 %v4295_v9, 0.0  ;;  %v3206_v60 = vpop.permute.xlu0 %3205 }
 0x554   : > { %v4466_v47 = vmax.f32 %v4464_v1, %v4465_v2  ;;  %3275 = vst.msk [vmem:[#allocation5 + $0xd8] sm:$0xff] %vm3247_vm1, %v3206_v60 }
 0x555   : > { %v4462_v61 = vsel %vm2355_vm12, %v4429_v43, -inf  ;;  %v3399_v57 = vpop.permute.xlu1 %3398  ;;  %v4077_v35 = vld [vmem:[#allocation5 + $0xc0] sm:$0xff] }
 0x556   : > { %v4570_v18 = vcombine.high %v4466_v47, %v4466_v47  ;;  %v4577_v20 = vrot.slane %v4466_v47, %v8214_v59  ;;  %v4463_v41 = vmax.f32 %v4461_v27, %v4462_v61  ;;  %3468 = vst.msk [vmem:[#allocation5 + $0xd8] sm:$0xff] %vm3440_vm2, %v3399_v57  ;;  %5793 = vmatprep.mubr.msk.f32.mxu1 %vm4101_vm6, %v4077_v35 }
 0x557   : > { %v3975_v13 = vpop.permute.xlu0 %3974 }
 0x558   : > { %v4584_v7 = vrot.slane %v4570_v18, %v8214_v59  ;;  %v4585_v31 = vcombine.high %v4577_v20, %v4577_v20  ;;  %v4939_v12 = vsel %vm2358_vm13, %v4577_v20, -inf  ;;  %v4553_v51 = vcombine.high %v4463_v41, %v4463_v41  ;;  %4046 = vst.msk [vmem:[#allocation5 + $0xc8] sm:$0xff] %vm4020_vm5, %v3975_v13 }
 0x559   : > { %v4940_v8 = vrot.slane %v4939_v12, 4  ;;  %v4560_v17 = vrot.slane %v4463_v41, %v8214_v59  ;;  %v3015_v6 = vpop.permute.xlu1 %3014 }
 0x55a   : > { %v4586_v10 = vcombine.high %v4584_v7, %v4584_v7  ;;  %v4946_v16 = vsel %vm2358_vm13, %v4585_v31, -inf  ;;  %v4953_v29 = vsel %vm2358_vm13, %v4584_v7, -inf  ;;  %v4567_v48 = vrot.slane %v4553_v51, %v8214_v59  ;;  %3083 = vst.msk [vmem:[#allocation5 + $0xe0] sm:$0xff] %vm3054_vm0, %v3015_v6 }
 0x55b   : > { %v4947_v46 = vrot.slane %v4946_v16, 4  ;;  %v4954_v24 = vrot.slane %v4953_v29, 4  ;;  %v4568_v42 = vcombine.high %v4560_v17, %v4560_v17  ;;  %v3591_v22 = vpop.permute.xlu0 %3590  ;;  %v4911_v45 = vsel %vm2358_vm13, %v4560_v17, -inf }
 0x55c   : > { %v4960_v40 = vsel %vm2358_vm13, %v4586_v10, -inf  ;;  %v4569_v15 = vcombine.high %v4567_v48, %v4567_v48  ;;  %v4925_v44 = vsel %vm2358_vm13, %v4567_v48, -inf  ;;  %3661 = vst.msk [vmem:[#allocation5 + $0xd0] sm:$0xff] %vm3634_vm3, %v3591_v22  ;;  %v4941_v49 = vmax.f32 %v4939_v12, %v4940_v8 }
 0x55d   : > { %v4948_v37 = vmax.f32 %v4946_v16, %v4947_v46  ;;  %v4961_v28 = vrot.slane %v4960_v40, 4  ;;  %v3784_v14 = vpop.permute.xlu1 %3783  ;;  %v4912_v50 = vrot.slane %v4911_v45, 4  ;;  %v4918_v26 = vsel %vm2358_vm13, %v4568_v42, -inf }
 0x55e   : > { %v4926_v23 = vrot.slane %v4925_v44, 4  ;;  %v4932_v25 = vsel %vm2358_vm13, %v4569_v15, -inf  ;;  %3854 = vst.msk [vmem:[#allocation5 + $0xd0] sm:$0xff] %vm3827_vm4, %v3784_v14  ;;  %v4955_v54 = vmax.f32 %v4953_v29, %v4954_v24  ;;  %v4919_v4 = vrot.slane %v4918_v26, 4 }
 0x55f   : > { %v4962_v34 = vmax.f32 %v4960_v40, %v4961_v28  ;;  %v3593_v19 = vpop.permute.xlu0 %3592  ;;  %v4078_v38 = vld [vmem:[#allocation5 + $0xc8] sm:$0xff]  ;;  %v4913_v33 = vmax.f32 %v4911_v45, %v4912_v50  ;;  %v4933_v39 = vrot.slane %v4932_v25, 4  ;;  %v4942_v11 = vrot.slane %v4941_v49, 2 }
 0x560   : > { %v4927_v3 = vmax.f32 %v4925_v44, %v4926_v23  ;;  %3662 = vst.msk [vmem:[#allocation5 + $0xd8] sm:$0xff] %vm3634_vm3, %v3593_v19  ;;  %5794 = vmatmul.mubr.msk.f32.gmra.mxu1 %vm4101_vm6, %v4078_v38  ;;  %v4949_v52 = vrot.slane %v4948_v37, 2  ;;  %v4920_v63 = vmax.f32 %v4918_v26, %v4919_v4  ;;  %v4956_v58 = vrot.slane %v4955_v54, 2 }
 0x561   : > { %v3208_v21 = vpop.permute.xlu1 %3207  ;;  %v4914_v0 = vrot.slane %v4913_v33, 2  ;;  %v4934_v32 = vmax.f32 %v4932_v25, %v4933_v39  ;;  %v4963_v30 = vrot.slane %v4962_v34, 2  ;;  %v4943_v43 = vmax.f32 %v4941_v49, %v4942_v11 }
 0x562   : > { %v4928_v56 = vrot.slane %v4927_v3, 2  ;;  %3276 = vst.msk [vmem:[#allocation5 + $0xe0] sm:$0xff] %vm3247_vm1, %v3208_v21  ;;  %v4921_v5 = vrot.slane %v4920_v63, 2  ;;  %v4950_v60 = vmax.f32 %v4948_v37, %v4949_v52  ;;  %v4957_v18 = vmax.f32 %v4955_v54, %v4956_v58  ;;  %v5771_v44 = vpop.f32.mrf.mxu1 }
 0x563   : > { %v3017_v36 = vpop.permute.xlu0 %3016  ;;  %v4915_v9 = vmax.f32 %v4913_v33, %v4914_v0  ;;  %v4935_v2 = vrot.slane %v4934_v32, 2  ;;  %v4964_v41 = vmax.f32 %v4962_v34, %v4963_v30  ;;  %v4944_v31 = vrot.slane %v4943_v43, 1 }
 0x564   : > { %v4929_v1 = vmax.f32 %v4927_v3, %v4928_v56  ;;  %3084 = vst.msk [vmem:[#allocation5 + $0xe8] sm:$0xff] %vm3054_vm0, %v3017_v36  ;;  %v4922_v61 = vmax.f32 %v4920_v63, %v4921_v5  ;;  %v4951_v8 = vrot.slane %v4950_v60, 1  ;;  %v4958_v16 = vrot.slane %v4957_v18, 1  ;;  %v4304_v54 = vpop.f32.mrf.mxu1 }
 0x565   : > { %v3977_v47 = vpop.permute.xlu1 %3976  ;;  %v4916_v27 = vrot.slane %v4915_v9, 1  ;;  %v4936_v35 = vmax.f32 %v4934_v32, %v4935_v2  ;;  %v4965_v48 = vrot.slane %v4964_v41, 1  ;;  %v4945_v24 = vmax.f32 %v4943_v43, %v4944_v31 }
 0x566   : > { %v4930_v57 = vrot.slane %v4929_v1, 1  ;;  %4047 = vst.msk [vmem:[#allocation5 + $0xd0] sm:$0xff] %vm4020_vm5, %v3977_v47  ;;  %v4923_v13 = vrot.slane %v4922_v61, 1  ;;  %v4952_v15 = vmax.f32 %v4950_v60, %v4951_v8  ;;  %v4959_v49 = vmax.f32 %v4957_v18, %v4958_v16 }
 0x567   : > { %v3786_v20 = vpop.permute.xlu0 %3785  ;;  %v4937_v7 = vrot.slane %v4936_v35, 1  ;;  %v4917_v17 = vmax.f32 %v4915_v9, %v4916_v27  ;;  %v4966_v14 = vmax.f32 %v4964_v41, %v4965_v48  ;;  %v4310_v34 = vadd.f32 %v5771_v44, %v8204_v62 }
 0x568   : > { %3855 = vst.msk [vmem:[#allocation5 + $0xd8] sm:$0xff] %vm3827_vm4, %v3786_v20  ;;  %v4931_v12 = vmax.f32 %v4929_v1, %v4930_v57  ;;  %v4924_v6 = vmax.f32 %v4922_v61, %v4923_v13  ;;  %v4305_v38 = vadd.f32 %v8204_v62, %v4304_v54 }
 0x569   : > { %v3401_v51 = vpop.permute.xlu1 %3400  ;;  %v4938_v10 = vmax.f32 %v4936_v35, %v4937_v7  ;;  %v4432_v3 = vmax.f32 %v4310_v34, 0.0 }
 0x56a   : > { %3469 = vst.msk [vmem:[#allocation5 + $0xe0] sm:$0xff] %vm3440_vm2, %v3401_v51  ;;  %v5381_v46 = vsel %vm5367_vm7, %v4924_v6, %v4917_v17  ;;  %v4431_v0 = vmax.f32 %v4305_v38, 0.0 }
 0x56b   : > { %v3210_v29 = vpop.permute.xlu0 %3209  ;;  %v5382_v42 = vsel %vm5369_vm8, %v4931_v12, %v5381_v46  ;;  %v4470_v58 = vsel %vm2355_vm12, %v4432_v3, -inf }
 0x56c   : > { %3277 = vst.msk [vmem:[#allocation5 + $0xe8] sm:$0xff] %vm3247_vm1, %v3210_v29  ;;  %v5383_v45 = vsel %vm5371_vm9, %v4938_v10, %v5382_v42  ;;  %v4467_v1 = vsel %vm2355_vm12, %v4431_v0, -inf }
 0x56d   : > { %v3403_v22 = vpop.permute.xlu1 %3402  ;;  %v4079_v40 = vld [vmem:[#allocation5 + $0xd0] sm:$0xff]  ;;  %v5384_v37 = vsel %vm5373_vm10, %v4945_v24, %v5383_v45 }
 0x56e   : > { %3470 = vst.msk [vmem:[#allocation5 + $0xe8] sm:$0xff] %vm3440_vm2, %v3403_v22  ;;  %5796 = vmatprep.mubr.msk.f32.mxu1 %vm4101_vm6, %v4079_v40  ;;  %v5385_v50 = vsel %vm5375_vm11, %v4952_v15, %v5384_v37 }
 0x56f   : > { %v3979_v28 = vpop.permute.xlu0 %3978  ;;  %v5386_v26 = vsel %vm5377_vm14, %v4959_v49, %v5385_v50 }
 0x570   : > { %4048 = vst.msk [vmem:[#allocation5 + $0xd8] sm:$0xff] %vm4020_vm5, %v3979_v28  ;;  %v5387_v25 = vsel %vm5379_vm15, %v4966_v14, %v5386_v26 }
 0x571   : > { %v3019_v23 = vpop.permute.xlu1 %3018  ;;  %5439 = vst.msk [vmem:[%s8262_s14 + $0x8] sm:$0xff] %vm2355_vm12, %v5387_v25 }
 0x572   : > { %3085 = vst.msk [vmem:[#allocation5 + $0xf0] sm:$0xff] %vm3054_vm0, %v3019_v23 }
 0x573   : > { %v3595_v19 = vpop.permute.xlu0 %3594 }
 0x574   : > { %3663 = vst.msk [vmem:[#allocation5 + $0xe0] sm:$0xff] %vm3634_vm3, %v3595_v19 }
 0x575   : > { %v3788_v33 = vpop.permute.xlu1 %3787 }
 0x576   : > { %3856 = vst.msk [vmem:[#allocation5 + $0xe0] sm:$0xff] %vm3827_vm4, %v3788_v33  ;;  %v5774_v4 = vpop.f32.mrf.mxu1 }
 0x577   : > { %v4320_v39 = vadd.f32 %v5774_v4, %v8204_v62  ;;  %v3597_v11 = vpop.permute.xlu0 %3596  ;;  %v4080_v52 = vld [vmem:[#allocation5 + $0xd8] sm:$0xff] }
 0x578   : > { %3664 = vst.msk [vmem:[#allocation5 + $0xe8] sm:$0xff] %vm3634_vm3, %v3597_v11  ;;  %v4314_v21 = vpop.f32.mrf.mxu1  ;;  %5797 = vmatmul.mubr.msk.f32.gmra.mxu1 %vm4101_vm6, %v4080_v52 }
 0x579   : > { %v4434_v63 = vmax.f32 %v4320_v39, 0.0  ;;  %v4315_v56 = vadd.f32 %v8204_v62, %v4314_v21  ;;  %v3152_v32 = vpop.permute.xlu1 %3151 }
 0x57a   : > { %3248 = vst.msk [vmem:[#allocation5] sm:$0xff] %vm3247_vm1, %v3152_v32 }
 0x57b   : > { %v4471_v30 = vsel %vm2355_vm12, %v4434_v63, -inf  ;;  %v4433_v36 = vmax.f32 %v4315_v56, 0.0  ;;  %v3021_v9 = vpop.permute.xlu0 %3020 }
 0x57c   : > { %v4472_v5 = vmax.f32 %v4470_v58, %v4471_v30  ;;  %3086 = vst.msk [vmem:[#allocation5 + $0xf8] sm:$0xff] %vm3054_vm0, %v3021_v9 }
 0x57d   : > { %v4468_v2 = vsel %vm2355_vm12, %v4433_v36, -inf  ;;  %v3790_v43 = vpop.permute.xlu1 %3789 }
 0x57e   : > { %v4604_v60 = vcombine.high %v4472_v5, %v4472_v5  ;;  %v4611_v47 = vrot.slane %v4472_v5, %v8214_v59  ;;  %v4469_v27 = vmax.f32 %v4467_v1, %v4468_v2  ;;  %3857 = vst.msk [vmem:[#allocation5 + $0xe8] sm:$0xff] %vm3827_vm4, %v3790_v43 }
 0x57f   : > { %v3212_v61 = vpop.permute.xlu0 %3211 }
 0x580   : > { %v4618_v57 = vrot.slane %v4604_v60, %v8214_v59  ;;  %v4619_v35 = vcombine.high %v4611_v47, %v4611_v47  ;;  %v4995_v18 = vsel %vm2358_vm13, %v4611_v47, -inf  ;;  %v4587_v20 = vcombine.high %v4469_v27, %v4469_v27  ;;  %3278 = vst.msk [vmem:[#allocation5 + $0xf0] sm:$0xff] %vm3247_vm1, %v3212_v61 }
 0x581   : > { %v4996_v41 = vrot.slane %v4995_v18, 4  ;;  %v4594_v13 = vrot.slane %v4469_v27, %v8214_v59  ;;  %v3154_v7 = vpop.permute.xlu1 %3153 }
 0x582   : > { %v4620_v31 = vcombine.high %v4618_v57, %v4618_v57  ;;  %v5002_v12 = vsel %vm2358_vm13, %v4619_v35, -inf  ;;  %v5009_v51 = vsel %vm2358_vm13, %v4618_v57, -inf  ;;  %v4601_v8 = vrot.slane %v4587_v20, %v8214_v59  ;;  %3249 = vst.msk [vmem:[#allocation5 + $0x8] sm:$0xff] %vm3247_vm1, %v3154_v7 }
 0x583   : > { %v5003_v17 = vrot.slane %v5002_v12, 4  ;;  %v5010_v6 = vrot.slane %v5009_v51, 4  ;;  %v4602_v10 = vcombine.high %v4594_v13, %v4594_v13  ;;  %v3981_v16 = vpop.permute.xlu0 %3980  ;;  %v4967_v46 = vsel %vm2358_vm13, %v4594_v13, -inf }
 0x584   : > { %v5016_v29 = vsel %vm2358_vm13, %v4620_v31, -inf  ;;  %v4603_v48 = vcombine.high %v4601_v8, %v4601_v8  ;;  %v4981_v24 = vsel %vm2358_vm13, %v4601_v8, -inf  ;;  %4049 = vst.msk [vmem:[#allocation5 + $0xe0] sm:$0xff] %vm4020_vm5, %v3981_v16  ;;  %v4997_v42 = vmax.f32 %v4995_v18, %v4996_v41 }
 0x585   : > { %v5004_v22 = vmax.f32 %v5002_v12, %v5003_v17  ;;  %v5017_v40 = vrot.slane %v5016_v29, 4  ;;  %v3345_v15 = vpop.permute.xlu1 %3344  ;;  %v4968_v45 = vrot.slane %v4967_v46, 4  ;;  %v4974_v44 = vsel %vm2358_vm13, %v4602_v10, -inf }
 0x586   : > { %v4982_v49 = vrot.slane %v4981_v24, 4  ;;  %v4988_v37 = vsel %vm2358_vm13, %v4603_v48, -inf  ;;  %3441 = vst.msk [vmem:[#allocation5] sm:$0xff] %vm3440_vm2, %v3345_v15  ;;  %v5011_v28 = vmax.f32 %v5009_v51, %v5010_v6  ;;  %v4975_v23 = vrot.slane %v4974_v44, 4 }
 0x587   : > { %v5018_v14 = vmax.f32 %v5016_v29, %v5017_v40  ;;  %v3214_v50 = vpop.permute.xlu0 %3213  ;;  %v4969_v26 = vmax.f32 %v4967_v46, %v4968_v45  ;;  %v4989_v54 = vrot.slane %v4988_v37, 4  ;;  %v4998_v34 = vrot.slane %v4997_v42, 2 }
 0x588   : > { %v4983_v25 = vmax.f32 %v4981_v24, %v4982_v49  ;;  %3279 = vst.msk [vmem:[#allocation5 + $0xf8] sm:$0xff] %vm3247_vm1, %v3214_v50  ;;  %v5005_v19 = vrot.slane %v5004_v22, 2  ;;  %v4976_v4 = vmax.f32 %v4974_v44, %v4975_v23  ;;  %v5012_v11 = vrot.slane %v5011_v28, 2 }
 0x589   : > { %v3983_v38 = vpop.permute.xlu1 %3982  ;;  %v4970_v33 = vrot.slane %v4969_v26, 2  ;;  %v4990_v39 = vmax.f32 %v4988_v37, %v4989_v54  ;;  %v5019_v52 = vrot.slane %v5018_v14, 2  ;;  %v4999_v30 = vmax.f32 %v4997_v42, %v4998_v34 }
 0x58a   : > { %v4984_v3 = vrot.slane %v4983_v25, 2  ;;  %4050 = vst.msk [vmem:[#allocation5 + $0xe8] sm:$0xff] %vm4020_vm5, %v3983_v38  ;;  %v4977_v56 = vrot.slane %v4976_v4, 2  ;;  %v5006_v36 = vmax.f32 %v5004_v22, %v5005_v19  ;;  %v5013_v60 = vmax.f32 %v5011_v28, %v5012_v11 }
 0x58b   : > { %v3405_v21 = vpop.permute.xlu0 %3404  ;;  %v4081_v0 = vld [vmem:[#allocation5 + $0xe0] sm:$0xff]  ;;  %v4971_v63 = vmax.f32 %v4969_v26, %v4970_v33  ;;  %v4991_v58 = vrot.slane %v4990_v39, 2  ;;  %v5020_v27 = vmax.f32 %v5018_v14, %v5019_v52  ;;  %v5000_v35 = vrot.slane %v4999_v30, 1 }
 0x58c   : > { %v4985_v32 = vmax.f32 %v4983_v25, %v4984_v3  ;;  %3471 = vst.msk [vmem:[#allocation5 + $0xf0] sm:$0xff] %vm3440_vm2, %v3405_v21  ;;  %5799 = vmatprep.mubr.msk.f32.mxu1 %vm4101_vm6, %v4081_v0  ;;  %v4978_v1 = vmax.f32 %v4976_v4, %v4977_v56  ;;  %v5007_v13 = vrot.slane %v5006_v36, 1  ;;  %v5014_v51 = vrot.slane %v5013_v60, 1 }
 0x58d   : > { %v3407_v9 = vpop.permute.xlu1 %3406  ;;  %v4972_v5 = vrot.slane %v4971_v63, 1  ;;  %v4992_v43 = vmax.f32 %v4990_v39, %v4991_v58  ;;  %v5021_v17 = vrot.slane %v5020_v27, 1  ;;  %v5001_v10 = vmax.f32 %v4999_v30, %v5000_v35 }
 0x58e   : > { %v4986_v2 = vrot.slane %v4985_v32, 1  ;;  %3472 = vst.msk [vmem:[#allocation5 + $0xf8] sm:$0xff] %vm3440_vm2, %v3407_v9  ;;  %v4979_v61 = vrot.slane %v4978_v1, 1  ;;  %v5008_v48 = vmax.f32 %v5006_v36, %v5007_v13  ;;  %v5015_v24 = vmax.f32 %v5013_v60, %v5014_v51 }
 0x58f   : > { %v3347_v47 = vpop.permute.xlu0 %3346  ;;  %v4993_v57 = vrot.slane %v4992_v43, 1  ;;  %v4973_v7 = vmax.f32 %v4971_v63, %v4972_v5  ;;  %v5022_v40 = vmax.f32 %v5020_v27, %v5021_v17 }
 0x590   : > { %3442 = vst.msk [vmem:[#allocation5 + $0x8] sm:$0xff] %vm3440_vm2, %v3347_v47  ;;  %v4987_v18 = vmax.f32 %v4985_v32, %v4986_v2  ;;  %v4980_v31 = vmax.f32 %v4978_v1, %v4979_v61  ;;  %v5777_v50 = vpop.f32.mrf.mxu1 }
 0x591   : > { %v3599_v20 = vpop.permute.xlu1 %3598  ;;  %v4082_v41 = vld [vmem:[#allocation5 + $0xe8] sm:$0xff]  ;;  %v4994_v12 = vmax.f32 %v4992_v43, %v4993_v57  ;;  %v4330_v54 = vadd.f32 %v5777_v50, %v8204_v62 }
 0x592   : > { %3665 = vst.msk [vmem:[#allocation5 + $0xf0] sm:$0xff] %vm3634_vm3, %v3599_v20  ;;  %5800 = vmatmul.mubr.msk.f32.gmra.mxu1 %vm4101_vm6, %v4082_v41  ;;  %v5388_v6 = vsel %vm5367_vm7, %v4980_v31, %v4973_v7  ;;  %v4324_v25 = vpop.f32.mrf.mxu1 }
 0x593   : > { %v3539_v8 = vpop.permute.xlu0 %3538  ;;  %v5389_v16 = vsel %vm5369_vm8, %v4987_v18, %v5388_v6  ;;  %v4325_v19 = vadd.f32 %v8204_v62, %v4324_v25  ;;  %v4436_v4 = vmax.f32 %v4330_v54, 0.0 }
 0x594   : > { %3635 = vst.msk [vmem:[#allocation5] sm:$0xff] %vm3634_vm3, %v3539_v8  ;;  %v5390_v46 = vsel %vm5371_vm9, %v4994_v12, %v5389_v16 }
 0x595   : > { %v3601_v29 = vpop.permute.xlu1 %3600  ;;  %v5391_v42 = vsel %vm5373_vm10, %v5001_v10, %v5390_v46  ;;  %v4435_v52 = vmax.f32 %v4325_v19, 0.0  ;;  %v4476_v56 = vsel %vm2355_vm12, %v4436_v4, -inf }
 0x596   : > { %3666 = vst.msk [vmem:[#allocation5 + $0xf8] sm:$0xff] %vm3634_vm3, %v3601_v29  ;;  %v5392_v15 = vsel %vm5375_vm11, %v5008_v48, %v5391_v42 }
 0x597   : > { %v3541_v22 = vpop.permute.xlu0 %3540  ;;  %v5393_v45 = vsel %vm5377_vm14, %v5015_v24, %v5392_v15  ;;  %v4473_v9 = vsel %vm2355_vm12, %v4435_v52, -inf }
 0x598   : > { %3636 = vst.msk [vmem:[#allocation5 + $0x8] sm:$0xff] %vm3634_vm3, %v3541_v22  ;;  %v5394_v49 = vsel %vm5379_vm15, %v5022_v40, %v5393_v45 }
 0x599   : > { %v3792_v44 = vpop.permute.xlu1 %3791  ;;  %5440 = vst.msk [vmem:[%s8262_s14 + $0x10] sm:$0xff] %vm2355_vm12, %v5394_v49 }
 0x59a   : > { %3858 = vst.msk [vmem:[#allocation5 + $0xf0] sm:$0xff] %vm3827_vm4, %v3792_v44 }
 0x59b   : > { %v3732_v37 = vpop.permute.xlu0 %3731 }
 0x59c   : > { %3828 = vst.msk [vmem:[#allocation5] sm:$0xff] %vm3827_vm4, %v3732_v37 }
 0x59d   : > { %v3794_v28 = vpop.permute.xlu1 %3793 }
 0x59e   : > { %3859 = vst.msk [vmem:[#allocation5 + $0xf8] sm:$0xff] %vm3827_vm4, %v3794_v28 }
 0x59f   : > { %v3734_v14 = vpop.permute.xlu0 %3733 }
 0x5a0   : > { %3829 = vst.msk [vmem:[#allocation5 + $0x8] sm:$0xff] %vm3827_vm4, %v3734_v14 }
 0x5a1   : > { %v3985_v26 = vpop.permute.xlu1 %3984 }
 0x5a2   : > { %4051 = vst.msk [vmem:[#allocation5 + $0xf0] sm:$0xff] %vm4020_vm5, %v3985_v26 }
 0x5a3   : > { %v3925_v23 = vpop.permute.xlu0 %3924 }
 0x5a4   : > { %4021 = vst.msk [vmem:[#allocation5] sm:$0xff] %vm4020_vm5, %v3925_v23 }
 0x5a5   : > { %v3987_v34 = vpop.permute.xlu1 %3986 }
 0x5a6   : > { %4052 = vst.msk [vmem:[#allocation5 + $0xf8] sm:$0xff] %vm4020_vm5, %v3987_v34 }
 0x5a7   : > { %v3927_v38 = vpop.permute.xlu0 %3926 }
 0x5a8   : > { %4022 = vst.msk [vmem:[#allocation5 + $0x8] sm:$0xff] %vm4020_vm5, %v3927_v38  ;;  %v5780_v33 = vpop.f32.mrf.mxu1 }
 0x5a9   : > { %v4340_v3 = vadd.f32 %v5780_v33, %v8204_v62  ;;  %v4083_v39 = vld [vmem:[#allocation5 + $0xf0] sm:$0xff] }
 0x5aa   : > { %v4334_v11 = vpop.f32.mrf.mxu1  ;;  %5802 = vmatprep.mubr.msk.f32.mxu1 %vm4101_vm6, %v4083_v39 }
 0x5ab   : > { %v4438_v21 = vmax.f32 %v4340_v3, 0.0  ;;  %v4335_v0 = vadd.f32 %v8204_v62, %v4334_v11  ;;  %v4053_v63 = vld [vmem:[#allocation5] sm:$0xff] }
 0x5ac   : > { %5757 = vmatprep.mubr.msk.f32.mxu0 %vm4101_vm6, %v4053_v63 }
 0x5ad   : > { %v4477_v32 = vsel %vm2355_vm12, %v4438_v21, -inf  ;;  %v4437_v58 = vmax.f32 %v4335_v0, 0.0  ;;  %v4084_v30 = vld [vmem:[#allocation5 + $0xf8] sm:$0xff] }
 0x5ae   : > { %v4478_v36 = vmax.f32 %v4476_v56, %v4477_v32  ;;  %5803 = vmatmul.mubr.msk.f32.gmra.mxu1 %vm4101_vm6, %v4084_v30 }
 0x5af   : > { %v4474_v5 = vsel %vm2355_vm12, %v4437_v58, -inf  ;;  %v4054_v1 = vld [vmem:[#allocation5 + $0x8] sm:$0xff] }
 0x5b0   : > { %v4638_v2 = vcombine.high %v4478_v36, %v4478_v36  ;;  %v4645_v43 = vrot.slane %v4478_v36, %v8214_v59  ;;  %v4475_v60 = vmax.f32 %v4473_v9, %v4474_v5  ;;  %5758 = vmatmul.mubr.msk.f32.vlgmr.msra.gmra.mxu0 %vm4101_vm6, %v4054_v1 }
 0x5b2   : > { %v4652_v47 = vrot.slane %v4638_v2, %v8214_v59  ;;  %v4653_v27 = vcombine.high %v4645_v43, %v4645_v43  ;;  %v5051_v61 = vsel %vm2358_vm13, %v4645_v43, -inf  ;;  %v4621_v57 = vcombine.high %v4475_v60, %v4475_v60 }
 0x5b3   : > { %v5052_v35 = vrot.slane %v5051_v61, 4  ;;  %v4628_v18 = vrot.slane %v4475_v60, %v8214_v59 }
 0x5b4   : > { %v4654_v20 = vcombine.high %v4652_v47, %v4652_v47  ;;  %v5058_v41 = vsel %vm2358_vm13, %v4653_v27, -inf  ;;  %v5065_v13 = vsel %vm2358_vm13, %v4652_v47, -inf  ;;  %v4635_v7 = vrot.slane %v4621_v57, %v8214_v59 }
 0x5b5   : > { %v5059_v31 = vrot.slane %v5058_v41, 4  ;;  %v5066_v12 = vrot.slane %v5065_v13, 4  ;;  %v4636_v51 = vcombine.high %v4628_v18, %v4628_v18  ;;  %v5023_v6 = vsel %vm2358_vm13, %v4628_v18, -inf }
 0x5b6   : > { %v5072_v8 = vsel %vm2358_vm13, %v4654_v20, -inf  ;;  %v4637_v17 = vcombine.high %v4635_v7, %v4635_v7  ;;  %v5037_v10 = vsel %vm2358_vm13, %v4635_v7, -inf  ;;  %v5053_v16 = vmax.f32 %v5051_v61, %v5052_v35 }
 0x5b7   : > { %v5060_v29 = vmax.f32 %v5058_v41, %v5059_v31  ;;  %v5073_v48 = vrot.slane %v5072_v8, 4  ;;  %v5024_v46 = vrot.slane %v5023_v6, 4  ;;  %v5030_v24 = vsel %vm2358_vm13, %v4636_v51, -inf }
 0x5b8   : > { %v5038_v42 = vrot.slane %v5037_v10, 4  ;;  %v5044_v22 = vsel %vm2358_vm13, %v4637_v17, -inf  ;;  %v5067_v40 = vmax.f32 %v5065_v13, %v5066_v12  ;;  %v5031_v44 = vrot.slane %v5030_v24, 4 }
 0x5b9   : > { %v5074_v15 = vmax.f32 %v5072_v8, %v5073_v48  ;;  %v5025_v45 = vmax.f32 %v5023_v6, %v5024_v46  ;;  %v5045_v37 = vrot.slane %v5044_v22, 4  ;;  %v5054_v28 = vrot.slane %v5053_v16, 2 }
 0x5ba   : > { %v5039_v49 = vmax.f32 %v5037_v10, %v5038_v42  ;;  %v5061_v14 = vrot.slane %v5060_v29, 2  ;;  %v5032_v26 = vmax.f32 %v5030_v24, %v5031_v44  ;;  %v5068_v54 = vrot.slane %v5067_v40, 2 }
 0x5bb   : > { %v5026_v50 = vrot.slane %v5025_v45, 2  ;;  %v5046_v25 = vmax.f32 %v5044_v22, %v5045_v37  ;;  %v5075_v34 = vrot.slane %v5074_v15, 2  ;;  %v5055_v3 = vmax.f32 %v5053_v16, %v5054_v28 }
 0x5bc   : > { %v5040_v23 = vrot.slane %v5039_v49, 2  ;;  %v5033_v38 = vrot.slane %v5032_v26, 2  ;;  %v5062_v39 = vmax.f32 %v5060_v29, %v5061_v14  ;;  %v5069_v63 = vmax.f32 %v5067_v40, %v5068_v54 }
 0x5bd   : > { %v5027_v19 = vmax.f32 %v5025_v45, %v5026_v50  ;;  %v5047_v4 = vrot.slane %v5046_v25, 2  ;;  %v5076_v56 = vmax.f32 %v5074_v15, %v5075_v34  ;;  %v5056_v30 = vrot.slane %v5055_v3, 1 }
 0x5be   : > { %v5041_v33 = vmax.f32 %v5039_v49, %v5040_v23  ;;  %v5034_v52 = vmax.f32 %v5032_v26, %v5033_v38  ;;  %v5063_v9 = vrot.slane %v5062_v39, 1  ;;  %v5070_v43 = vrot.slane %v5069_v63, 1 }
 0x5bf   : > { %v5028_v11 = vrot.slane %v5027_v19, 1  ;;  %v5048_v0 = vmax.f32 %v5046_v25, %v5047_v4  ;;  %v5077_v60 = vrot.slane %v5076_v56, 1  ;;  %v5057_v27 = vmax.f32 %v5055_v3, %v5056_v30 }
 0x5c0   : > { %v5042_v21 = vrot.slane %v5041_v33, 1  ;;  %v5035_v32 = vrot.slane %v5034_v52, 1  ;;  %v5064_v57 = vmax.f32 %v5062_v39, %v5063_v9  ;;  %v5071_v18 = vmax.f32 %v5069_v63, %v5070_v43  ;;  %v5783_v12 = vpop.f32.mrf.mxu1 }
 0x5c1   : > { %v5049_v58 = vrot.slane %v5048_v0, 1  ;;  %v5029_v5 = vmax.f32 %v5027_v19, %v5028_v11  ;;  %v5078_v41 = vmax.f32 %v5076_v56, %v5077_v60  ;;  %v4350_v8 = vadd.f32 %v5783_v12, %v8204_v62 }
 0x5c2   : > { %v5043_v36 = vmax.f32 %v5041_v33, %v5042_v21  ;;  %v5036_v1 = vmax.f32 %v5034_v52, %v5035_v32  ;;  %v4344_v51 = vpop.f32.mrf.mxu1 }
 0x5c3   : > { %v5050_v2 = vmax.f32 %v5048_v0, %v5049_v58  ;;  %v4345_v17 = vadd.f32 %v8204_v62, %v4344_v51  ;;  %v4440_v10 = vmax.f32 %v4350_v8, 0.0 }
 0x5c4   : > { %v5395_v47 = vsel %vm5367_vm7, %v5036_v1, %v5029_v5 }
 0x5c5   : > { %v5396_v61 = vsel %vm5369_vm8, %v5043_v36, %v5395_v47  ;;  %v4439_v48 = vmax.f32 %v4345_v17, 0.0  ;;  %v4482_v42 = vsel %vm2355_vm12, %v4440_v10, -inf }
 0x5c6   : > { %v5397_v35 = vsel %vm5371_vm9, %v5050_v2, %v5396_v61 }
 0x5c7   : > { %v5398_v20 = vsel %vm5373_vm10, %v5057_v27, %v5397_v35  ;;  %v4479_v45 = vsel %vm2355_vm12, %v4439_v48, -inf }
 0x5c8   : > { %v5399_v13 = vsel %vm5375_vm11, %v5064_v57, %v5398_v20 }
 0x5c9   : > { %v5400_v7 = vsel %vm5377_vm14, %v5071_v18, %v5399_v13 }
 0x5ca   : > { %v5401_v31 = vsel %vm5379_vm15, %v5078_v41, %v5400_v7 }
 0x5cb   : > { %5441 = vst.msk [vmem:[%s8262_s14 + $0x18] sm:$0xff] %vm2355_vm12, %v5401_v31 }
 0x5d8   : > { %v5786_v6 = vpop.f32.mrf.mxu1 }
 0x5d9   : > { %v4360_v16 = vadd.f32 %v5786_v6, %v8204_v62 }
 0x5da   : > { %v4354_v29 = vpop.f32.mrf.mxu1 }
 0x5db   : > { %v4442_v46 = vmax.f32 %v4360_v16, 0.0  ;;  %v4355_v24 = vadd.f32 %v8204_v62, %v4354_v29 }
 0x5dd   : > { %v4483_v22 = vsel %vm2355_vm12, %v4442_v46, -inf  ;;  %v4441_v40 = vmax.f32 %v4355_v24, 0.0 }
 0x5de   : > { %v4484_v15 = vmax.f32 %v4482_v42, %v4483_v22 }
 0x5df   : > { %v4480_v44 = vsel %vm2355_vm12, %v4441_v40, -inf }
 0x5e0   : > { %v4672_v49 = vcombine.high %v4484_v15, %v4484_v15  ;;  %v4679_v37 = vrot.slane %v4484_v15, %v8214_v59  ;;  %v4481_v28 = vmax.f32 %v4479_v45, %v4480_v44 }
 0x5e2   : > { %v4686_v14 = vrot.slane %v4672_v49, %v8214_v59  ;;  %v4687_v50 = vcombine.high %v4679_v37, %v4679_v37  ;;  %v5107_v26 = vsel %vm2358_vm13, %v4679_v37, -inf  ;;  %v4655_v23 = vcombine.high %v4481_v28, %v4481_v28 }
 0x5e3   : > { %v5108_v25 = vrot.slane %v5107_v26, 4  ;;  %v4662_v54 = vrot.slane %v4481_v28, %v8214_v59 }
 0x5e4   : > { %v4688_v34 = vcombine.high %v4686_v14, %v4686_v14  ;;  %v5114_v19 = vsel %vm2358_vm13, %v4687_v50, -inf  ;;  %v5121_v38 = vsel %vm2358_vm13, %v4686_v14, -inf  ;;  %v4669_v33 = vrot.slane %v4655_v23, %v8214_v59 }
 0x5e5   : > { %v5115_v4 = vrot.slane %v5114_v19, 4  ;;  %v5122_v3 = vrot.slane %v5121_v38, 4  ;;  %v4670_v39 = vcombine.high %v4662_v54, %v4662_v54  ;;  %v5079_v21 = vsel %vm2358_vm13, %v4662_v54, -inf }
 0x5e6   : > { %v5128_v11 = vsel %vm2358_vm13, %v4688_v34, -inf  ;;  %v4671_v52 = vcombine.high %v4669_v33, %v4669_v33  ;;  %v5093_v0 = vsel %vm2358_vm13, %v4669_v33, -inf  ;;  %v5109_v63 = vmax.f32 %v5107_v26, %v5108_v25 }
 0x5e7   : > { %v5116_v56 = vmax.f32 %v5114_v19, %v5115_v4  ;;  %v5129_v32 = vrot.slane %v5128_v11, 4  ;;  %v5080_v58 = vrot.slane %v5079_v21, 4  ;;  %v5086_v30 = vsel %vm2358_vm13, %v4670_v39, -inf }
 0x5e8   : > { %v5094_v36 = vrot.slane %v5093_v0, 4  ;;  %v5100_v9 = vsel %vm2358_vm13, %v4671_v52, -inf  ;;  %v5123_v5 = vmax.f32 %v5121_v38, %v5122_v3  ;;  %v5087_v43 = vrot.slane %v5086_v30, 4 }
 0x5e9   : > { %v5130_v1 = vmax.f32 %v5128_v11, %v5129_v32  ;;  %v5081_v2 = vmax.f32 %v5079_v21, %v5080_v58  ;;  %v5101_v47 = vrot.slane %v5100_v9, 4  ;;  %v5110_v27 = vrot.slane %v5109_v63, 2 }
 0x5ea   : > { %v5095_v60 = vmax.f32 %v5093_v0, %v5094_v36  ;;  %v5117_v61 = vrot.slane %v5116_v56, 2  ;;  %v5088_v35 = vmax.f32 %v5086_v30, %v5087_v43  ;;  %v5124_v41 = vrot.slane %v5123_v5, 2 }
 0x5eb   : > { %v5082_v57 = vrot.slane %v5081_v2, 2  ;;  %v5102_v20 = vmax.f32 %v5100_v9, %v5101_v47  ;;  %v5131_v13 = vrot.slane %v5130_v1, 2  ;;  %v5111_v8 = vmax.f32 %v5109_v63, %v5110_v27 }
 0x5ec   : > { %v5096_v18 = vrot.slane %v5095_v60, 2  ;;  %v5089_v31 = vrot.slane %v5088_v35, 2  ;;  %v5118_v17 = vmax.f32 %v5116_v56, %v5117_v61  ;;  %v5125_v48 = vmax.f32 %v5123_v5, %v5124_v41 }
 0x5ed   : > { %v5083_v7 = vmax.f32 %v5081_v2, %v5082_v57  ;;  %v5103_v51 = vrot.slane %v5102_v20, 2  ;;  %v5132_v46 = vmax.f32 %v5130_v1, %v5131_v13  ;;  %v5112_v22 = vrot.slane %v5111_v8, 1 }
 0x5ee   : > { %v5097_v12 = vmax.f32 %v5095_v60, %v5096_v18  ;;  %v5090_v10 = vmax.f32 %v5088_v35, %v5089_v31  ;;  %v5119_v15 = vrot.slane %v5118_v17, 1  ;;  %v5126_v37 = vrot.slane %v5125_v48, 1 }
 0x5ef   : > { %v5084_v6 = vrot.slane %v5083_v7, 1  ;;  %v5104_v29 = vmax.f32 %v5102_v20, %v5103_v51  ;;  %v5133_v28 = vrot.slane %v5132_v46, 1  ;;  %v5113_v50 = vmax.f32 %v5111_v8, %v5112_v22 }
 0x5f0   : > { %v5098_v16 = vrot.slane %v5097_v12, 1  ;;  %v5091_v24 = vrot.slane %v5090_v10, 1  ;;  %v5120_v23 = vmax.f32 %v5118_v17, %v5119_v15  ;;  %v5127_v54 = vmax.f32 %v5125_v48, %v5126_v37  ;;  %v5789_v3 = vpop.f32.mrf.mxu1 }
 0x5f1   : > { %v5105_v42 = vrot.slane %v5104_v29, 1  ;;  %v5085_v45 = vmax.f32 %v5083_v7, %v5084_v6  ;;  %v5134_v19 = vmax.f32 %v5132_v46, %v5133_v28  ;;  %v4370_v11 = vadd.f32 %v5789_v3, %v8204_v62 }
 0x5f2   : > { %v5099_v40 = vmax.f32 %v5097_v12, %v5098_v16  ;;  %v5092_v44 = vmax.f32 %v5090_v10, %v5091_v24  ;;  %v4364_v39 = vpop.f32.mrf.mxu1 }
 0x5f3   : > { %v5106_v49 = vmax.f32 %v5104_v29, %v5105_v42  ;;  %v4365_v52 = vadd.f32 %v8204_v62, %v4364_v39  ;;  %v4444_v0 = vmax.f32 %v4370_v11, 0.0 }
 0x5f4   : > { %v5402_v14 = vsel %vm5367_vm7, %v5092_v44, %v5085_v45 }
 0x5f5   : > { %v5403_v26 = vsel %vm5369_vm8, %v5099_v40, %v5402_v14  ;;  %v4443_v32 = vmax.f32 %v4365_v52, 0.0  ;;  %v4488_v36 = vsel %vm2355_vm12, %v4444_v0, -inf }
 0x5f6   : > { %v5404_v25 = vsel %vm5371_vm9, %v5106_v49, %v5403_v26 }
 0x5f7   : > { %v5405_v34 = vsel %vm5373_vm10, %v5113_v50, %v5404_v25  ;;  %v4485_v2 = vsel %vm2355_vm12, %v4443_v32, -inf }
 0x5f8   : > { %v5406_v38 = vsel %vm5375_vm11, %v5120_v23, %v5405_v34 }
 0x5f9   : > { %v5407_v33 = vsel %vm5377_vm14, %v5127_v54, %v5406_v38 }
 0x5fa   : > { %v5408_v4 = vsel %vm5379_vm15, %v5134_v19, %v5407_v33 }
 0x5fb   : > { %5442 = vst.msk [vmem:[%s8262_s14 + $0x20] sm:$0xff] %vm2355_vm12, %v5408_v4 }
 0x608   : > { %v5792_v21 = vpop.f32.mrf.mxu1 }
 0x609   : > { %v4380_v63 = vadd.f32 %v5792_v21, %v8204_v62 }
 0x60a   : > { %v4374_v56 = vpop.f32.mrf.mxu1 }
 0x60b   : > { %v4446_v58 = vmax.f32 %v4380_v63, 0.0  ;;  %v4375_v30 = vadd.f32 %v8204_v62, %v4374_v56 }
 0x60d   : > { %v4489_v9 = vsel %vm2355_vm12, %v4446_v58, -inf  ;;  %v4445_v5 = vmax.f32 %v4375_v30, 0.0 }
 0x60e   : > { %v4490_v1 = vmax.f32 %v4488_v36, %v4489_v9 }
 0x60f   : > { %v4486_v43 = vsel %vm2355_vm12, %v4445_v5, -inf }
 0x610   : > { %v4706_v60 = vcombine.high %v4490_v1, %v4490_v1  ;;  %v4713_v47 = vrot.slane %v4490_v1, %v8214_v59  ;;  %v4487_v27 = vmax.f32 %v4485_v2, %v4486_v43 }
 0x612   : > { %v4720_v61 = vrot.slane %v4706_v60, %v8214_v59  ;;  %v4721_v57 = vcombine.high %v4713_v47, %v4713_v47  ;;  %v5163_v35 = vsel %vm2358_vm13, %v4713_v47, -inf  ;;  %v4689_v62 = vcombine.high %v4487_v27, %v4487_v27 }
 0x613   : > { %v5164_v18 = vrot.slane %v5163_v35, 4  ;;  %v4696_v20 = vrot.slane %v4487_v27, %v8214_v59 }
 0x614   : > { %v4722_v41 = vcombine.high %v4720_v61, %v4720_v61  ;;  %v5170_v13 = vsel %vm2358_vm13, %v4721_v57, -inf  ;;  %v5177_v7 = vsel %vm2358_vm13, %v4720_v61, -inf  ;;  %v4703_v31 = vrot.slane %v4689_v62, %v8214_v59 }
 0x615   : > { %v5171_v12 = vrot.slane %v5170_v13, 4  ;;  %v5178_v51 = vrot.slane %v5177_v7, 4  ;;  %v4704_v8 = vcombine.high %v4696_v20, %v4696_v20  ;;  %v5135_v10 = vsel %vm2358_vm13, %v4696_v20, -inf }
 0x616   : > { %v5184_v17 = vsel %vm2358_vm13, %v4722_v41, -inf  ;;  %v4705_v6 = vcombine.high %v4703_v31, %v4703_v31  ;;  %v5149_v16 = vsel %vm2358_vm13, %v4703_v31, -inf  ;;  %v5165_v29 = vmax.f32 %v5163_v35, %v5164_v18 }
 0x617   : > { %v5172_v48 = vmax.f32 %v5170_v13, %v5171_v12  ;;  %v5185_v46 = vrot.slane %v5184_v17, 4  ;;  %v5136_v24 = vrot.slane %v5135_v10, 4  ;;  %v5142_v42 = vsel %vm2358_vm13, %v4704_v8, -inf  ;;  %v8419_v8 = vld [vmem:[%s8592_s4] ss:$0 sm:$0xff] }
 0x618   : > { %v5150_v22 = vrot.slane %v5149_v16, 4  ;;  %v5156_v40 = vsel %vm2358_vm13, %v4705_v6, -inf  ;;  %v5179_v15 = vmax.f32 %v5177_v7, %v5178_v51  ;;  %v5143_v49 = vrot.slane %v5142_v42, 4 }
 0x619   : > { %v5186_v45 = vmax.f32 %v5184_v17, %v5185_v46  ;;  %v5137_v44 = vmax.f32 %v5135_v10, %v5136_v24  ;;  %v5157_v28 = vrot.slane %v5156_v40, 4  ;;  %v5166_v14 = vrot.slane %v5165_v29, 2 }
 0x61a   : > { %v5151_v37 = vmax.f32 %v5149_v16, %v5150_v22  ;;  %v5173_v50 = vrot.slane %v5172_v48, 2  ;;  %v5144_v23 = vmax.f32 %v5142_v42, %v5143_v49  ;;  %v5180_v34 = vrot.slane %v5179_v15, 2 }
 0x61b   : > { %v5138_v26 = vrot.slane %v5137_v44, 2  ;;  %v5158_v54 = vmax.f32 %v5156_v40, %v5157_v28  ;;  %v5187_v19 = vrot.slane %v5186_v45, 2  ;;  %v5167_v39 = vmax.f32 %v5165_v29, %v5166_v14 }
 0x61c   : > { %v5152_v25 = vrot.slane %v5151_v37, 2  ;;  %v5145_v33 = vrot.slane %v5144_v23, 2  ;;  %v5174_v11 = vmax.f32 %v5172_v48, %v5173_v50  ;;  %v5181_v56 = vmax.f32 %v5179_v15, %v5180_v34 }
 0x61d   : > { %v5139_v38 = vmax.f32 %v5137_v44, %v5138_v26  ;;  %v5159_v3 = vrot.slane %v5158_v54, 2  ;;  %v5188_v32 = vmax.f32 %v5186_v45, %v5187_v19  ;;  %v5168_v36 = vrot.slane %v5167_v39, 1 }
 0x61e   : > { %v5153_v4 = vmax.f32 %v5151_v37, %v5152_v25  ;;  %v5146_v21 = vmax.f32 %v5144_v23, %v5145_v33  ;;  %v5175_v5 = vrot.slane %v5174_v11, 1  ;;  %v5182_v60 = vrot.slane %v5181_v56, 1 }
 0x61f   : > { %v5140_v52 = vrot.slane %v5139_v38, 1  ;;  %v5160_v63 = vmax.f32 %v5158_v54, %v5159_v3  ;;  %v5189_v47 = vrot.slane %v5188_v32, 1  ;;  %v5169_v61 = vmax.f32 %v5167_v39, %v5168_v36 }
 0x620   : > { %v5154_v0 = vrot.slane %v5153_v4, 1  ;;  %v5147_v58 = vrot.slane %v5146_v21, 1  ;;  %v5176_v35 = vmax.f32 %v5174_v11, %v5175_v5  ;;  %v5183_v18 = vmax.f32 %v5181_v56, %v5182_v60  ;;  %v5795_v12 = vpop.f32.mrf.mxu1 }
 0x621   : > { %v5161_v30 = vrot.slane %v5160_v63, 1  ;;  %v5141_v1 = vmax.f32 %v5139_v38, %v5140_v52  ;;  %v5190_v41 = vmax.f32 %v5188_v32, %v5189_v47  ;;  %v4390_v17 = vadd.f32 %v8419_v8, %v5795_v12 }
 0x622   : > { %v5155_v9 = vmax.f32 %v5153_v4, %v5154_v0  ;;  %v5148_v2 = vmax.f32 %v5146_v21, %v5147_v58  ;;  %v4384_v51 = vpop.f32.mrf.mxu1 }
 0x623   : > { %v5162_v43 = vmax.f32 %v5160_v63, %v5161_v30  ;;  %v4385_v6 = vadd.f32 %v8419_v8, %v4384_v51  ;;  %v4448_v16 = vmax.f32 %v4390_v17, 0.0 }
 0x624   : > { %v5409_v27 = vsel %vm5367_vm7, %v5148_v2, %v5141_v1 }
 0x625   : > { %v5410_v57 = vsel %vm5369_vm8, %v5155_v9, %v5409_v27  ;;  %v4447_v46 = vmax.f32 %v4385_v6, 0.0  ;;  %v4494_v22 = vsel %vm2355_vm12, %v4448_v16, -inf }
 0x626   : > { %v5411_v62 = vsel %vm5371_vm9, %v5162_v43, %v5410_v57 }
 0x627   : > { %v5412_v20 = vsel %vm5373_vm10, %v5169_v61, %v5411_v62  ;;  %v4491_v44 = vsel %vm2355_vm12, %v4447_v46, -inf }
 0x628   : > { %v5413_v13 = vsel %vm5375_vm11, %v5176_v35, %v5412_v20 }
 0x629   : > { %v5414_v7 = vsel %vm5377_vm14, %v5183_v18, %v5413_v13 }
 0x62a   : > { %v5415_v31 = vsel %vm5379_vm15, %v5190_v41, %v5414_v7 }
 0x62b   : > { %5443 = vst.msk [vmem:[%s8262_s14 + $0x28] sm:$0xff] %vm2355_vm12, %v5415_v31 }
 0x638   : > { %v5798_v10 = vpop.f32.mrf.mxu1 }
 0x639   : > { %v4400_v29 = vadd.f32 %v8419_v8, %v5798_v10 }
 0x63a   : > { %v4394_v48 = vpop.f32.mrf.mxu1 }
 0x63b   : > { %v4450_v24 = vmax.f32 %v4400_v29, 0.0  ;;  %v4395_v42 = vadd.f32 %v8419_v8, %v4394_v48 }
 0x63d   : > { %v4495_v40 = vsel %vm2355_vm12, %v4450_v24, -inf  ;;  %v4449_v15 = vmax.f32 %v4395_v42, 0.0 }
 0x63e   : > { %v4496_v45 = vmax.f32 %v4494_v22, %v4495_v40 }
 0x63f   : > { %v4492_v49 = vsel %vm2355_vm12, %v4449_v15, -inf }
 0x640   : > { %v4740_v37 = vcombine.high %v4496_v45, %v4496_v45  ;;  %v4747_v28 = vrot.slane %v4496_v45, %v8214_v59  ;;  %v4493_v14 = vmax.f32 %v4491_v44, %v4492_v49 }
 0x642   : > { %v4754_v50 = vrot.slane %v4740_v37, %v8214_v59  ;;  %v4755_v26 = vcombine.high %v4747_v28, %v4747_v28  ;;  %v5219_v23 = vsel %vm2358_vm13, %v4747_v28, -inf  ;;  %v4723_v25 = vcombine.high %v4493_v14, %v4493_v14 }
 0x643   : > { %v5220_v54 = vrot.slane %v5219_v23, 4  ;;  %v4730_v34 = vrot.slane %v4493_v14, %v8214_v59 }
 0x644   : > { %v4756_v19 = vcombine.high %v4754_v50, %v4754_v50  ;;  %v5226_v38 = vsel %vm2358_vm13, %v4755_v26, -inf  ;;  %v5233_v33 = vsel %vm2358_vm13, %v4754_v50, -inf  ;;  %v4737_v4 = vrot.slane %v4723_v25, %v8214_v59 }
 0x645   : > { %v5227_v3 = vrot.slane %v5226_v38, 4  ;;  %v5234_v39 = vrot.slane %v5233_v33, 4  ;;  %v4738_v11 = vcombine.high %v4730_v34, %v4730_v34  ;;  %v5191_v0 = vsel %vm2358_vm13, %v4730_v34, -inf }
 0x646   : > { %v5240_v52 = vsel %vm2358_vm13, %v4756_v19, -inf  ;;  %v4739_v21 = vcombine.high %v4737_v4, %v4737_v4  ;;  %v5205_v63 = vsel %vm2358_vm13, %v4737_v4, -inf  ;;  %v5221_v56 = vmax.f32 %v5219_v23, %v5220_v54 }
 0x647   : > { %v5228_v32 = vmax.f32 %v5226_v38, %v5227_v3  ;;  %v5241_v58 = vrot.slane %v5240_v52, 4  ;;  %v5192_v30 = vrot.slane %v5191_v0, 4  ;;  %v5198_v36 = vsel %vm2358_vm13, %v4738_v11, -inf }
 0x648   : > { %v5206_v9 = vrot.slane %v5205_v63, 4  ;;  %v5212_v5 = vsel %vm2358_vm13, %v4739_v21, -inf  ;;  %v5235_v1 = vmax.f32 %v5233_v33, %v5234_v39  ;;  %v5199_v60 = vrot.slane %v5198_v36, 4 }
 0x649   : > { %v5242_v2 = vmax.f32 %v5240_v52, %v5241_v58  ;;  %v5193_v43 = vmax.f32 %v5191_v0, %v5192_v30  ;;  %v5213_v27 = vrot.slane %v5212_v5, 4  ;;  %v5222_v61 = vrot.slane %v5221_v56, 2 }
 0x64a   : > { %v5207_v47 = vmax.f32 %v5205_v63, %v5206_v9  ;;  %v5229_v57 = vrot.slane %v5228_v32, 2  ;;  %v5200_v62 = vmax.f32 %v5198_v36, %v5199_v60  ;;  %v5236_v41 = vrot.slane %v5235_v1, 2 }
 0x64b   : > { %v5194_v35 = vrot.slane %v5193_v43, 2  ;;  %v5214_v20 = vmax.f32 %v5212_v5, %v5213_v27  ;;  %v5243_v13 = vrot.slane %v5242_v2, 2  ;;  %v5223_v17 = vmax.f32 %v5221_v56, %v5222_v61 }
 0x64c   : > { %v5208_v18 = vrot.slane %v5207_v47, 2  ;;  %v5201_v31 = vrot.slane %v5200_v62, 2  ;;  %v5230_v6 = vmax.f32 %v5228_v32, %v5229_v57  ;;  %v5237_v46 = vmax.f32 %v5235_v1, %v5236_v41 }
 0x64d   : > { %v5195_v7 = vmax.f32 %v5193_v43, %v5194_v35  ;;  %v5215_v51 = vrot.slane %v5214_v20, 2  ;;  %v5244_v24 = vmax.f32 %v5242_v2, %v5243_v13  ;;  %v5224_v40 = vrot.slane %v5223_v17, 1 }
 0x64e   : > { %v5209_v12 = vmax.f32 %v5207_v47, %v5208_v18  ;;  %v5202_v16 = vmax.f32 %v5200_v62, %v5201_v31  ;;  %v5231_v45 = vrot.slane %v5230_v6, 1  ;;  %v5238_v28 = vrot.slane %v5237_v46, 1 }
 0x64f   : > { %v5196_v10 = vrot.slane %v5195_v7, 1  ;;  %v5216_v48 = vmax.f32 %v5214_v20, %v5215_v51  ;;  %v5245_v14 = vrot.slane %v5244_v24, 1  ;;  %v5225_v26 = vmax.f32 %v5223_v17, %v5224_v40 }
 0x650   : > { %v5210_v29 = vrot.slane %v5209_v12, 1  ;;  %v5203_v42 = vrot.slane %v5202_v16, 1  ;;  %v5232_v25 = vmax.f32 %v5230_v6, %v5231_v45  ;;  %v5239_v34 = vmax.f32 %v5237_v46, %v5238_v28 }
 0x651   : > { %v5217_v22 = vrot.slane %v5216_v48, 1  ;;  %v5197_v44 = vmax.f32 %v5195_v7, %v5196_v10  ;;  %v5246_v38 = vmax.f32 %v5244_v24, %v5245_v14  ;;  %v4280_v21 = vadd.f32 %v8419_v8, %v8191_v53 }
 0x652   : > { %v5211_v15 = vmax.f32 %v5209_v12, %v5210_v29  ;;  %v5204_v49 = vmax.f32 %v5202_v16, %v5203_v42  ;;  %v5801_v39 = vpop.f32.mrf.mxu1 }
 0x653   : > { %v5218_v37 = vmax.f32 %v5216_v48, %v5217_v22  ;;  %v4410_v11 = vadd.f32 %v8419_v8, %v5801_v39  ;;  %v4426_v30 = vmax.f32 %v4280_v21, 0.0  ;;  %v4275_v22 = vadd.f32 %v8419_v8, %v8195_v55 }
 0x654   : > { %v5416_v50 = vsel %vm5367_vm7, %v5204_v49, %v5197_v44  ;;  %v4404_v52 = vpop.f32.mrf.mxu1 }
 0x655   : > { %v5417_v23 = vsel %vm5369_vm8, %v5211_v15, %v5416_v50  ;;  %v4452_v63 = vmax.f32 %v4410_v11, 0.0  ;;  %v4405_v2 = vadd.f32 %v8419_v8, %v4404_v52  ;;  %v4459_v47 = vsel %vm2355_vm12, %v4426_v30, -inf }
 0x656   : > { %v5418_v54 = vsel %vm5371_vm9, %v5218_v37, %v5417_v23 }
 0x657   : > { %v5419_v19 = vsel %vm5373_vm10, %v5225_v26, %v5418_v54  ;;  %v4500_v1 = vsel %vm2355_vm12, %v4452_v63, -inf  ;;  %v4451_v18 = vmax.f32 %v4405_v2, 0.0 }
 0x658   : > { %v5420_v33 = vsel %vm5375_vm11, %v5232_v25, %v5419_v19 }
 0x659   : > { %v5421_v4 = vsel %vm5377_vm14, %v5239_v34, %v5420_v33  ;;  %v4497_v29 = vsel %vm2355_vm12, %v4451_v18, -inf  ;;  %v4425_v34 = vmax.f32 %v4275_v22, 0.0 }
 0x65a   : > { %v5422_v3 = vsel %vm5379_vm15, %v5246_v38, %v5421_v4 }
 0x65b   : > { %5444 = vst.msk [vmem:[%s8262_s14 + $0x30] sm:$0xff] %vm2355_vm12, %v5422_v3  ;;  %v4456_v63 = vsel %vm2355_vm12, %v4425_v34, -inf }
 0x66e   : > { %v5804_v0 = vpop.f32.mrf.mxu1 }
 0x66f   : > { %v4420_v56 = vadd.f32 %v8419_v8, %v5804_v0 }
 0x670   : > { %v5759_v32 = vpop.f32.mrf.mxu0  ;;  %v4414_v58 = vpop.f32.mrf.mxu1 }
 0x671   : > { %v4454_v36 = vmax.f32 %v4420_v56, 0.0  ;;  %v4270_v9 = vadd.f32 %v8419_v8, %v5759_v32  ;;  %v4415_v5 = vadd.f32 %v8419_v8, %v4414_v58 }
 0x672   : > { %v4264_v42 = vpop.f32.mrf.mxu0 }
 0x673   : > { %v4501_v43 = vsel %vm2355_vm12, %v4454_v36, -inf  ;;  %v4424_v60 = vmax.f32 %v4270_v9, 0.0  ;;  %v4453_v61 = vmax.f32 %v4415_v5, 0.0  ;;  %v4265_v14 = vadd.f32 %v8419_v8, %v4264_v42 }
 0x674   : > { %v4502_v53 = vmax.f32 %v4500_v1, %v4501_v43 }
 0x675   : > { %v4458_v27 = vsel %vm2355_vm12, %v4424_v60, -inf  ;;  %v4498_v51 = vsel %vm2355_vm12, %v4453_v61, -inf  ;;  %v4423_v4 = vmax.f32 %v4265_v14, 0.0 }
 0x676   : > { %v4774_v57 = vcombine.high %v4502_v53, %v4502_v53  ;;  %v4781_v35 = vrot.slane %v4502_v53, %v8214_v59  ;;  %v4460_v62 = vmax.f32 %v4458_v27, %v4459_v47  ;;  %v4499_v40 = vmax.f32 %v4497_v29, %v4498_v51 }
 0x677   : > { %v4455_v36 = vsel %vm2355_vm12, %v4423_v4, -inf }
 0x678   : > { %v4788_v20 = vrot.slane %v4774_v57, %v8214_v59  ;;  %v4789_v41 = vcombine.high %v4781_v35, %v4781_v35  ;;  %v5275_v13 = vsel %vm2358_vm13, %v4781_v35, -inf  ;;  %v4536_v7 = vcombine.high %v4460_v62, %v4460_v62 }
 0x679   : > { %v5276_v31 = vrot.slane %v5275_v13, 4  ;;  %v4543_v12 = vrot.slane %v4460_v62, %v8214_v59  ;;  %v4757_v19 = vcombine.high %v4499_v40, %v4499_v40  ;;  %v4764_v11 = vrot.slane %v4499_v40, %v8214_v59 }
 0x67a   : > { %v4790_v17 = vcombine.high %v4788_v20, %v4788_v20  ;;  %v5282_v6 = vsel %vm2358_vm13, %v4789_v41, -inf  ;;  %v5289_v10 = vsel %vm2358_vm13, %v4788_v20, -inf  ;;  %v4550_v16 = vrot.slane %v4536_v7, %v8214_v59 }
 0x67b   : > { %v5277_v48 = vmax.f32 %v5275_v13, %v5276_v31  ;;  %v5283_v46 = vrot.slane %v5282_v6, 4  ;;  %v5290_v24 = vrot.slane %v5289_v10, 4  ;;  %v4551_v45 = vcombine.high %v4543_v12, %v4543_v12 }
 0x67c   : > { %v5296_v15 = vsel %vm2358_vm13, %v4790_v17, -inf  ;;  %v4883_v44 = vsel %vm2358_vm13, %v4543_v12, -inf  ;;  %v4897_v49 = vsel %vm2358_vm13, %v4550_v16, -inf  ;;  %v4552_v26 = vcombine.high %v4550_v16, %v4550_v16 }
 0x67d   : > { %v5278_v37 = vrot.slane %v5277_v48, 2  ;;  %v5284_v28 = vmax.f32 %v5282_v6, %v5283_v46  ;;  %v5291_v50 = vmax.f32 %v5289_v10, %v5290_v24  ;;  %v5297_v23 = vrot.slane %v5296_v15, 4 }
 0x67e   : > { %v4884_v25 = vrot.slane %v4883_v44, 4  ;;  %v4898_v54 = vrot.slane %v4897_v49, 4  ;;  %v4890_v55 = vsel %vm2358_vm13, %v4551_v45, -inf  ;;  %v4904_v39 = vsel %vm2358_vm13, %v4552_v26, -inf }
 0x67f   : > { %v5279_v38 = vmax.f32 %v5277_v48, %v5278_v37  ;;  %v5285_v33 = vrot.slane %v5284_v28, 2  ;;  %v5292_v3 = vrot.slane %v5291_v50, 2  ;;  %v5298_v52 = vmax.f32 %v5296_v15, %v5297_v23 }
 0x680   : > { %v4885_v21 = vmax.f32 %v4883_v44, %v4884_v25  ;;  %v4891_v8 = vrot.slane %v4890_v55, 4  ;;  %v8479_v0 = vmax.f32 %v4897_v49, %v4898_v54  ;;  %v4771_v56 = vrot.slane %v4757_v19, %v8214_v59 }
 0x681   : > { %v5280_v32 = vrot.slane %v5279_v38, 1  ;;  %v8483_v58 = vmax.f32 %v5284_v28, %v5285_v33  ;;  %v4905_v30 = vrot.slane %v4904_v39, 4  ;;  %v8486_v9 = vmax.f32 %v5291_v50, %v5292_v3 }
 0x682   : > { %v4772_v5 = vcombine.high %v4764_v11, %v4764_v11  ;;  %v4773_v1 = vcombine.high %v4771_v56, %v4771_v56  ;;  %v5247_v2 = vsel %vm2358_vm13, %v4764_v11, -inf  ;;  %v5299_v43 = vrot.slane %v5298_v52, 2 }
 0x683   : > { %v4886_v60 = vrot.slane %v4885_v21, 2  ;;  %v8489_v53 = vmax.f32 %v4890_v55, %v4891_v8  ;;  %v4900_v47 = vrot.slane %v8479_v0, 2  ;;  %v5248_v27 = vrot.slane %v5247_v2, 4 }
 0x684   : > { %v5254_v61 = vsel %vm2358_vm13, %v4772_v5, -inf  ;;  %v5261_v57 = vsel %vm2358_vm13, %v4771_v56, -inf  ;;  %v5268_v35 = vsel %vm2358_vm13, %v4773_v1, -inf  ;;  %v5281_v62 = vmax.f32 %v5279_v38, %v5280_v32 }
 0x685   : > { %v8495_v18 = vmax.f32 %v4904_v39, %v4905_v30  ;;  %v5255_v20 = vrot.slane %v5254_v61, 4  ;;  %v5262_v41 = vrot.slane %v5261_v57, 4  ;;  %v5287_v13 = vrot.slane %v8483_v58, 1 }
 0x686   : > { %v5249_v7 = vmax.f32 %v5247_v2, %v5248_v27  ;;  %v5269_v31 = vrot.slane %v5268_v35, 4  ;;  %v4457_v12 = vmax.f32 %v4455_v36, %v4456_v63  ;;  %v5294_v51 = vrot.slane %v8486_v9, 1 }
 0x687   : > { %v5300_v17 = vmax.f32 %v5298_v52, %v5299_v43  ;;  %v5256_v6 = vmax.f32 %v5254_v61, %v5255_v20  ;;  %v5263_v10 = vmax.f32 %v5261_v57, %v5262_v41  ;;  %v8500_v24 = vmax.f32 %v4885_v21, %v4886_v60 }
 0x688   : > { %v5250_v16 = vrot.slane %v5249_v7, 2  ;;  %v5270_v29 = vmax.f32 %v5268_v35, %v5269_v31  ;;  %v4519_v48 = vcombine.high %v4457_v12, %v4457_v12  ;;  %v4526_v46 = vrot.slane %v4457_v12, %v8214_v59 }
 0x689   : > { %v4893_v42 = vrot.slane %v8489_v53, 2  ;;  %v5257_v22 = vrot.slane %v5256_v6, 2  ;;  %v5264_v40 = vrot.slane %v5263_v10, 2  ;;  %v4907_v37 = vrot.slane %v8495_v18, 2 }
 0x68a   : > { %v5251_v15 = vmax.f32 %v5249_v7, %v5250_v16  ;;  %v5271_v45 = vrot.slane %v5270_v29, 2  ;;  %v4533_v44 = vrot.slane %v4519_v48, %v8214_v59  ;;  %v4534_v49 = vcombine.high %v4526_v46, %v4526_v46 }
 0x68b   : > { %v5258_v28 = vmax.f32 %v5256_v6, %v5257_v22  ;;  %v5265_v14 = vmax.f32 %v5263_v10, %v5264_v40  ;;  %v4855_v50 = vsel %vm2358_vm13, %v4526_v46, -inf  ;;  %v5288_v30 = vmax.f32 %v8483_v58, %v5287_v13 }
 0x68c   : > { %v5252_v26 = vrot.slane %v5251_v15, 1  ;;  %v5272_v23 = vmax.f32 %v5270_v29, %v5271_v45  ;;  %v4535_v25 = vcombine.high %v4533_v44, %v4533_v44  ;;  %v4856_v54 = vrot.slane %v4855_v50, 4 }
 0x68d   : > { %v5259_v34 = vrot.slane %v5258_v28, 1  ;;  %v5266_v55 = vrot.slane %v5265_v14, 1  ;;  %v4862_v19 = vsel %vm2358_vm13, %v4534_v49, -inf  ;;  %v4869_v38 = vsel %vm2358_vm13, %v4533_v44, -inf }
 0x68e   : > { %v5253_v33 = vmax.f32 %v5251_v15, %v5252_v26  ;;  %v5273_v4 = vrot.slane %v5272_v23, 1  ;;  %v4857_v59 = vmax.f32 %v4855_v50, %v4856_v54  ;;  %v4863_v3 = vrot.slane %v4862_v19, 4 }
 0x68f   : > { %v5260_v39 = vmax.f32 %v5258_v28, %v5259_v34  ;;  %v5267_v11 = vmax.f32 %v5265_v14, %v5266_v55  ;;  %v4870_v52 = vrot.slane %v4869_v38, 4  ;;  %v4876_v21 = vsel %vm2358_vm13, %v4535_v25, -inf }
 0x690   : > { %v5274_v8 = vmax.f32 %v5272_v23, %v5273_v4  ;;  %v4858_v63 = vrot.slane %v4857_v59, 2  ;;  %v4864_v56 = vmax.f32 %v4862_v19, %v4863_v3  ;;  %v4877_v32 = vrot.slane %v4876_v21, 4 }
 0x691   : > { %v5301_v36 = vrot.slane %v5300_v17, 1  ;;  %v5423_v5 = vsel %vm5367_vm7, %v5260_v39, %v5253_v33  ;;  %v4871_v1 = vmax.f32 %v4869_v38, %v4870_v52  ;;  %v5295_v61 = vmax.f32 %v8486_v9, %v5294_v51 }
 0x692   : > { %v5424_v2 = vsel %vm5369_vm8, %v5267_v11, %v5423_v5  ;;  %v4859_v43 = vmax.f32 %v4857_v59, %v4858_v63  ;;  %v4865_v60 = vrot.slane %v4864_v56, 2  ;;  %v4878_v27 = vmax.f32 %v4876_v21, %v4877_v32 }
 0x693   : > { %v4894_v57 = vmax.f32 %v8489_v53, %v4893_v42  ;;  %v5425_v35 = vsel %vm5371_vm9, %v5274_v8, %v5424_v2  ;;  %v4872_v20 = vrot.slane %v4871_v1, 2  ;;  %v5302_v31 = vmax.f32 %v5300_v17, %v5301_v36 }
 0x694   : > { %v5426_v41 = vsel %vm5373_vm10, %v5281_v62, %v5425_v35  ;;  %v4860_v58 = vrot.slane %v4859_v43, 1  ;;  %v4866_v13 = vmax.f32 %v4864_v56, %v4865_v60  ;;  %v4879_v7 = vrot.slane %v4878_v27, 2 }
 0x695   : > { %v4901_v12 = vmax.f32 %v8479_v0, %v4900_v47  ;;  %v5427_v6 = vsel %vm5375_vm11, %v5288_v30, %v5426_v41  ;;  %v4873_v10 = vmax.f32 %v4871_v1, %v4872_v20  ;;  %v4908_v9 = vmax.f32 %v8495_v18, %v4907_v37 }
 0x696   : > { %v5428_v53 = vsel %vm5377_vm14, %v5295_v61, %v5427_v6  ;;  %v4867_v51 = vrot.slane %v4866_v13, 1  ;;  %v4880_v16 = vmax.f32 %v4878_v27, %v4879_v7  ;;  %v4888_v62 = vrot.slane %v8500_v24, 1 }
 0x697   : > { %v5429_v29 = vsel %vm5379_vm15, %v5302_v31, %v5428_v53  ;;  %v4874_v48 = vrot.slane %v4873_v10, 1  ;;  %v4895_v17 = vrot.slane %v4894_v57, 1  ;;  %v4861_v0 = vmax.f32 %v4859_v43, %v4860_v58 }
 0x698   : > { %5445 = vst.msk [vmem:[%s8262_s14 + $0x38] sm:$0xff] %vm2355_vm12, %v5429_v29  ;;  %v4868_v47 = vmax.f32 %v4866_v13, %v4867_v51  ;;  %v4881_v46 = vrot.slane %v4880_v16, 1  ;;  %v4902_v42 = vrot.slane %v4901_v12, 1  ;;  %v4909_v18 = vrot.slane %v4908_v9, 1 }
 0x699   : > { %v4875_v22 = vmax.f32 %v4873_v10, %v4874_v48  ;;  %v4889_v45 = vmax.f32 %v8500_v24, %v4888_v62  ;;  %v4896_v49 = vmax.f32 %v4894_v57, %v4895_v17 }
 0x69a   : > { %v4882_v40 = vmax.f32 %v4880_v16, %v4881_v46  ;;  %v5368_v15 = vsel %vm5367_vm7, %v4868_v47, %v4861_v0  ;;  %v4903_v28 = vmax.f32 %v4901_v12, %v4902_v42  ;;  %v4910_v50 = vmax.f32 %v4908_v9, %v4909_v18 }
 0x69b   : > { %v5370_v44 = vsel %vm5369_vm8, %v4875_v22, %v5368_v15 }
 0x69c   : > { %v5372_v37 = vsel %vm5371_vm9, %v4882_v40, %v5370_v44 }
 0x69d   : > { %v5374_v14 = vsel %vm5373_vm10, %v4889_v45, %v5372_v37 }
 0x69e   : > { %v5376_v26 = vsel %vm5375_vm11, %v4896_v49, %v5374_v14 }
 0x69f   : > { %v5378_v24 = vsel %vm5377_vm14, %v4903_v28, %v5376_v26 }
 0x6a0   : > { %v5380_v23 = vsel %vm5379_vm15, %v4910_v50, %v5378_v24 }
 0x6a1   : > { %5438 = vst.msk [vmem:[%s8262_s14] sm:$0xff] %vm2355_vm12, %v5380_v23 }
 0x6a2   : > { %5891 = shalt.err (!%p5888_p3)
}
 0x6a3   : > { %s5892_s12 = scalar_lea.hbm %s8537_s6, 1024  ;;  %s5896_s14 = scalar_lea.hbm %s8593_s5, 2048 }
 0x6a4   : > { %p5893_p4 = scmp.ne.s32.totalorder %s8537_s6, %s5892_s12  ;;  %p5897_p9 = scmp.lt.s32.totalorder %s8537_s6, %s8593_s5 }
 0x6a5   : > { %p5898_p10 = scmp.lt.s32.totalorder %s5896_s14, %s5892_s12 }
 0x6a6   : > { %p5894_p7 = pnand %p5893_p4, %p6024_p5 }
 0x6a7   : > { %p5899_p11 = por %p5898_p10, %p5897_p9 }
 0x6a8   : > { %p5895_p8 = pneg %p5894_p7 }
 0x6aa   : > { %p5900_p12 = pnand %p5899_p11, %p5895_p8 }
 0x6ac   : > { %5903 = shalt.err (!%p5900_p12)
}
 0x6ad   : > { %s5955_s17 = smov 128  }
 0x6ae   : > { %5823 = dma.vmem_to_hbm [thread:$0]  (%p6024_p5), %s8540_s23, 1024, %s8537_s6, %s8547_s22, %s5955_s17, %s5955_s17, %s5942_s11  }
 0x6af PF: > { %p5829_p13 = scmp.ge.s32.totalorder %s5938_s21, 2  ;;  %s5475_s25 = sand.u32 1, %s5926_s18  }
 0x6b0   : > { %s5476_s30 = scalar_lea.sflag [#allocation7], %s5475_s25 }
 0x6b1   : > { %p5826_p0 = pnand %p5829_p13, %p6028_p6 }
 0x6b3   : > { %p5827_p1 = pneg %p5826_p0 }
 0x6b5   : > { %5921 = dma.done.wait (%p5827_p1), %s5476_s30, 1024  }
 0x6b6   : > { %5923 = vsyncadd (%p5827_p1), %s5476_s30, 4294966272  ;;  %p15_p2 = scmp.ge.s32.totalorder %s6011_s24, 4   ;;  %s8689_s18 = smov %s5930_s19 }
 0x6b7   : > { %s8690_s19 = smov %s5934_s20  ;;  %s8691_s20 = smov %s6022_s27 }
 0x6b8   : > { %s8692_s21 = smov %s6011_s24  ;;  %17 = sbr.rel (!%p15_p2) target bundleno = 3 (0x3), region = 79 }
 0x6bd   :  { %5481 = vsyncpa [#allocation7], 1 }
 0x6be   :  { %5483 = vsyncpa [#allocation7 + $0x1], 1 }

</bundles_post_ra>
